<compile_context>
chip_gen: v7x
topology: tpu7x:2x2x1
jax: 0.10.0
libtpu: 0.0.40
codegen_flags: <defaults>
</compile_context>

<pallas_src>
import functools

import numpy as np
import jax
import jax.numpy as jnp
from jax import lax
from jax.experimental import pallas as pl
from jax.experimental.pallas import tpu as pltpu


def _resblock_kernel(x_ref, m_ref, w1_ref, b1_ref, w2_ref, b2_ref, o_ref, *, W):
    """Per-grid-step refs:
         x_ref, o_ref : (1, C, HW)   one image, lane-dense (HW % 128 == 0)
         m_ref        : (8, HW) f32  zero-padding validity masks (non-center taps)
         w*_ref       : (C, 9*C) bf16  tap-stacked conv weights
         b*_ref       : (C, 1) f32   biases
    """
    f32 = jnp.float32
    bf16 = jnp.bfloat16
    HW = x_ref.shape[2]

    masks = m_ref[...]                                    # (8, HW) f32
    shifts = tuple(dy * W + dx for dy in (-1, 0, 1) for dx in (-1, 0, 1))

    def stack_taps(inp_f32):
        # Build X9 = [tap_0(x); ...; tap_8(x)] of shape (9*C, HW) in bf16.
        # Spatial shifts are XLU rolls along the lane axis; zero-padding is
        # realized by the precomputed validity masks (within one image, any
        # roll wrap-around lands on a masked position).
        cols = []
        mi = 0
        for s in shifts:
            if s == 0:
                xs = inp_f32                              # center tap
            else:
                xs = pltpu.roll(inp_f32, shift=(-s) % HW, axis=1) * masks[mi:mi + 1, :]
                mi += 1
            cols.append(xs.astype(bf16))
        return jnp.concatenate(cols, axis=0)              # (9C, HW) bf16

    def conv3x3(inp_f32, w_ref, b_ref):
        x9 = stack_taps(inp_f32)
        acc = jnp.dot(w_ref[...], x9, preferred_element_type=f32)   # one K=9C matmul
        return acc + b_ref[...]                           # (C,1) broadcast over lanes

    x = x_ref[0].astype(f32)                              # (C, HW)
    a = jnp.maximum(conv3x3(x, w1_ref, b1_ref), 0.0)      # conv1 + ReLU
    # Re-read x for the residual: shorter live range (v5e spill pressure),
    # zero extra HBM traffic (it is already in VMEM).
    y = conv3x3(a, w2_ref, b2_ref) + x_ref[0].astype(f32)
    o_ref[0] = y.astype(o_ref.dtype)


def _pad_masks(H, W):
    """Validity masks for the 8 non-center taps, flat over one image (H*W)."""
    hh = np.arange(H * W) // W
    ww = np.arange(H * W) % W
    ms = []
    for dy in (-1, 0, 1):
        for dx in (-1, 0, 1):
            if dy == 0 and dx == 0:
                continue
            valid = ((hh + dy >= 0) & (hh + dy < H) &
                     (ww + dx >= 0) & (ww + dx < W))
            ms.append(valid.astype(np.float32))
    return jnp.asarray(np.stack(ms, axis=0))              # (8, H*W)


def _stack_weight(w):
    """(C_out, C_in, 3, 3) OIHW -> (C_out, 9*C_in); column block k=ky*3+kx is
    w[:, :, ky, kx], matching the tap order used in the kernel."""
    c_out, c_in = w.shape[0], w.shape[1]
    return jnp.transpose(w, (0, 2, 3, 1)).reshape(c_out, 9 * c_in)


def residual_block(x, w1, b1, w2, b2):
    """Pallas equivalent of ResidualBlock.forward.

    x: (N, C, H, W); w1, w2: (C, C, 3, 3) OIHW; b1, b2: (C,)
    """
    N, C, H, W = x.shape
    HW = H * W
    # Keep stores lane-dense and bf16 sublane tiles aligned at this shape.
    assert HW % 128 == 0 and C % 16 == 0
    # TODO(synk): for shapes where H*W is not a multiple of 128 (or images too
    # large for one VMEM block), fall back to a batch-folded / row-tiled layout
    # with halos; not needed at this spec's shapes.

    x_ncl = x.reshape(N, C, HW)                           # free reshape, no transpose
    masks = _pad_masks(H, W)
    w1s = _stack_weight(w1).astype(jnp.bfloat16)
    w2s = _stack_weight(w2).astype(jnp.bfloat16)
    b1c = b1.reshape(C, 1).astype(jnp.float32)
    b2c = b2.reshape(C, 1).astype(jnp.float32)

    flops = 2 * 2 * 9 * C * C * N * HW                    # two convs, K=9C each
    bytes_accessed = (4 * 2 * C * N * HW                  # x in + out (f32)
                      + 2 * 2 * 9 * C * C                 # two bf16 weight stacks
                      + 4 * 8 * HW + 4 * 2 * C)           # masks + biases

    kernel = functools.partial(_resblock_kernel, W=W)
    out = pl.pallas_call(
        kernel,
        out_shape=jax.ShapeDtypeStruct((N, C, HW), x.dtype),
        grid_spec=pltpu.PrefetchScalarGridSpec(
            num_scalar_prefetch=0,
            grid=(N,),                                    # one image per grid step
            in_specs=[
                pl.BlockSpec((1, C, HW), lambda b: (b, 0, 0)),
                pl.BlockSpec((8, HW), lambda b: (0, 0)),        # masks (resident)
                pl.BlockSpec((C, 9 * C), lambda b: (0, 0)),     # w1 stacked
                pl.BlockSpec((C, 1), lambda b: (0, 0)),         # b1
                pl.BlockSpec((C, 9 * C), lambda b: (0, 0)),     # w2 stacked
                pl.BlockSpec((C, 1), lambda b: (0, 0)),         # b2
            ],
            out_specs=pl.BlockSpec((1, C, HW), lambda b: (b, 0, 0)),
        ),
        compiler_params=pltpu.CompilerParams(
            dimension_semantics=("parallel",)),           # both TCs on v7x
        cost_estimate=pl.CostEstimate(flops=flops, transcendentals=0,
                                      bytes_accessed=bytes_accessed),
    )(x_ncl, masks, w1s, b1c, w2s, b2c)

    return out.reshape(N, C, H, W)


def residual_block_reference(x, w1, b1, w2, b2):
    """Pure-JAX reference (XLA convs at highest precision)."""
    dn = lax.conv_dimension_numbers(x.shape, w1.shape, ("NCHW", "OIHW", "NCHW"))
    y = lax.conv_general_dilated(x, w1, (1, 1), "SAME", dimension_numbers=dn,
                                 precision=lax.Precision.HIGHEST)
    y = y + b1[None, :, None, None]
    y = jnp.maximum(y, 0.0)
    y = lax.conv_general_dilated(y, w2, (1, 1), "SAME", dimension_numbers=dn,
                                 precision=lax.Precision.HIGHEST)
    y = y + b2[None, :, None, None]
    return y + x


if __name__ == "__main__":
    key = jax.random.PRNGKey(0)
    k1, k2, k3, k4, k5 = jax.random.split(key, 5)

    # ResidualBlock(nf=64) on a small 16x16 image, batch 2.
    N, C, H, W = 2, 64, 16, 16
    x = jax.random.normal(k1, (N, C, H, W), dtype=jnp.float32)
    std = 1.0 / np.sqrt(9 * C)
    w1 = std * jax.random.normal(k2, (C, C, 3, 3), dtype=jnp.float32)
    b1 = 0.1 * jax.random.normal(k3, (C,), dtype=jnp.float32)
    w2 = std * jax.random.normal(k4, (C, C, 3, 3), dtype=jnp.float32)
    b2 = 0.1 * jax.random.normal(k5, (C,), dtype=jnp.float32)

    out = residual_block(x, w1, b1, w2, b2)
    out = jax.block_until_ready(out)

    ref = residual_block_reference(x, w1, b1, w2, b2)
    # bf16 matmul operands with f32 accumulation: max abs error empirically
    # ~1e-2 at these shapes, so validate against the f32 reference at 3e-2.
    np.testing.assert_allclose(np.asarray(out), np.asarray(ref),
                               rtol=3e-2, atol=3e-2)
    print("KERNEL_OK")
</pallas_src>

<mosaic_0001>
module attributes {stable_mosaic.version = 11 : i64} {
  func.func @_resblock_kernel(%arg0: i32, %arg1: memref<1x64x256xf32, #tpu.memory_space<vmem>>, %arg2: memref<8x256xf32, #tpu.memory_space<vmem>>, %arg3: memref<64x576xbf16, #tpu.memory_space<vmem>>, %arg4: memref<64x1xf32, #tpu.memory_space<vmem>>, %arg5: memref<64x576xbf16, #tpu.memory_space<vmem>>, %arg6: memref<64x1xf32, #tpu.memory_space<vmem>>, %arg7: memref<1x64x256xf32, #tpu.memory_space<vmem>>) attributes {dimension_semantics = [#tpu.dimension_semantics<parallel>], iteration_bounds = array<i64: 2>, scalar_prefetch = 0 : i64, scratch_operands = 0 : i64, tpu.core_type = #tpu.core_type<tc>, window_params = [{transform_indices = @transform_0, window_bounds = array<i64: 1, 64, 256>}, {pipeline_mode = #tpu.pipeline_mode<synchronous>, transform_indices = @transform_1, window_bounds = array<i64: 8, 256>}, {pipeline_mode = #tpu.pipeline_mode<synchronous>, transform_indices = @transform_2, window_bounds = array<i64: 64, 576>}, {pipeline_mode = #tpu.pipeline_mode<synchronous>, transform_indices = @transform_3, window_bounds = array<i64: 64, 1>}, {pipeline_mode = #tpu.pipeline_mode<synchronous>, transform_indices = @transform_4, window_bounds = array<i64: 64, 576>}, {pipeline_mode = #tpu.pipeline_mode<synchronous>, transform_indices = @transform_5, window_bounds = array<i64: 64, 1>}, {transform_indices = @transform_6, window_bounds = array<i64: 1, 64, 256>}]} {
    %c0 = arith.constant 0 : index
    %c0_0 = arith.constant 0 : index
    %0 = vector.load %arg2[%c0, %c0_0] : memref<8x256xf32, #tpu.memory_space<vmem>>, vector<8x256xf32>
    %c0_1 = arith.constant 0 : index
    %c0_2 = arith.constant 0 : index
    %c0_3 = arith.constant 0 : index
    %1 = vector.load %arg1[%c0_1, %c0_2, %c0_3] : memref<1x64x256xf32, #tpu.memory_space<vmem>>, vector<1x64x256xf32>
    %2 = vector.shape_cast %1 : vector<1x64x256xf32> to vector<64x256xf32>
    %c17_i32 = arith.constant 17 : i32
    %3 = tpu.dynamic_rotate %2 by %c17_i32 dim 1 : vector<64x256xf32>, i32 -> vector<64x256xf32>
    %4 = vector.extract_strided_slice %0 {offsets = [0, 0], sizes = [1, 256], strides = [1, 1]} : vector<8x256xf32> to vector<1x256xf32>
    %5 = vector.broadcast %4 : vector<1x256xf32> to vector<64x256xf32>
    %6 = arith.mulf %3, %5 : vector<64x256xf32>
    %7 = arith.truncf %6 : vector<64x256xf32> to vector<64x256xbf16>
    %c16_i32 = arith.constant 16 : i32
    %8 = tpu.dynamic_rotate %2 by %c16_i32 dim 1 : vector<64x256xf32>, i32 -> vector<64x256xf32>
    %9 = vector.extract_strided_slice %0 {offsets = [1, 0], sizes = [1, 256], strides = [1, 1]} : vector<8x256xf32> to vector<1x256xf32>
    %10 = vector.broadcast %9 : vector<1x256xf32> to vector<64x256xf32>
    %11 = arith.mulf %8, %10 : vector<64x256xf32>
    %12 = arith.truncf %11 : vector<64x256xf32> to vector<64x256xbf16>
    %c15_i32 = arith.constant 15 : i32
    %13 = tpu.dynamic_rotate %2 by %c15_i32 dim 1 : vector<64x256xf32>, i32 -> vector<64x256xf32>
    %14 = vector.extract_strided_slice %0 {offsets = [2, 0], sizes = [1, 256], strides = [1, 1]} : vector<8x256xf32> to vector<1x256xf32>
    %15 = vector.broadcast %14 : vector<1x256xf32> to vector<64x256xf32>
    %16 = arith.mulf %13, %15 : vector<64x256xf32>
    %17 = arith.truncf %16 : vector<64x256xf32> to vector<64x256xbf16>
    %c1_i32 = arith.constant 1 : i32
    %18 = tpu.dynamic_rotate %2 by %c1_i32 dim 1 : vector<64x256xf32>, i32 -> vector<64x256xf32>
    %19 = vector.extract_strided_slice %0 {offsets = [3, 0], sizes = [1, 256], strides = [1, 1]} : vector<8x256xf32> to vector<1x256xf32>
    %20 = vector.broadcast %19 : vector<1x256xf32> to vector<64x256xf32>
    %21 = arith.mulf %18, %20 : vector<64x256xf32>
    %22 = arith.truncf %21 : vector<64x256xf32> to vector<64x256xbf16>
    %23 = arith.truncf %2 : vector<64x256xf32> to vector<64x256xbf16>
    %c255_i32 = arith.constant 255 : i32
    %24 = tpu.dynamic_rotate %2 by %c255_i32 dim 1 : vector<64x256xf32>, i32 -> vector<64x256xf32>
    %25 = vector.extract_strided_slice %0 {offsets = [4, 0], sizes = [1, 256], strides = [1, 1]} : vector<8x256xf32> to vector<1x256xf32>
    %26 = vector.broadcast %25 : vector<1x256xf32> to vector<64x256xf32>
    %27 = arith.mulf %24, %26 : vector<64x256xf32>
    %28 = arith.truncf %27 : vector<64x256xf32> to vector<64x256xbf16>
    %c241_i32 = arith.constant 241 : i32
    %29 = tpu.dynamic_rotate %2 by %c241_i32 dim 1 : vector<64x256xf32>, i32 -> vector<64x256xf32>
    %30 = vector.extract_strided_slice %0 {offsets = [5, 0], sizes = [1, 256], strides = [1, 1]} : vector<8x256xf32> to vector<1x256xf32>
    %31 = vector.broadcast %30 : vector<1x256xf32> to vector<64x256xf32>
    %32 = arith.mulf %29, %31 : vector<64x256xf32>
    %33 = arith.truncf %32 : vector<64x256xf32> to vector<64x256xbf16>
    %c240_i32 = arith.constant 240 : i32
    %34 = tpu.dynamic_rotate %2 by %c240_i32 dim 1 : vector<64x256xf32>, i32 -> vector<64x256xf32>
    %35 = vector.extract_strided_slice %0 {offsets = [6, 0], sizes = [1, 256], strides = [1, 1]} : vector<8x256xf32> to vector<1x256xf32>
    %36 = vector.broadcast %35 : vector<1x256xf32> to vector<64x256xf32>
    %37 = arith.mulf %34, %36 : vector<64x256xf32>
    %38 = arith.truncf %37 : vector<64x256xf32> to vector<64x256xbf16>
    %c239_i32 = arith.constant 239 : i32
    %39 = tpu.dynamic_rotate %2 by %c239_i32 dim 1 : vector<64x256xf32>, i32 -> vector<64x256xf32>
    %40 = vector.extract_strided_slice %0 {offsets = [7, 0], sizes = [1, 256], strides = [1, 1]} : vector<8x256xf32> to vector<1x256xf32>
    %41 = vector.broadcast %40 : vector<1x256xf32> to vector<64x256xf32>
    %42 = arith.mulf %39, %41 : vector<64x256xf32>
    %43 = arith.truncf %42 : vector<64x256xf32> to vector<64x256xbf16>
    %44 = tpu.concatenate %7, %12, %17, %22, %23, %28, %33, %38, %43 in 0 : vector<64x256xbf16>, vector<64x256xbf16>, vector<64x256xbf16>, vector<64x256xbf16>, vector<64x256xbf16>, vector<64x256xbf16>, vector<64x256xbf16>, vector<64x256xbf16>, vector<64x256xbf16> -> vector<576x256xbf16>
    %c0_4 = arith.constant 0 : index
    %c0_5 = arith.constant 0 : index
    %45 = vector.load %arg3[%c0_4, %c0_5] : memref<64x576xbf16, #tpu.memory_space<vmem>>, vector<64x576xbf16>
    %cst = arith.constant dense<0.000000e+00> : vector<64x256xf32>
    %46 = tpu.matmul %45, %44, %cst {dimension_numbers = #tpu.dot_dimension_numbers<[1], [0], [0], [1], [0, 0, 1, 1], [], []>} : vector<64x576xbf16>, vector<576x256xbf16>, vector<64x256xf32> -> vector<64x256xf32>
    %c0_6 = arith.constant 0 : index
    %c0_7 = arith.constant 0 : index
    %47 = vector.load %arg4[%c0_6, %c0_7] : memref<64x1xf32, #tpu.memory_space<vmem>>, vector<64x1xf32>
    %48 = vector.broadcast %47 : vector<64x1xf32> to vector<64x256xf32>
    %49 = arith.addf %46, %48 : vector<64x256xf32>
    %cst_8 = arith.constant 0.000000e+00 : f32
    %50 = vector.broadcast %cst_8 : f32 to vector<64x256xf32>
    %51 = arith.maximumf %49, %50 : vector<64x256xf32>
    %c17_i32_9 = arith.constant 17 : i32
    %52 = tpu.dynamic_rotate %51 by %c17_i32_9 dim 1 : vector<64x256xf32>, i32 -> vector<64x256xf32>
    %53 = vector.extract_strided_slice %0 {offsets = [0, 0], sizes = [1, 256], strides = [1, 1]} : vector<8x256xf32> to vector<1x256xf32>
    %54 = vector.broadcast %53 : vector<1x256xf32> to vector<64x256xf32>
    %55 = arith.mulf %52, %54 : vector<64x256xf32>
    %56 = arith.truncf %55 : vector<64x256xf32> to vector<64x256xbf16>
    %c16_i32_10 = arith.constant 16 : i32
    %57 = tpu.dynamic_rotate %51 by %c16_i32_10 dim 1 : vector<64x256xf32>, i32 -> vector<64x256xf32>
    %58 = vector.extract_strided_slice %0 {offsets = [1, 0], sizes = [1, 256], strides = [1, 1]} : vector<8x256xf32> to vector<1x256xf32>
    %59 = vector.broadcast %58 : vector<1x256xf32> to vector<64x256xf32>
    %60 = arith.mulf %57, %59 : vector<64x256xf32>
    %61 = arith.truncf %60 : vector<64x256xf32> to vector<64x256xbf16>
    %c15_i32_11 = arith.constant 15 : i32
    %62 = tpu.dynamic_rotate %51 by %c15_i32_11 dim 1 : vector<64x256xf32>, i32 -> vector<64x256xf32>
    %63 = vector.extract_strided_slice %0 {offsets = [2, 0], sizes = [1, 256], strides = [1, 1]} : vector<8x256xf32> to vector<1x256xf32>
    %64 = vector.broadcast %63 : vector<1x256xf32> to vector<64x256xf32>
    %65 = arith.mulf %62, %64 : vector<64x256xf32>
    %66 = arith.truncf %65 : vector<64x256xf32> to vector<64x256xbf16>
    %c1_i32_12 = arith.constant 1 : i32
    %67 = tpu.dynamic_rotate %51 by %c1_i32_12 dim 1 : vector<64x256xf32>, i32 -> vector<64x256xf32>
    %68 = vector.extract_strided_slice %0 {offsets = [3, 0], sizes = [1, 256], strides = [1, 1]} : vector<8x256xf32> to vector<1x256xf32>
    %69 = vector.broadcast %68 : vector<1x256xf32> to vector<64x256xf32>
    %70 = arith.mulf %67, %69 : vector<64x256xf32>
    %71 = arith.truncf %70 : vector<64x256xf32> to vector<64x256xbf16>
    %72 = arith.truncf %51 : vector<64x256xf32> to vector<64x256xbf16>
    %c255_i32_13 = arith.constant 255 : i32
    %73 = tpu.dynamic_rotate %51 by %c255_i32_13 dim 1 : vector<64x256xf32>, i32 -> vector<64x256xf32>
    %74 = vector.extract_strided_slice %0 {offsets = [4, 0], sizes = [1, 256], strides = [1, 1]} : vector<8x256xf32> to vector<1x256xf32>
    %75 = vector.broadcast %74 : vector<1x256xf32> to vector<64x256xf32>
    %76 = arith.mulf %73, %75 : vector<64x256xf32>
    %77 = arith.truncf %76 : vector<64x256xf32> to vector<64x256xbf16>
    %c241_i32_14 = arith.constant 241 : i32
    %78 = tpu.dynamic_rotate %51 by %c241_i32_14 dim 1 : vector<64x256xf32>, i32 -> vector<64x256xf32>
    %79 = vector.extract_strided_slice %0 {offsets = [5, 0], sizes = [1, 256], strides = [1, 1]} : vector<8x256xf32> to vector<1x256xf32>
    %80 = vector.broadcast %79 : vector<1x256xf32> to vector<64x256xf32>
    %81 = arith.mulf %78, %80 : vector<64x256xf32>
    %82 = arith.truncf %81 : vector<64x256xf32> to vector<64x256xbf16>
    %c240_i32_15 = arith.constant 240 : i32
    %83 = tpu.dynamic_rotate %51 by %c240_i32_15 dim 1 : vector<64x256xf32>, i32 -> vector<64x256xf32>
    %84 = vector.extract_strided_slice %0 {offsets = [6, 0], sizes = [1, 256], strides = [1, 1]} : vector<8x256xf32> to vector<1x256xf32>
    %85 = vector.broadcast %84 : vector<1x256xf32> to vector<64x256xf32>
    %86 = arith.mulf %83, %85 : vector<64x256xf32>
    %87 = arith.truncf %86 : vector<64x256xf32> to vector<64x256xbf16>
    %c239_i32_16 = arith.constant 239 : i32
    %88 = tpu.dynamic_rotate %51 by %c239_i32_16 dim 1 : vector<64x256xf32>, i32 -> vector<64x256xf32>
    %89 = vector.extract_strided_slice %0 {offsets = [7, 0], sizes = [1, 256], strides = [1, 1]} : vector<8x256xf32> to vector<1x256xf32>
    %90 = vector.broadcast %89 : vector<1x256xf32> to vector<64x256xf32>
    %91 = arith.mulf %88, %90 : vector<64x256xf32>
    %92 = arith.truncf %91 : vector<64x256xf32> to vector<64x256xbf16>
    %93 = tpu.concatenate %56, %61, %66, %71, %72, %77, %82, %87, %92 in 0 : vector<64x256xbf16>, vector<64x256xbf16>, vector<64x256xbf16>, vector<64x256xbf16>, vector<64x256xbf16>, vector<64x256xbf16>, vector<64x256xbf16>, vector<64x256xbf16>, vector<64x256xbf16> -> vector<576x256xbf16>
    %c0_17 = arith.constant 0 : index
    %c0_18 = arith.constant 0 : index
    %94 = vector.load %arg5[%c0_17, %c0_18] : memref<64x576xbf16, #tpu.memory_space<vmem>>, vector<64x576xbf16>
    %cst_19 = arith.constant dense<0.000000e+00> : vector<64x256xf32>
    %95 = tpu.matmul %94, %93, %cst_19 {dimension_numbers = #tpu.dot_dimension_numbers<[1], [0], [0], [1], [0, 0, 1, 1], [], []>} : vector<64x576xbf16>, vector<576x256xbf16>, vector<64x256xf32> -> vector<64x256xf32>
    %c0_20 = arith.constant 0 : index
    %c0_21 = arith.constant 0 : index
    %96 = vector.load %arg6[%c0_20, %c0_21] : memref<64x1xf32, #tpu.memory_space<vmem>>, vector<64x1xf32>
    %97 = vector.broadcast %96 : vector<64x1xf32> to vector<64x256xf32>
    %98 = arith.addf %95, %97 : vector<64x256xf32>
    %c0_22 = arith.constant 0 : index
    %c0_23 = arith.constant 0 : index
    %c0_24 = arith.constant 0 : index
    %99 = vector.load %arg1[%c0_22, %c0_23, %c0_24] : memref<1x64x256xf32, #tpu.memory_space<vmem>>, vector<1x64x256xf32>
    %100 = vector.shape_cast %99 : vector<1x64x256xf32> to vector<64x256xf32>
    %101 = arith.addf %98, %100 : vector<64x256xf32>
    %c0_25 = arith.constant 0 : index
    %c0_26 = arith.constant 0 : index
    %c0_27 = arith.constant 0 : index
    %102 = vector.load %arg7[%c0_25, %c0_26, %c0_27] : memref<1x64x256xf32, #tpu.memory_space<vmem>>, vector<1x64x256xf32>
    %103 = vector.shape_cast %102 : vector<1x64x256xf32> to vector<64x256xf32>
    %104 = vector.shape_cast %101 : vector<64x256xf32> to vector<1x64x256xf32>
    tpu.vector_store %arg7[%c0_25, %c0_26, %c0_27], %104 {strides = array<i32>} : memref<1x64x256xf32, #tpu.memory_space<vmem>>, vector<1x64x256xf32>,
    return
  }
  func.func @transform_0(%arg0: i32) -> (i32, i32, i32) {
    %c0_i32 = arith.constant 0 : i32
    %c0_i32_0 = arith.constant 0 : i32
    %c0_i32_1 = arith.constant 0 : i32
    return %arg0, %c0_i32, %c0_i32_0 : i32, i32, i32
  }
  func.func @transform_1(%arg0: i32) -> (i32, i32) {
    %c0_i32 = arith.constant 0 : i32
    %c0_i32_0 = arith.constant 0 : i32
    %c0_i32_1 = arith.constant 0 : i32
    return %c0_i32, %c0_i32_0 : i32, i32
  }
  func.func @transform_2(%arg0: i32) -> (i32, i32) {
    %c0_i32 = arith.constant 0 : i32
    %c0_i32_0 = arith.constant 0 : i32
    %c0_i32_1 = arith.constant 0 : i32
    return %c0_i32, %c0_i32_0 : i32, i32
  }
  func.func @transform_3(%arg0: i32) -> (i32, i32) {
    %c0_i32 = arith.constant 0 : i32
    %c0_i32_0 = arith.constant 0 : i32
    %c0_i32_1 = arith.constant 0 : i32
    return %c0_i32, %c0_i32_0 : i32, i32
  }
  func.func @transform_4(%arg0: i32) -> (i32, i32) {
    %c0_i32 = arith.constant 0 : i32
    %c0_i32_0 = arith.constant 0 : i32
    %c0_i32_1 = arith.constant 0 : i32
    return %c0_i32, %c0_i32_0 : i32, i32
  }
  func.func @transform_5(%arg0: i32) -> (i32, i32) {
    %c0_i32 = arith.constant 0 : i32
    %c0_i32_0 = arith.constant 0 : i32
    %c0_i32_1 = arith.constant 0 : i32
    return %c0_i32, %c0_i32_0 : i32, i32
  }
  func.func @transform_6(%arg0: i32) -> (i32, i32, i32) {
    %c0_i32 = arith.constant 0 : i32
    %c0_i32_0 = arith.constant 0 : i32
    %c0_i32_1 = arith.constant 0 : i32
    return %arg0, %c0_i32, %c0_i32_0 : i32, i32, i32
  }
}

</mosaic_0001>

<bundles_post_ra>
// kernel: tpu_custom_call.1
= control target key start
LH: loop header
LB: loop body
LE: loop exit
PB: predicated region body
PF: predicated region fallthrough
CT: control target
= control target key end

     0   :  { %11 = vsyncpa [#allocation3], 0  ;;  %s5179_s0 = inlined_call_operand.hbm [shape: f32[2,64,256], index: 0, kind: input, shape index: {}]   ;;  %s5180_s1 = inlined_call_operand.vmem [shape: f32[8,256], index: 1, kind: input, shape index: {}]   ;;  %s5181_s2 = inlined_call_operand.hbm [shape: bf16[64,576], index: 2, kind: input, shape index: {}]   ;;  %s5182_s3 = inlined_call_operand.vmem [shape: f32[64,1], index: 3, kind: input, shape index: {}]   ;;  %s5183_s4 = inlined_call_operand.hbm [shape: bf16[64,576], index: 4, kind: input, shape index: {}]   ;;  %s5184_s5 = inlined_call_operand.vmem [shape: f32[64,1], index: 5, kind: input, shape index: {}]   ;;  %s5185_s6 = inlined_call_operand.hbm [shape: f32[2,64,256], index: 6, kind: output, shape index: {}]  }
   0x1   :  { %13 = vsyncpa [#allocation3 + $0x1], 0 }
   0x2   :  { %14 = vsyncpa [#allocation6], 0 }
   0x3   :  { %15 = vsyncpa [#allocation4], 0 }
   0x4   :  { %17 = vsyncpa [#allocation4 + $0x1], 0  ;;  %s3053_s21 = smov 0   ;;  %s3055_s22 = smov 0  }
   0x5   :  { %s3057_s23 = smov 0   ;;  %s3059_s24 = smov 0  }
   0x6 LB: > { %s3074_s25 = sadd.s32 4294967295, %s2998_s24   ;;  %s2521_s26 = sadd.s32 4294967294, %s2998_s24   ;;  %s2998_s24 = sphi %s3059_s24, %s5294_s24   ;;  %s2994_s23 = sphi %s3057_s23, %s5293_s23   ;;  %s2990_s22 = sphi %s3055_s22, %s5292_s22   ;;  %s2986_s21 = sphi %s3053_s21, %s5291_s21  }
   0x7   : > { %p43_p0 = scmp.ne.s32.totalorder %s2990_s22, %s2986_s21  ;;  %p5186_p1 = scmp.eq.s32.totalorder %s3074_s25, 0 }
   0x8   : > { %p178_p3 = scmp.eq.s32.totalorder %s2521_s26, 1  ;;  %p2522_p5 = scmp.ge.s32.totalorder %s2998_s24, 1 }
   0x9   : > { %p3083_p4 = por %p5186_p1, %p43_p0  ;;  %p185_p7 = scmp.lt.s32.totalorder %s2998_s24, 3 }
   0xa   : > { %p3088_p6 = por %p178_p3, %p43_p0  ;;  %s3000_s30 = smov [#allocation5]  }
   0xb   : > { %s5227_s27 = scalar_select %p3083_p4, 1, 0 }
   0xc   : > { %s5228_s28 = scalar_select %p3088_p6, 1, 0 }
   0xd   : > { %p3093_p8 = pnand %p2522_p5, %p185_p7  ;;  %s200_s7 = sshll.u32 %s3000_s30, 4  ;;  %s3097_s7 = int_to_ptr.vmem [resolvable:$true] %s200_s7 }
   0xe   : > { %s3001_s9 = smov [#allocation7]   ;;  %s2842_s13 = scalar_lea.hbm %s5181_s2, 2560 }
   0xf   : > { %p2697_p9 = pneg %p3093_p8  ;;  %s216_s10 = sshll.u32 %s3001_s9, 4  ;;  %s3108_s10 = int_to_ptr.vmem [resolvable:$true] %s216_s10 }
  0x10   : > { %p2843_p12 = scmp.ne.s32.totalorder %s5181_s2, %s2842_s13  ;;  %p2849_p5 = scmp.lt.u32.totalorder %s2842_s13, %s5181_s2 }
  0x11   : > { %p3104_p11 = pnand %p2697_p9, %p5186_p1 }
  0x13   : > { %p2844_p13 = pneg %p3104_p11 }
  0x15   : > { %p2845_p0 = pnand %p2844_p13, %p2843_p12 }
  0x17   : > { %p2846_p3 = pneg %p2845_p0 }
  0x19   : > { %p2851_p7 = pnand %p2849_p5, %p2846_p3 }
  0x1b   : > { %2854 = shalt.err (!%p2851_p7)
}
  0x1c   : > { %s2855_s18 = scalar_lea.vmem %s3097_s7, 2560  ;;  %p2863_p2 = scmp.lt.s32.totalorder %s3097_s7, %s3097_s7 }
  0x1d   : > { %p2856_p9 = scmp.ne.s32.totalorder %s3097_s7, %s2855_s18  ;;  %p2864_p12 = scmp.lt.s32.totalorder %s2855_s18, %s2855_s18 }
  0x1f   : > { %p2858_p10 = pnand %p2856_p9, %p2844_p13  ;;  %p2865_p0 = por %p2864_p12, %p2863_p2 }
  0x21   : > { %p2859_p1 = pneg %p2858_p10 }
  0x23   : > { %p2866_p6 = pnand %p2865_p0, %p2859_p1 }
  0x25   : > { %2869 = shalt.err (!%p2866_p6)
}
  0x26   : > { %s3002_s19 = smov 320   ;;  %s3003_s20 = smov 20  }
  0x27   : > { %2700 = dma.hbm_to_vmem [thread:$0]  (!%p3104_p11), %s5181_s2, 2560, %s3097_s7, [#allocation6], %s3002_s19, %s3002_s19, %s3003_s20  }
  0x28   : > { %s2870_s12 = scalar_lea.hbm %s5183_s4, 2560 }
  0x29   : > { %p2871_p2 = scmp.ne.s32.totalorder %s5183_s4, %s2870_s12  ;;  %p2877_p10 = scmp.lt.u32.totalorder %s2870_s12, %s5183_s4 }
  0x2b   : > { %p2873_p1 = pnand %p2871_p2, %p2844_p13 }
  0x2d   : > { %p2874_p6 = pneg %p2873_p1 }
  0x2f   : > { %p2879_p3 = pnand %p2877_p10, %p2874_p6 }
  0x31   : > { %2882 = shalt.err (!%p2879_p3)
}
  0x32   : > { %s2883_s7 = scalar_lea.vmem %s3108_s10, 2560  ;;  %p2891_p12 = scmp.lt.s32.totalorder %s3108_s10, %s3108_s10 }
  0x33   : > { %p2884_p5 = scmp.ne.s32.totalorder %s3108_s10, %s2883_s7  ;;  %p2892_p0 = scmp.lt.s32.totalorder %s2883_s7, %s2883_s7 }
  0x35   : > { %p2886_p7 = pnand %p2884_p5, %p2844_p13  ;;  %p2893_p2 = por %p2892_p0, %p2891_p12 }
  0x37   : > { %p2887_p9 = pneg %p2886_p7 }
  0x39   : > { %p2894_p1 = pnand %p2893_p2, %p2887_p9 }
  0x3b   : > { %2897 = shalt.err (!%p2894_p1)
}
  0x3c   : > { %2703 = dma.hbm_to_vmem [thread:$0]  (!%p3104_p11), %s5183_s4, 2560, %s3108_s10, [#allocation6], %s3002_s19, %s3002_s19, %s3003_s20  }
  0x3d   : > { %s3163_s26 = sadd.s32 1, %s2998_s24   ;;  %s30_s8 = sadd.s32 1, %s2994_s23 }
  0x3e   : > { %s27_s30 = ssub.s32 %s2998_s24, %s3163_s26  ;;  %p37_p13 = scmp.ne.s32.totalorder %s2994_s23, %s2990_s22 }
  0x3f   : > { %p28_p6 = scmp.eq.s32.totalorder %s27_s30, 0  ;;  %p38_p10 = scmp.eq.s32.totalorder %s2998_s24, 0 }
  0x40   : > { %p5231_p3 = scmp.eq.s32.totalorder %s3074_s25, 1  ;;  %p2714_p7 = scmp.lt.s32.totalorder %s2998_s24, 2 }
  0x41   : > { %s3179_s11 = scalar_select %p28_p6, %s2994_s23, %s30_s8  }
  0x42   : > { %p3173_p5 = por %p5231_p3, %p37_p13  ;;  %p39_p9 = por %p38_p10, %p37_p13 }
  0x43   : > { %s233_s12 = sand.u32 1, %s2994_s23   ;;  %s2587_s10 = sshll.u32 %s2998_s24, 11 }
  0x44   : > { %s5232_s9 = scalar_select %p3173_p5, 1, 0 }
  0x45   : > { %s2526_s13 = sshll.u32 %s233_s12, 7  ;;  %s3186_s14 = scalar_lea.hbm %s5179_s0, %s2587_s10 }
  0x46   : > { %s237_s15 = scalar_lea.vmem [#allocation2], %s2526_s13  ;;  %p3190_p11 = pnand %p2714_p7, %p39_p9 }
  0x47   : > { %s244_s16 = sshll.u32 %s237_s15, 4  ;;  %s3194_s17 = scalar_lea.sflag [#allocation3], %s233_s12  ;;  %s3188_s16 = int_to_ptr.vmem [resolvable:$true] %s244_s16 }
  0x48   : > { %s2898_s18 = scalar_lea.hbm %s3186_s14, 2048  ;;  %p2900_p0 = pneg %p3190_p11 }
  0x49   : > { %p2899_p12 = scmp.ne.s32.totalorder %s3186_s14, %s2898_s18  ;;  %s2903_s13 = scalar_lea.hbm %s5179_s0, 4096 }
  0x4a   : > { %p2904_p13 = scmp.lt.u32.totalorder %s3186_s14, %s5179_s0  ;;  %p2905_p6 = scmp.lt.u32.totalorder %s2903_s13, %s2898_s18 }
  0x4b   : > { %p2901_p2 = pnand %p2900_p0, %p2899_p12  ;;  %p2907_p3 = scmp.lt.u32.totalorder %s2898_s18, %s3186_s14 }
  0x4c   : > { %p2906_p10 = por %p2905_p6, %p2904_p13 }
  0x4d   : > { %p2902_p1 = pneg %p2901_p2 }
  0x4e   : > { %p2908_p7 = por %p2907_p3, %p2906_p10 }
  0x50   : > { %p2909_p9 = pnand %p2908_p7, %p2902_p1 }
  0x52   : > { %2912 = shalt.err (!%p2909_p9)
}
  0x53   : > { %s2913_s12 = scalar_lea.vmem %s3188_s16, 2048  ;;  %s3004_s20 = smov [#allocation2]  }
  0x54   : > { %p2914_p12 = scmp.ne.s32.totalorder %s3188_s16, %s2913_s12  ;;  %s2918_s15 = sshll.u32 %s3004_s20, 4  ;;  %s2919_s15 = int_to_ptr.vmem [resolvable:$false] %s2918_s15 }
  0x55   : > { %s2920_s8 = scalar_lea.vmem %s2919_s15, 4096  ;;  %p2921_p4 = scmp.lt.s32.totalorder %s3188_s16, %s2919_s15 }
  0x56   : > { %p2916_p2 = pnand %p2914_p12, %p2900_p0  ;;  %p2922_p13 = scmp.lt.s32.totalorder %s2920_s8, %s2913_s12 }
  0x58   : > { %p2917_p5 = pneg %p2916_p2  ;;  %p2923_p6 = por %p2922_p13, %p2921_p4 }
  0x5a   : > { %p2924_p10 = pnand %p2923_p6, %p2917_p5 }
  0x5c   : > { %2927 = shalt.err (!%p2924_p10)
}
  0x5d   : > { %s3005_s18 = smov 256   ;;  %s3006_s30 = smov 16  }
  0x5e   : > { %2707 = dma.hbm_to_vmem [thread:$0]  (!%p3190_p11), %s3186_s14, 2048, %s3188_s16, %s3194_s17, %s3005_s18, %s3005_s18, %s3006_s30  }
  0x5f   : > { %256 = sbr.rel (%p3093_p8) target bundleno = 1339 (0x53b), region = 44 }
  0x66   : > { %s3225_s13 = sand.u32 1, %s2990_s22   ;;  %p5234_p4 = scmp.ne.s32.totalorder %s5227_s27, 0 }
  0x67   : > { %s5189_s10 = sshll.u32 %s3225_s13, 7  ;;  %s259_s19 = scalar_lea.sflag [#allocation3], %s3225_s13 }
  0x68   : > { %s3231_s12 = scalar_lea.vmem [#allocation2], %s5189_s10 }
  0x69   : > { %2973 = dma.done.wait (%p5234_p4), %s259_s19, 2048  }
  0x6a   : > { %2975 = vsyncadd (%p5234_p4), %s259_s19, 4294965248  ;;  %p5235_p5 = scmp.eq.s32.totalorder %s3074_s25, 0 }
  0x6c   : > { %2977 = dma.done.wait (%p5235_p5), [#allocation6], 5120   ;;  %p5236_p8 = pmov %p5235_p5 }
  0x6d   : > { %v3242_v0 = vld [vmem:[%s3231_s12 + $0x8] sm:$0xff]  ;;  %v3245_v1 = vld [vmem:[%s3231_s12] sm:$0xff]  ;;  %s3007_s27 = smov 17   ;;  %v3252_v2 = vld [vmem:[%s3231_s12 + $0x18] sm:$0xff]  ;;  %s3008_s29 = smov 16   ;;  %v350_v16 = vlaneseq  ;;  %vm1148_vm8 = vcmask 523264  }
  0x6e   : > { %2979 = vsyncadd (%p5236_p8), [#allocation6], 4294962176  ;;  %334 = vrot.lane.b32.xlu1 %v3242_v0, %s3007_s27  ;;  %318 = vrot.lane.b32.xlu0 %v3245_v1, %s3007_s27  ;;  %v3255_v3 = vld [vmem:[%s3231_s12 + $0x10] sm:$0xff]  ;;  %v3265_v5 = vld [vmem:[%s3231_s12 + $0x20] sm:$0xff]  ;;  %s3009_s14 = smov 15   ;;  %s3010_s16 = smov 1  }
  0x6f   : > { %v3262_v4 = vld [vmem:[%s3231_s12 + $0x30] sm:$0xff]  ;;  %v3268_v6 = vld [vmem:[%s3231_s12 + $0x38] sm:$0xff]  ;;  %v3271_v7 = vld [vmem:[%s3231_s12 + $0x28] sm:$0xff]  ;;  %v3397_v17 = vshrl.u32 %v350_v16, 7  ;;  %v3403_v18 = vand.u32 127, %v350_v16  ;;  %s3011_s8 = smov 127  }
  0x70   : > { %v3278_v8 = vld [vmem:[%s3231_s12 + $0x50] sm:$0xff]  ;;  %v3281_v9 = vld [vmem:[%s3231_s12 + $0x40] sm:$0xff]  ;;  %v3288_v10 = vld [vmem:[%s3231_s12 + $0x58] sm:$0xff]  ;;  %s3012_s18 = smov 113   ;;  %s3013_s30 = smov 112  }
  0x71   : > { %v3291_v11 = vld [vmem:[%s3231_s12 + $0x48] sm:$0xff]  ;;  %v3302_v12 = vld [vmem:[%s3231_s12 + $0x70] sm:$0xff]  ;;  %v3305_v13 = vld [vmem:[%s3231_s12 + $0x60] sm:$0xff]  ;;  %v371_v19 = vsub.s32 0, %v3397_v17  ;;  %vm352_vm0 = vcmp.lt.s32.totalorder %v3403_v18, 17  ;;  %vm433_vm1 = vcmp.lt.s32.totalorder %v3403_v18, 16 }
  0x72   : > { %336 = vrot.lane.b32.xlu1 %v3252_v2, %s3007_s27  ;;  %320 = vrot.lane.b32.xlu0 %v3255_v3, %s3007_s27  ;;  %v3312_v14 = vld [vmem:[%s3231_s12 + $0x78] sm:$0xff]  ;;  %v3315_v15 = vld [vmem:[%s3231_s12 + $0x68] sm:$0xff]  ;;  %vm514_vm2 = vcmp.lt.s32.totalorder %v3403_v18, 15  ;;  %vm595_vm3 = vcmp.lt.s32.totalorder %v3403_v18, 1  ;;  %s5190_s19 = smov 111   ;;  %vm684_vm4 = vcmp.lt.s32.totalorder %v3403_v18, 127 }
  0x73   : > { %v3413_v20 = vld [vmem:[%s5180_s1 + $0x8] sm:$0xff]  ;;  %v3419_v21 = vld [vmem:[%s5180_s1] sm:$0xff]  ;;  %vm765_vm5 = vcmp.lt.s32.totalorder %v3403_v18, 113  ;;  %vm846_vm6 = vcmp.lt.s32.totalorder %v3403_v18, 112  ;;  %vm927_vm7 = vcmp.lt.s32.totalorder %v3403_v18, 111  ;;  %s2588_s17 = sshll.u32 %s3074_s25, 11 }
  0x74   : > { %v3422_v24 = vrot.slane %v3413_v20, %v371_v19  ;;  %v3431_v26 = vrot.slane %v3419_v21, %v371_v19  ;;  %v2770_v33 = vld [vmem:[#allocation5 + $0x4] ss:$20 sps:$4 sm:$0xff]   ;;  %s5128_s15 = scalar_lea.hbm %s5185_s6, %s2588_s17  ;;  %s2416_s25 = scalar_lea.sflag [#allocation4], %s3225_s13 }
  0x75   : > { %1193 = vmatprep.mubr.bf16.mxu0 %v2770_v33  ;;  %v2821_v18 = vld [vmem:[#allocation7 + $0x38] ss:$20 sps:$4 sm:$0xff]   ;;  %p5288_p0 = scmp.ne.s32.totalorder %s5232_s9, 0 }
  0x76   : > { %324 = vrot.lane.b32.xlu1 %v3262_v4, %s3007_s27  ;;  %322 = vrot.lane.b32.xlu0 %v3265_v5, %s3007_s27 }
  0x7a   : > { %340 = vrot.lane.b32.xlu1 %v3268_v6, %s3007_s27  ;;  %338 = vrot.lane.b32.xlu0 %v3271_v7, %s3007_s27 }
  0x7e   : > { %328 = vrot.lane.b32.xlu1 %v3278_v8, %s3007_s27  ;;  %326 = vrot.lane.b32.xlu0 %v3281_v9, %s3007_s27 }
  0x82   : > { %344 = vrot.lane.b32.xlu1 %v3288_v10, %s3007_s27  ;;  %342 = vrot.lane.b32.xlu0 %v3291_v11, %s3007_s27 }
  0x86   : > { %332 = vrot.lane.b32.xlu1 %v3302_v12, %s3007_s27  ;;  %330 = vrot.lane.b32.xlu0 %v3305_v13, %s3007_s27 }
  0x8a   : > { %348 = vrot.lane.b32.xlu1 %v3312_v14, %s3007_s27  ;;  %346 = vrot.lane.b32.xlu0 %v3315_v15, %s3007_s27 }
  0x8e   : > { %403 = vrot.lane.b32.xlu1 %v3255_v3, %s3008_s29  ;;  %401 = vrot.lane.b32.xlu0 %v3245_v1, %s3008_s29 }
  0x92   : > { %419 = vrot.lane.b32.xlu1 %v3252_v2, %s3008_s29  ;;  %417 = vrot.lane.b32.xlu0 %v3242_v0, %s3008_s29 }
  0x96   : > { %407 = vrot.lane.b32.xlu1 %v3262_v4, %s3008_s29  ;;  %405 = vrot.lane.b32.xlu0 %v3265_v5, %s3008_s29 }
  0x9a   : > { %423 = vrot.lane.b32.xlu1 %v3268_v6, %s3008_s29  ;;  %421 = vrot.lane.b32.xlu0 %v3271_v7, %s3008_s29 }
  0x9e   : > { %411 = vrot.lane.b32.xlu1 %v3278_v8, %s3008_s29  ;;  %409 = vrot.lane.b32.xlu0 %v3281_v9, %s3008_s29 }
  0xa2   : > { %427 = vrot.lane.b32.xlu1 %v3288_v10, %s3008_s29  ;;  %425 = vrot.lane.b32.xlu0 %v3291_v11, %s3008_s29 }
  0xa6   : > { %415 = vrot.lane.b32.xlu1 %v3302_v12, %s3008_s29  ;;  %413 = vrot.lane.b32.xlu0 %v3305_v13, %s3008_s29 }
  0xaa   : > { %431 = vrot.lane.b32.xlu1 %v3312_v14, %s3008_s29  ;;  %429 = vrot.lane.b32.xlu0 %v3315_v15, %s3008_s29 }
  0xae   : > { %484 = vrot.lane.b32.xlu1 %v3255_v3, %s3009_s14  ;;  %482 = vrot.lane.b32.xlu0 %v3245_v1, %s3009_s14 }
  0xb2   : > { %500 = vrot.lane.b32.xlu1 %v3252_v2, %s3009_s14  ;;  %498 = vrot.lane.b32.xlu0 %v3242_v0, %s3009_s14 }
  0xb6   : > { %488 = vrot.lane.b32.xlu1 %v3262_v4, %s3009_s14  ;;  %486 = vrot.lane.b32.xlu0 %v3265_v5, %s3009_s14 }
  0xba   : > { %504 = vrot.lane.b32.xlu1 %v3268_v6, %s3009_s14  ;;  %502 = vrot.lane.b32.xlu0 %v3271_v7, %s3009_s14 }
  0xbe   : > { %492 = vrot.lane.b32.xlu1 %v3278_v8, %s3009_s14  ;;  %490 = vrot.lane.b32.xlu0 %v3281_v9, %s3009_s14 }
  0xc2   : > { %508 = vrot.lane.b32.xlu1 %v3288_v10, %s3009_s14  ;;  %506 = vrot.lane.b32.xlu0 %v3291_v11, %s3009_s14 }
  0xc6   : > { %496 = vrot.lane.b32.xlu1 %v3302_v12, %s3009_s14  ;;  %494 = vrot.lane.b32.xlu0 %v3305_v13, %s3009_s14 }
  0xca   : > { %512 = vrot.lane.b32.xlu1 %v3312_v14, %s3009_s14  ;;  %510 = vrot.lane.b32.xlu0 %v3315_v15, %s3009_s14 }
  0xce   : > { %565 = vrot.lane.b32.xlu1 %v3255_v3, %s3010_s16  ;;  %563 = vrot.lane.b32.xlu0 %v3245_v1, %s3010_s16 }
  0xd2   : > { %581 = vrot.lane.b32.xlu1 %v3252_v2, %s3010_s16  ;;  %579 = vrot.lane.b32.xlu0 %v3242_v0, %s3010_s16 }
  0xd6   : > { %569 = vrot.lane.b32.xlu1 %v3262_v4, %s3010_s16  ;;  %567 = vrot.lane.b32.xlu0 %v3265_v5, %s3010_s16 }
  0xda   : > { %585 = vrot.lane.b32.xlu1 %v3268_v6, %s3010_s16  ;;  %583 = vrot.lane.b32.xlu0 %v3271_v7, %s3010_s16 }
  0xde   : > { %573 = vrot.lane.b32.xlu1 %v3278_v8, %s3010_s16  ;;  %571 = vrot.lane.b32.xlu0 %v3281_v9, %s3010_s16 }
  0xe0   : > { %v335_v22 = vpop.permute.xlu1 %334  ;;  %v319_v23 = vpop.permute.xlu0 %318 }
  0xe1   : > { %v353_v25 = vsel %vm352_vm0, %v319_v23, %v335_v22  ;;  %v361_v27 = vsel %vm352_vm0, %v335_v22, %v319_v23 }
  0xe2   : > { %589 = vrot.lane.b32.xlu1 %v3288_v10, %s3010_s16  ;;  %587 = vrot.lane.b32.xlu0 %v3291_v11, %s3010_s16  ;;  %v378_v32 = vmul.f32 %v3422_v24, %v353_v25  ;;  %v377_v35 = vmul.f32 %v3431_v26, %v361_v27 }
  0xe4   : > { %v337_v28 = vpop.permute.xlu1 %336  ;;  %v321_v29 = vpop.permute.xlu0 %320 }
  0xe5   : > { %v362_v30 = vsel %vm352_vm0, %v337_v28, %v321_v29  ;;  %v354_v31 = vsel %vm352_vm0, %v321_v29, %v337_v28  ;;  %v452_v29 = vsub.s32 1, %v3397_v17 }
  0xe6   : > { %577 = vrot.lane.b32.xlu1 %v3302_v12, %s3010_s16  ;;  %575 = vrot.lane.b32.xlu0 %v3305_v13, %s3010_s16  ;;  %v380_v34 = vmul.f32 %v3422_v24, %v354_v31  ;;  %v379_v36 = vmul.f32 %v3431_v26, %v362_v30 }
  0xe8   : > { %v325_v37 = vpop.permute.xlu1 %324  ;;  %v323_v38 = vpop.permute.xlu0 %322  ;;  %v394_v39 = vpack.c.bf16 %v380_v34, %v378_v32  ;;  %v393_v40 = vpack.c.bf16 %v379_v36, %v377_v35 }
  0xea   : > { %593 = vrot.lane.b32.xlu1 %v3312_v14, %s3010_s16  ;;  %591 = vrot.lane.b32.xlu0 %v3315_v15, %s3010_s16 }
  0xeb   : > { %1161 = vmatprep.subr.bf16.mxu0 %v394_v39 }
  0xec   : > { %1162 = vmatpush1.bf16.msra.mxu0 %v393_v40  ;;  %v341_v41 = vpop.permute.xlu1 %340  ;;  %v339_v42 = vpop.permute.xlu0 %338 }
  0xed   : > { %v356_v43 = vsel %vm352_vm0, %v325_v37, %v341_v41  ;;  %v364_v44 = vsel %vm352_vm0, %v341_v41, %v325_v37  ;;  %v355_v45 = vsel %vm352_vm0, %v323_v38, %v339_v42  ;;  %v363_v46 = vsel %vm352_vm0, %v339_v42, %v323_v38 }
  0xee   : > { %v383_v47 = vmul.f32 %v3431_v26, %v364_v44  ;;  %v384_v48 = vmul.f32 %v3422_v24, %v356_v43  ;;  %v381_v49 = vmul.f32 %v3431_v26, %v363_v46  ;;  %v382_v50 = vmul.f32 %v3422_v24, %v355_v45  ;;  %654 = vrot.lane.b32.xlu1 %v3255_v3, %s3011_s8 }
  0xef   : > { %652 = vrot.lane.b32.xlu0 %v3245_v1, %s3011_s8  ;;  %v3512_v42 = vrot.slane %v3419_v21, %v452_v29  ;;  %v3515_v43 = vrot.slane %v3413_v20, %v452_v29 }
  0xf0   : > { %v329_v51 = vpop.permute.xlu1 %328  ;;  %v327_v52 = vpop.permute.xlu0 %326  ;;  %v396_v53 = vpack.c.bf16 %v384_v48, %v382_v50  ;;  %v395_v54 = vpack.c.bf16 %v383_v47, %v381_v49 }
  0xf2   : > { %670 = vrot.lane.b32.xlu1 %v3252_v2, %s3011_s8  ;;  %1163 = vmatprep.subr.bf16.mxu0 %v396_v53 }
  0xf3   : > { %668 = vrot.lane.b32.xlu0 %v3242_v0, %s3011_s8  ;;  %1164 = vmatpush1.bf16.msra.mxu0 %v395_v54 }
  0xf4   : > { %v345_v55 = vpop.permute.xlu1 %344  ;;  %v343_v56 = vpop.permute.xlu0 %342 }
  0xf5   : > { %v358_v57 = vsel %vm352_vm0, %v329_v51, %v345_v55  ;;  %v366_v58 = vsel %vm352_vm0, %v345_v55, %v329_v51  ;;  %v357_v59 = vsel %vm352_vm0, %v327_v52, %v343_v56  ;;  %v365_v60 = vsel %vm352_vm0, %v343_v56, %v327_v52 }
  0xf6   : > { %v387_v61 = vmul.f32 %v3431_v26, %v366_v58  ;;  %v388_v62 = vmul.f32 %v3422_v24, %v358_v57  ;;  %v385_v63 = vmul.f32 %v3431_v26, %v365_v60  ;;  %v386_v16 = vmul.f32 %v3422_v24, %v357_v59  ;;  %658 = vrot.lane.b32.xlu1 %v3262_v4, %s3011_s8 }
  0xf7   : > { %656 = vrot.lane.b32.xlu0 %v3265_v5, %s3011_s8 }
  0xf8   : > { %v333_v19 = vpop.permute.xlu1 %332  ;;  %v331_v22 = vpop.permute.xlu0 %330  ;;  %v398_v23 = vpack.c.bf16 %v388_v62, %v386_v16  ;;  %v397_v25 = vpack.c.bf16 %v387_v61, %v385_v63 }
  0xfa   : > { %674 = vrot.lane.b32.xlu1 %v3268_v6, %s3011_s8  ;;  %1165 = vmatprep.subr.bf16.mxu0 %v398_v23 }
  0xfb   : > { %672 = vrot.lane.b32.xlu0 %v3271_v7, %s3011_s8  ;;  %1166 = vmatpush1.bf16.msra.mxu0 %v397_v25 }
  0xfc   : > { %v349_v27 = vpop.permute.xlu1 %348  ;;  %v347_v28 = vpop.permute.xlu0 %346 }
  0xfd   : > { %v360_v30 = vsel %vm352_vm0, %v333_v19, %v349_v27  ;;  %v368_v31 = vsel %vm352_vm0, %v349_v27, %v333_v19  ;;  %v359_v32 = vsel %vm352_vm0, %v331_v22, %v347_v28  ;;  %v367_v33 = vsel %vm352_vm0, %v347_v28, %v331_v22 }
  0xfe   : > { %v391_v34 = vmul.f32 %v3431_v26, %v368_v31  ;;  %v392_v35 = vmul.f32 %v3422_v24, %v360_v30  ;;  %v389_v36 = vmul.f32 %v3431_v26, %v367_v33  ;;  %v390_v37 = vmul.f32 %v3422_v24, %v359_v32  ;;  %662 = vrot.lane.b32.xlu1 %v3278_v8, %s3011_s8 }
  0xff   : > { %660 = vrot.lane.b32.xlu0 %v3281_v9, %s3011_s8 }
 0x100   : > { %v404_v38 = vpop.permute.xlu1 %403  ;;  %v402_v39 = vpop.permute.xlu0 %401  ;;  %v400_v40 = vpack.c.bf16 %v392_v35, %v390_v37  ;;  %v399_v41 = vpack.c.bf16 %v391_v34, %v389_v36 }
 0x102   : > { %678 = vrot.lane.b32.xlu1 %v3288_v10, %s3011_s8  ;;  %1167 = vmatprep.subr.bf16.mxu0 %v400_v40 }
 0x103   : > { %676 = vrot.lane.b32.xlu0 %v3291_v11, %s3011_s8  ;;  %1168 = vmatpush1.bf16.msra.mxu0 %v399_v41 }
 0x104   : > { %v420_v44 = vpop.permute.xlu1 %419  ;;  %v418_v45 = vpop.permute.xlu0 %417 }
 0x105   : > { %v435_v46 = vsel %vm433_vm1, %v404_v38, %v420_v44  ;;  %v443_v47 = vsel %vm433_vm1, %v420_v44, %v404_v38  ;;  %v434_v48 = vsel %vm433_vm1, %v402_v39, %v418_v45  ;;  %v442_v49 = vsel %vm433_vm1, %v418_v45, %v402_v39 }
 0x106   : > { %v460_v50 = vmul.f32 %v3512_v42, %v443_v47  ;;  %v461_v51 = vmul.f32 %v3515_v43, %v435_v46  ;;  %v458_v52 = vmul.f32 %v3512_v42, %v442_v49  ;;  %v459_v53 = vmul.f32 %v3515_v43, %v434_v48  ;;  %666 = vrot.lane.b32.xlu1 %v3302_v12, %s3011_s8 }
 0x107   : > { %664 = vrot.lane.b32.xlu0 %v3305_v13, %s3011_s8  ;;  %v533_v48 = vsub.s32 2, %v3397_v17 }
 0x108   : > { %v408_v54 = vpop.permute.xlu1 %407  ;;  %v406_v55 = vpop.permute.xlu0 %405  ;;  %v475_v56 = vpack.c.bf16 %v461_v51, %v459_v53  ;;  %v474_v57 = vpack.c.bf16 %v460_v50, %v458_v52 }
 0x10a   : > { %682 = vrot.lane.b32.xlu1 %v3312_v14, %s3011_s8  ;;  %1169 = vmatprep.subr.bf16.mxu0 %v475_v56 }
 0x10b   : > { %680 = vrot.lane.b32.xlu0 %v3315_v15, %s3011_s8  ;;  %1170 = vmatpush1.bf16.msra.mxu0 %v474_v57 }
 0x10c   : > { %v424_v58 = vpop.permute.xlu1 %423  ;;  %v422_v59 = vpop.permute.xlu0 %421 }
 0x10d   : > { %v437_v60 = vsel %vm433_vm1, %v408_v54, %v424_v58  ;;  %v445_v61 = vsel %vm433_vm1, %v424_v58, %v408_v54  ;;  %v436_v62 = vsel %vm433_vm1, %v406_v55, %v422_v59  ;;  %v444_v63 = vsel %vm433_vm1, %v422_v59, %v406_v55 }
 0x10e   : > { %v464_v16 = vmul.f32 %v3512_v42, %v445_v61  ;;  %v465_v19 = vmul.f32 %v3515_v43, %v437_v60  ;;  %v462_v22 = vmul.f32 %v3512_v42, %v444_v63  ;;  %v463_v23 = vmul.f32 %v3515_v43, %v436_v62  ;;  %735 = vrot.lane.b32.xlu1 %v3255_v3, %s3012_s18 }
 0x10f   : > { %733 = vrot.lane.b32.xlu0 %v3245_v1, %s3012_s18  ;;  %v3600_v61 = vrot.slane %v3419_v21, %v533_v48  ;;  %v3603_v62 = vrot.slane %v3413_v20, %v533_v48 }
 0x110   : > { %v412_v25 = vpop.permute.xlu1 %411  ;;  %v410_v27 = vpop.permute.xlu0 %409  ;;  %v477_v28 = vpack.c.bf16 %v465_v19, %v463_v23  ;;  %v476_v29 = vpack.c.bf16 %v464_v16, %v462_v22 }
 0x112   : > { %751 = vrot.lane.b32.xlu1 %v3252_v2, %s3012_s18  ;;  %1171 = vmatprep.subr.bf16.mxu0 %v477_v28 }
 0x113   : > { %749 = vrot.lane.b32.xlu0 %v3242_v0, %s3012_s18  ;;  %1172 = vmatpush1.bf16.msra.mxu0 %v476_v29 }
 0x114   : > { %v428_v30 = vpop.permute.xlu1 %427  ;;  %v426_v31 = vpop.permute.xlu0 %425 }
 0x115   : > { %v439_v32 = vsel %vm433_vm1, %v412_v25, %v428_v30  ;;  %v447_v33 = vsel %vm433_vm1, %v428_v30, %v412_v25  ;;  %v438_v34 = vsel %vm433_vm1, %v410_v27, %v426_v31  ;;  %v446_v35 = vsel %vm433_vm1, %v426_v31, %v410_v27 }
 0x116   : > { %v468_v36 = vmul.f32 %v3512_v42, %v447_v33  ;;  %v469_v37 = vmul.f32 %v3515_v43, %v439_v32  ;;  %v466_v38 = vmul.f32 %v3512_v42, %v446_v35  ;;  %v467_v39 = vmul.f32 %v3515_v43, %v438_v34  ;;  %739 = vrot.lane.b32.xlu1 %v3262_v4, %s3012_s18 }
 0x117   : > { %737 = vrot.lane.b32.xlu0 %v3265_v5, %s3012_s18 }
 0x118   : > { %v416_v40 = vpop.permute.xlu1 %415  ;;  %v414_v41 = vpop.permute.xlu0 %413  ;;  %v479_v44 = vpack.c.bf16 %v469_v37, %v467_v39  ;;  %v478_v45 = vpack.c.bf16 %v468_v36, %v466_v38 }
 0x11a   : > { %755 = vrot.lane.b32.xlu1 %v3268_v6, %s3012_s18  ;;  %1173 = vmatprep.subr.bf16.mxu0 %v479_v44 }
 0x11b   : > { %753 = vrot.lane.b32.xlu0 %v3271_v7, %s3012_s18  ;;  %1174 = vmatpush1.bf16.msra.mxu0 %v478_v45 }
 0x11c   : > { %v432_v46 = vpop.permute.xlu1 %431  ;;  %v430_v47 = vpop.permute.xlu0 %429 }
 0x11d   : > { %v441_v49 = vsel %vm433_vm1, %v416_v40, %v432_v46  ;;  %v449_v50 = vsel %vm433_vm1, %v432_v46, %v416_v40  ;;  %v440_v51 = vsel %vm433_vm1, %v414_v41, %v430_v47  ;;  %v448_v52 = vsel %vm433_vm1, %v430_v47, %v414_v41 }
 0x11e   : > { %v472_v53 = vmul.f32 %v3512_v42, %v449_v50  ;;  %v473_v54 = vmul.f32 %v3515_v43, %v441_v49  ;;  %v470_v55 = vmul.f32 %v3512_v42, %v448_v52  ;;  %v471_v56 = vmul.f32 %v3515_v43, %v440_v51  ;;  %743 = vrot.lane.b32.xlu1 %v3278_v8, %s3012_s18 }
 0x11f   : > { %741 = vrot.lane.b32.xlu0 %v3281_v9, %s3012_s18 }
 0x120   : > { %v485_v57 = vpop.permute.xlu1 %484  ;;  %v483_v58 = vpop.permute.xlu0 %482  ;;  %v481_v59 = vpack.c.bf16 %v473_v54, %v471_v56  ;;  %v480_v60 = vpack.c.bf16 %v472_v53, %v470_v55 }
 0x122   : > { %759 = vrot.lane.b32.xlu1 %v3288_v10, %s3012_s18  ;;  %1175 = vmatprep.subr.bf16.mxu0 %v481_v59 }
 0x123   : > { %757 = vrot.lane.b32.xlu0 %v3291_v11, %s3012_s18  ;;  %1176 = vmatpush1.bf16.msra.mxu0 %v480_v60 }
 0x124   : > { %v501_v63 = vpop.permute.xlu1 %500  ;;  %v499_v16 = vpop.permute.xlu0 %498 }
 0x125   : > { %v516_v19 = vsel %vm514_vm2, %v485_v57, %v501_v63  ;;  %v524_v22 = vsel %vm514_vm2, %v501_v63, %v485_v57  ;;  %v515_v23 = vsel %vm514_vm2, %v483_v58, %v499_v16  ;;  %v523_v25 = vsel %vm514_vm2, %v499_v16, %v483_v58 }
 0x126   : > { %v541_v27 = vmul.f32 %v3600_v61, %v524_v22  ;;  %v542_v28 = vmul.f32 %v3603_v62, %v516_v19  ;;  %v539_v29 = vmul.f32 %v3600_v61, %v523_v25  ;;  %v540_v30 = vmul.f32 %v3603_v62, %v515_v23  ;;  %747 = vrot.lane.b32.xlu1 %v3302_v12, %s3012_s18 }
 0x127   : > { %745 = vrot.lane.b32.xlu0 %v3305_v13, %s3012_s18 }
 0x128   : > { %v489_v31 = vpop.permute.xlu1 %488  ;;  %v487_v32 = vpop.permute.xlu0 %486  ;;  %v556_v33 = vpack.c.bf16 %v542_v28, %v540_v30  ;;  %v555_v34 = vpack.c.bf16 %v541_v27, %v539_v29  ;;  %v614_v27 = vsub.s32 3, %v3397_v17 }
 0x12a   : > { %763 = vrot.lane.b32.xlu1 %v3312_v14, %s3012_s18  ;;  %1177 = vmatprep.subr.bf16.mxu0 %v556_v33 }
 0x12b   : > { %761 = vrot.lane.b32.xlu0 %v3315_v15, %s3012_s18  ;;  %1178 = vmatpush1.bf16.msra.mxu0 %v555_v34 }
 0x12c   : > { %v505_v35 = vpop.permute.xlu1 %504  ;;  %v503_v36 = vpop.permute.xlu0 %502 }
 0x12d   : > { %v518_v37 = vsel %vm514_vm2, %v489_v31, %v505_v35  ;;  %v526_v38 = vsel %vm514_vm2, %v505_v35, %v489_v31  ;;  %v517_v39 = vsel %vm514_vm2, %v487_v32, %v503_v36  ;;  %v525_v40 = vsel %vm514_vm2, %v503_v36, %v487_v32 }
 0x12e   : > { %v545_v41 = vmul.f32 %v3600_v61, %v526_v38  ;;  %v546_v44 = vmul.f32 %v3603_v62, %v518_v37  ;;  %v543_v45 = vmul.f32 %v3600_v61, %v525_v40  ;;  %v544_v46 = vmul.f32 %v3603_v62, %v517_v39  ;;  %816 = vrot.lane.b32.xlu1 %v3255_v3, %s3013_s30 }
 0x12f   : > { %814 = vrot.lane.b32.xlu0 %v3245_v1, %s3013_s30  ;;  %v3688_v40 = vrot.slane %v3419_v21, %v614_v27 }
 0x130   : > { %v493_v47 = vpop.permute.xlu1 %492  ;;  %v491_v48 = vpop.permute.xlu0 %490  ;;  %v558_v49 = vpack.c.bf16 %v546_v44, %v544_v46  ;;  %v557_v50 = vpack.c.bf16 %v545_v41, %v543_v45  ;;  %v3691_v41 = vrot.slane %v3413_v20, %v614_v27 }
 0x131   : > { %5237 = vst [vmem:[#allocation12_spill] sm:$0xff] %v3688_v40 }
 0x132   : > { %832 = vrot.lane.b32.xlu1 %v3252_v2, %s3013_s30  ;;  %1179 = vmatprep.subr.bf16.mxu0 %v558_v49  ;;  %5238 = vst [vmem:[#allocation13_spill] sm:$0xff] %v3691_v41 }
 0x133   : > { %830 = vrot.lane.b32.xlu0 %v3242_v0, %s3013_s30  ;;  %1180 = vmatpush1.bf16.msra.mxu0 %v557_v50 }
 0x134   : > { %v509_v51 = vpop.permute.xlu1 %508  ;;  %v507_v52 = vpop.permute.xlu0 %506 }
 0x135   : > { %v520_v53 = vsel %vm514_vm2, %v493_v47, %v509_v51  ;;  %v528_v54 = vsel %vm514_vm2, %v509_v51, %v493_v47  ;;  %v519_v55 = vsel %vm514_vm2, %v491_v48, %v507_v52  ;;  %v527_v56 = vsel %vm514_vm2, %v507_v52, %v491_v48 }
 0x136   : > { %v549_v57 = vmul.f32 %v3600_v61, %v528_v54  ;;  %v550_v58 = vmul.f32 %v3603_v62, %v520_v53  ;;  %v547_v59 = vmul.f32 %v3600_v61, %v527_v56  ;;  %v548_v60 = vmul.f32 %v3603_v62, %v519_v55  ;;  %820 = vrot.lane.b32.xlu1 %v3262_v4, %s3013_s30 }
 0x137   : > { %818 = vrot.lane.b32.xlu0 %v3265_v5, %s3013_s30 }
 0x138   : > { %v497_v63 = vpop.permute.xlu1 %496  ;;  %v495_v16 = vpop.permute.xlu0 %494  ;;  %v560_v19 = vpack.c.bf16 %v550_v58, %v548_v60  ;;  %v559_v22 = vpack.c.bf16 %v549_v57, %v547_v59 }
 0x13a   : > { %836 = vrot.lane.b32.xlu1 %v3268_v6, %s3013_s30  ;;  %1181 = vmatprep.subr.bf16.mxu0 %v560_v19 }
 0x13b   : > { %834 = vrot.lane.b32.xlu0 %v3271_v7, %s3013_s30  ;;  %1182 = vmatpush1.bf16.msra.mxu0 %v559_v22 }
 0x13c   : > { %v513_v23 = vpop.permute.xlu1 %512  ;;  %v511_v25 = vpop.permute.xlu0 %510 }
 0x13d   : > { %v522_v28 = vsel %vm514_vm2, %v497_v63, %v513_v23  ;;  %v530_v29 = vsel %vm514_vm2, %v513_v23, %v497_v63  ;;  %v521_v30 = vsel %vm514_vm2, %v495_v16, %v511_v25  ;;  %v529_v31 = vsel %vm514_vm2, %v511_v25, %v495_v16 }
 0x13e   : > { %v553_v32 = vmul.f32 %v3600_v61, %v530_v29  ;;  %v554_v33 = vmul.f32 %v3603_v62, %v522_v28  ;;  %v551_v34 = vmul.f32 %v3600_v61, %v529_v31  ;;  %v552_v35 = vmul.f32 %v3603_v62, %v521_v30  ;;  %824 = vrot.lane.b32.xlu1 %v3278_v8, %s3013_s30 }
 0x13f   : > { %822 = vrot.lane.b32.xlu0 %v3281_v9, %s3013_s30 }
 0x140   : > { %v566_v36 = vpop.permute.xlu1 %565  ;;  %v564_v37 = vpop.permute.xlu0 %563  ;;  %v562_v38 = vpack.c.bf16 %v554_v33, %v552_v35  ;;  %v561_v39 = vpack.c.bf16 %v553_v32, %v551_v34 }
 0x142   : > { %840 = vrot.lane.b32.xlu1 %v3288_v10, %s3013_s30  ;;  %1183 = vmatprep.subr.bf16.mxu0 %v562_v38 }
 0x143   : > { %838 = vrot.lane.b32.xlu0 %v3291_v11, %s3013_s30  ;;  %1184 = vmatpush1.bf16.msra.mxu0 %v561_v39 }
 0x144   : > { %v582_v44 = vpop.permute.xlu1 %581  ;;  %v580_v45 = vpop.permute.xlu0 %579 }
 0x145   : > { %v597_v46 = vsel %vm595_vm3, %v566_v36, %v582_v44  ;;  %v605_v47 = vsel %vm595_vm3, %v582_v44, %v566_v36  ;;  %v596_v48 = vsel %vm595_vm3, %v564_v37, %v580_v45  ;;  %v604_v49 = vsel %vm595_vm3, %v580_v45, %v564_v37 }
 0x146   : > { %v622_v50 = vmul.f32 %v3688_v40, %v605_v47  ;;  %v623_v51 = vmul.f32 %v3691_v41, %v597_v46  ;;  %v620_v52 = vmul.f32 %v3688_v40, %v604_v49  ;;  %v621_v53 = vmul.f32 %v3691_v41, %v596_v48  ;;  %828 = vrot.lane.b32.xlu1 %v3302_v12, %s3013_s30 }
 0x147   : > { %826 = vrot.lane.b32.xlu0 %v3305_v13, %s3013_s30 }
 0x148   : > { %v570_v54 = vpop.permute.xlu1 %569  ;;  %v568_v55 = vpop.permute.xlu0 %567  ;;  %v637_v56 = vpack.c.bf16 %v623_v51, %v621_v53  ;;  %v636_v57 = vpack.c.bf16 %v622_v50, %v620_v52 }
 0x14a   : > { %844 = vrot.lane.b32.xlu1 %v3312_v14, %s3013_s30  ;;  %1185 = vmatprep.subr.bf16.mxu0 %v637_v56 }
 0x14b   : > { %842 = vrot.lane.b32.xlu0 %v3315_v15, %s3013_s30  ;;  %1186 = vmatpush1.bf16.msra.mxu0 %v636_v57 }
 0x14c   : > { %v586_v58 = vpop.permute.xlu1 %585  ;;  %v584_v59 = vpop.permute.xlu0 %583 }
 0x14d   : > { %v599_v60 = vsel %vm595_vm3, %v570_v54, %v586_v58  ;;  %v607_v63 = vsel %vm595_vm3, %v586_v58, %v570_v54  ;;  %v598_v16 = vsel %vm595_vm3, %v568_v55, %v584_v59  ;;  %v606_v19 = vsel %vm595_vm3, %v584_v59, %v568_v55 }
 0x14e   : > { %v626_v22 = vmul.f32 %v3688_v40, %v607_v63  ;;  %v627_v23 = vmul.f32 %v3691_v41, %v599_v60  ;;  %v624_v25 = vmul.f32 %v3688_v40, %v606_v19  ;;  %v625_v27 = vmul.f32 %v3691_v41, %v598_v16  ;;  %897 = vrot.lane.b32.xlu1 %v3255_v3, %s5190_s19 }
 0x14f   : > { %895 = vrot.lane.b32.xlu0 %v3245_v1, %s5190_s19  ;;  %v645_v19 = vpack.c.bf16 %v3252_v2, %v3242_v0 }
 0x150   : > { %v574_v28 = vpop.permute.xlu1 %573  ;;  %v572_v29 = vpop.permute.xlu0 %571  ;;  %v639_v30 = vpack.c.bf16 %v627_v23, %v625_v27  ;;  %v638_v31 = vpack.c.bf16 %v626_v22, %v624_v25  ;;  %v2768_v23 = vld [vmem:[#allocation5] ss:$20 sps:$4 sm:$0xff]   ;;  %v644_v27 = vpack.c.bf16 %v3255_v3, %v3245_v1  ;;  %v646_v3 = vpack.c.bf16 %v3262_v4, %v3265_v5 }
 0x152   : > { %913 = vrot.lane.b32.xlu1 %v3252_v2, %s5190_s19  ;;  %1187 = vmatprep.subr.bf16.mxu0 %v639_v30  ;;  %v5192_v2 = vmov 0   ;;  %v703_v30 = vsub.s32 4, %v3397_v17 }
 0x153   : > { %911 = vrot.lane.b32.xlu0 %v3242_v0, %s5190_s19  ;;  %1188 = vmatpush1.bf16.msra.mxu0 %v638_v31  ;;  %v647_v0 = vpack.c.bf16 %v3268_v6, %v3271_v7 }
 0x154   : > { %v590_v32 = vpop.permute.xlu1 %589  ;;  %v588_v33 = vpop.permute.xlu0 %587  ;;  %2767 = vset.pattern.permute.xlu1 %v5192_v2  ;;  %2766 = vset.pattern.permute.xlu0 %v5192_v2  ;;  %v3796_v31 = vrot.slane %v3413_v20, %v703_v30 }
 0x155   : > { %v601_v34 = vsel %vm595_vm3, %v574_v28, %v590_v32  ;;  %v609_v35 = vsel %vm595_vm3, %v590_v32, %v574_v28  ;;  %v600_v36 = vsel %vm595_vm3, %v572_v29, %v588_v33  ;;  %v608_v37 = vsel %vm595_vm3, %v588_v33, %v572_v29  ;;  %v2771_v28 = vld [vmem:[#allocation5 + $0x2c] ss:$20 sps:$4 sm:$0xff]   ;;  %v2773_v32 = vld [vmem:[#allocation5 + $0x28] ss:$20 sps:$4 sm:$0xff]  }
 0x156   : > { %v630_v38 = vmul.f32 %v3688_v40, %v609_v35  ;;  %v631_v39 = vmul.f32 %v3691_v41, %v601_v34  ;;  %v628_v44 = vmul.f32 %v3688_v40, %v608_v37  ;;  %v629_v45 = vmul.f32 %v3691_v41, %v600_v36  ;;  %901 = vrot.lane.b32.xlu1 %v3262_v4, %s5190_s19 }
 0x157   : > { %899 = vrot.lane.b32.xlu0 %v3265_v5, %s5190_s19  ;;  %5239 = vst [vmem:[#allocation14_spill] sm:$0xff] %v3796_v31  ;;  %v3807_v34 = vrot.slane %v3419_v21, %v703_v30  ;;  %v651_v36 = vpack.c.bf16 %v3312_v14, %v3315_v15  ;;  %v2779_v30 = vld [vmem:[#allocation5 + $0x78] ss:$20 sps:$4 sm:$0xff]  }
 0x158   : > { %v578_v46 = vpop.permute.xlu1 %577  ;;  %v576_v47 = vpop.permute.xlu0 %575  ;;  %v641_v48 = vpack.c.bf16 %v631_v39, %v629_v45  ;;  %v640_v49 = vpack.c.bf16 %v630_v38, %v628_v44 }
 0x159   : > { %5240 = vst [vmem:[#allocation15_spill] sm:$0xff] %v3807_v34 }
 0x15a   : > { %917 = vrot.lane.b32.xlu1 %v3268_v6, %s5190_s19  ;;  %1189 = vmatprep.subr.bf16.mxu0 %v641_v48 }
 0x15b   : > { %915 = vrot.lane.b32.xlu0 %v3271_v7, %s5190_s19  ;;  %1190 = vmatpush1.bf16.msra.mxu0 %v640_v49  ;;  %v649_v7 = vpack.c.bf16 %v3288_v10, %v3291_v11 }
 0x15c   : > { %v594_v50 = vpop.permute.xlu1 %593  ;;  %v592_v51 = vpop.permute.xlu0 %591 }
 0x15d   : > { %v603_v52 = vsel %vm595_vm3, %v578_v46, %v594_v50  ;;  %v611_v53 = vsel %vm595_vm3, %v594_v50, %v578_v46  ;;  %v602_v54 = vsel %vm595_vm3, %v576_v47, %v592_v51  ;;  %v610_v55 = vsel %vm595_vm3, %v592_v51, %v576_v47 }
 0x15e   : > { %v634_v56 = vmul.f32 %v3688_v40, %v611_v53  ;;  %v635_v57 = vmul.f32 %v3691_v41, %v603_v52  ;;  %v632_v58 = vmul.f32 %v3688_v40, %v610_v55  ;;  %v633_v59 = vmul.f32 %v3691_v41, %v602_v54  ;;  %905 = vrot.lane.b32.xlu1 %v3278_v8, %s5190_s19  ;;  %v2776_v53 = vld [vmem:[#allocation5 + $0x50] ss:$20 sps:$4 sm:$0xff]  }
 0x15f   : > { %903 = vrot.lane.b32.xlu0 %v3281_v9, %s5190_s19 }
 0x160   : > { %v655_v60 = vpop.permute.xlu1 %654  ;;  %v643_v63 = vpack.c.bf16 %v635_v57, %v633_v59  ;;  %v642_v16 = vpack.c.bf16 %v634_v56, %v632_v58 }
 0x161   : > { %v653_v22 = vpop.permute.xlu0 %652 }
 0x162   : > { %921 = vrot.lane.b32.xlu1 %v3288_v10, %s5190_s19  ;;  %1191 = vmatprep.subr.bf16.mxu0 %v643_v63  ;;  %v648_v10 = vpack.c.bf16 %v3278_v8, %v3281_v9 }
 0x163   : > { %919 = vrot.lane.b32.xlu0 %v3291_v11, %s5190_s19  ;;  %1192 = vmatpush1.bf16.msra.mxu0 %v642_v16  ;;  %v2774_v11 = vld [vmem:[#allocation5 + $0x54] ss:$20 sps:$4 sm:$0xff]  }
 0x164   : > { %v671_v25 = vpop.permute.xlu1 %670  ;;  %1234 = vmatprep.subr.bf16.mxu0 %v645_v19 }
 0x165   : > { %v669_v29 = vpop.permute.xlu0 %668  ;;  %v694_v4 = vsel %vm684_vm4, %v671_v25, %v655_v60  ;;  %v686_v37 = vsel %vm684_vm4, %v655_v60, %v671_v25 }
 0x166   : > { %909 = vrot.lane.b32.xlu1 %v3302_v12, %s5190_s19  ;;  %1194 = vmatmul.mubr.bf16.vlgmr.msra.gmra.mrb[0].mxu0 %v2768_v23  ;;  %v693_v5 = vsel %vm684_vm4, %v669_v29, %v653_v22  ;;  %v685_v38 = vsel %vm684_vm4, %v653_v22, %v669_v29  ;;  %v712_v39 = vmul.f32 %v3796_v31, %v694_v4 }
 0x167   : > { %907 = vrot.lane.b32.xlu0 %v3305_v13, %s5190_s19  ;;  %1235 = vmatpush1.bf16.msra.mxu0 %v644_v27  ;;  %v710_v44 = vmul.f32 %v3796_v31, %v693_v5  ;;  %v709_v46 = vmul.f32 %v3807_v34, %v685_v38  ;;  %v784_v5 = vsub.s32 5, %v3397_v17  ;;  %v1001_v38 = vld [vmem:[%s5182_s3 + $0x8] sm:$0xff] }
 0x168   : > { %v659_v1 = vpop.permute.xlu1 %658  ;;  %1203 = vmatprep.mubr.bf16.mxu0 %v2771_v28  ;;  %1236 = vmatprep.subr.bf16.mxu0 %v647_v0 }
 0x169   : > { %v657_v6 = vpop.permute.xlu0 %656  ;;  %v726_v52 = vpack.c.bf16 %v712_v39, %v710_v44  ;;  %v1000_v39 = vld [vmem:[%s5182_s3] sm:$0xff] }
 0x16a   : > { %925 = vrot.lane.b32.xlu1 %v3312_v14, %s5190_s19  ;;  %v650_v14 = vpack.c.bf16 %v3302_v12, %v3305_v13  ;;  %v2777_v13 = vld [vmem:[#allocation5 + $0x7c] ss:$20 sps:$4 sm:$0xff]  }
 0x16b   : > { %923 = vrot.lane.b32.xlu0 %v3315_v15, %s5190_s19  ;;  %1237 = vmatpush1.bf16.msra.mxu0 %v646_v3  ;;  %v711_v15 = vmul.f32 %v3807_v34, %v686_v37  ;;  %v2782_v3 = vld [vmem:[#allocation5 + $0xc] ss:$20 sps:$4 sm:$0xff]  }
 0x16c   : > { %v675_v33 = vpop.permute.xlu1 %674  ;;  %1238 = vmatprep.subr.bf16.mxu0 %v649_v7 }
 0x16d   : > { %v673_v35 = vpop.permute.xlu0 %672  ;;  %v696_v8 = vsel %vm684_vm4, %v675_v33, %v659_v1  ;;  %v688_v48 = vsel %vm684_vm4, %v659_v1, %v675_v33  ;;  %v725_v54 = vpack.c.bf16 %v711_v15, %v709_v46  ;;  %v3869_v15 = vrot.slane %v3413_v20, %v784_v5  ;;  %v1002_v46 = vld [vmem:[%s5182_s3 + $0x10] sm:$0xff] }
 0x16e   : > { %1204 = vmatmul.mubr.bf16.gmra.mrb[4].mxu0 %v2773_v32  ;;  %v695_v9 = vsel %vm684_vm4, %v673_v35, %v657_v6  ;;  %v716_v49 = vmul.f32 %v3796_v31, %v696_v8  ;;  %v687_v50 = vsel %vm684_vm4, %v657_v6, %v673_v35  ;;  %v715_v55 = vmul.f32 %v3807_v34, %v688_v48 }
 0x16f   : > { %1239 = vmatpush1.bf16.msra.mxu0 %v648_v10  ;;  %1213 = vmatprep.mubr.bf16.mxu0 %v2774_v11  ;;  %v714_v51 = vmul.f32 %v3796_v31, %v695_v9  ;;  %v713_v58 = vmul.f32 %v3807_v34, %v687_v50  ;;  %5242 = vst [vmem:[#allocation17_spill] sm:$0xff] %v3869_v15 }
 0x170   : > { %v663_v45 = vpop.permute.xlu1 %662  ;;  %1240 = vmatprep.subr.bf16.mxu0 %v651_v36  ;;  %1015 = vperm.xlu1 %2767, %v1001_v38  }
 0x171   : > { %v661_v47 = vpop.permute.xlu0 %660  ;;  %v728_v22 = vpack.c.bf16 %v716_v49, %v714_v51  ;;  %v727_v29 = vpack.c.bf16 %v715_v55, %v713_v58  ;;  %1010 = vperm.xlu0 %2766, %v1000_v39  }
 0x173   : > { %1241 = vmatpush1.bf16.msra.mxu0 %v650_v14  ;;  %v3866_v14 = vrot.slane %v3419_v21, %v784_v5 }
 0x174   : > { %v679_v12 = vpop.permute.xlu1 %678  ;;  %1242 = vmatprep.subr.bf16.mxu0 %v726_v52  ;;  %1020 = vperm.xlu1 %2767, %v1002_v46  }
 0x175   : > { %v698_v56 = vsel %vm684_vm4, %v679_v12, %v663_v45  ;;  %v677_v57 = vpop.permute.xlu0 %676  ;;  %v690_v59 = vsel %vm684_vm4, %v663_v45, %v679_v12  ;;  %5241 = vst [vmem:[#allocation16_spill] sm:$0xff] %v3866_v14  ;;  %v1004_v12 = vld [vmem:[%s5182_s3 + $0x20] sm:$0xff] }
 0x176   : > { %v689_v60 = vsel %vm684_vm4, %v661_v47, %v677_v57  ;;  %v697_v63 = vsel %vm684_vm4, %v677_v57, %v661_v47  ;;  %v720_v16 = vmul.f32 %v3796_v31, %v698_v56  ;;  %1214 = vmatmul.mubr.bf16.gmra.mrb[8].mxu0 %v2776_v53  ;;  %v719_v25 = vmul.f32 %v3807_v34, %v690_v59  ;;  %v1003_v47 = vld [vmem:[%s5182_s3 + $0x18] sm:$0xff] }
 0x177   : > { %v718_v19 = vmul.f32 %v3796_v31, %v697_v63  ;;  %1243 = vmatpush1.bf16.msra.mxu0 %v725_v54  ;;  %1223 = vmatprep.mubr.bf16.mxu0 %v2777_v13  ;;  %v717_v27 = vmul.f32 %v3807_v34, %v689_v60  ;;  %v1005_v13 = vld [vmem:[%s5182_s3 + $0x28] sm:$0xff]  ;;  %v1006_v60 = vld [vmem:[%s5182_s3 + $0x30] sm:$0xff]  ;;  %v1007_v63 = vld [vmem:[%s5182_s3 + $0x38] sm:$0xff] }
 0x178   : > { %v667_v23 = vpop.permute.xlu1 %666  ;;  %1244 = vmatprep.subr.bf16.mxu0 %v728_v22  ;;  %1025 = vperm.xlu0 %2766, %v1003_v47  }
 0x179   : > { %v665_v28 = vpop.permute.xlu0 %664  ;;  %v730_v0 = vpack.c.bf16 %v720_v16, %v718_v19  ;;  %v729_v6 = vpack.c.bf16 %v719_v25, %v717_v27  ;;  %1030 = vperm.xlu1 %2767, %v1004_v12  }
 0x17b   : > { %1245 = vmatpush1.bf16.msra.mxu0 %v727_v29 }
 0x17c   : > { %v683_v1 = vpop.permute.xlu1 %682  ;;  %1246 = vmatprep.subr.bf16.mxu0 %v730_v0  ;;  %1035 = vperm.xlu0 %2766, %v1005_v13  }
 0x17d   : > { %v692_v7 = vsel %vm684_vm4, %v667_v23, %v683_v1  ;;  %v700_v32 = vsel %vm684_vm4, %v683_v1, %v667_v23  ;;  %v681_v4 = vpop.permute.xlu0 %680  ;;  %1040 = vperm.xlu1 %2767, %v1006_v60  }
 0x17e   : > { %v723_v33 = vmul.f32 %v3807_v34, %v692_v7  ;;  %v724_v10 = vmul.f32 %v3796_v31, %v700_v32  ;;  %v691_v11 = vsel %vm684_vm4, %v665_v28, %v681_v4  ;;  %v699_v35 = vsel %vm684_vm4, %v681_v4, %v665_v28  ;;  %1224 = vmatmul.mubr.bf16.gmra.mrb[12].mxu0 %v2779_v30 }
 0x17f   : > { %v721_v36 = vmul.f32 %v3807_v34, %v691_v11  ;;  %v722_v37 = vmul.f32 %v3796_v31, %v699_v35  ;;  %1247 = vmatpush1.bf16.msra.mxu0 %v729_v6  ;;  %1266 = vmatprep.mubr.bf16.mxu0 %v2782_v3 }
 0x180   : > { %v736_v44 = vpop.permute.xlu1 %735  ;;  %1045 = vperm.xlu0 %2766, %v1007_v63  }
 0x181   : > { %v731_v8 = vpack.c.bf16 %v723_v33, %v721_v36  ;;  %v734_v9 = vpop.permute.xlu0 %733  ;;  %v732_v45 = vpack.c.bf16 %v724_v10, %v722_v37 }
 0x183   : > { %1248 = vmatprep.subr.bf16.mxu0 %v732_v45 }
 0x184   : > { %1249 = vmatpush1.bf16.msra.mxu0 %v731_v8  ;;  %v752_v48 = vpop.permute.xlu1 %751 }
 0x185   : > { %v767_v49 = vsel %vm765_vm5, %v736_v44, %v752_v48  ;;  %v775_v21 = vsel %vm765_vm5, %v752_v48, %v736_v44  ;;  %v750_v50 = vpop.permute.xlu0 %749 }
 0x186   : > { %v792_v20 = vmul.f32 %v3866_v14, %v767_v49  ;;  %v793_v51 = vmul.f32 %v3869_v15, %v775_v21  ;;  %v766_v52 = vsel %vm765_vm5, %v734_v9, %v750_v50  ;;  %v774_v53 = vsel %vm765_vm5, %v750_v50, %v734_v9 }
 0x187   : > { %v790_v54 = vmul.f32 %v3866_v14, %v766_v52  ;;  %v791_v55 = vmul.f32 %v3869_v15, %v774_v53  ;;  %v865_v49 = vsub.s32 6, %v3397_v17 }
 0x188   : > { %v740_v56 = vpop.permute.xlu1 %739 }
 0x189   : > { %v806_v57 = vpack.c.bf16 %v792_v20, %v790_v54  ;;  %v738_v58 = vpop.permute.xlu0 %737  ;;  %v807_v59 = vpack.c.bf16 %v793_v51, %v791_v55 }
 0x18b   : > { %1250 = vmatprep.subr.bf16.mxu0 %v807_v59 }
 0x18c   : > { %1251 = vmatpush1.bf16.msra.mxu0 %v806_v57  ;;  %v756_v16 = vpop.permute.xlu1 %755 }
 0x18d   : > { %v769_v19 = vsel %vm765_vm5, %v740_v56, %v756_v16  ;;  %v777_v22 = vsel %vm765_vm5, %v756_v16, %v740_v56  ;;  %v754_v23 = vpop.permute.xlu0 %753  ;;  %v3942_v56 = vld [vmem:[%s5180_s1] sm:$0xff] }
 0x18e   : > { %v796_v25 = vmul.f32 %v3866_v14, %v769_v19  ;;  %v797_v27 = vmul.f32 %v3869_v15, %v777_v22  ;;  %v768_v28 = vsel %vm765_vm5, %v738_v58, %v754_v23  ;;  %v776_v29 = vsel %vm765_vm5, %v754_v23, %v738_v58  ;;  %v3950_v58 = vld [vmem:[%s5180_s1 + $0x8] sm:$0xff] }
 0x18f   : > { %v794_v0 = vmul.f32 %v3866_v14, %v768_v28  ;;  %v795_v30 = vmul.f32 %v3869_v15, %v776_v29  ;;  %v3945_v57 = vrot.slane %v3942_v56, %v865_v49  ;;  %v3953_v59 = vrot.slane %v3950_v58, %v865_v49 }
 0x190   : > { %v744_v1 = vpop.permute.xlu1 %743 }
 0x191   : > { %v808_v3 = vpack.c.bf16 %v796_v25, %v794_v0  ;;  %v742_v6 = vpop.permute.xlu0 %741  ;;  %v809_v7 = vpack.c.bf16 %v797_v27, %v795_v30  ;;  %5243 = vst [vmem:[#allocation18_spill] sm:$0xff] %v3945_v57  ;;  %5244 = vst [vmem:[#allocation19_spill] sm:$0xff] %v3953_v59 }
 0x193   : > { %1252 = vmatprep.subr.bf16.mxu0 %v809_v7 }
 0x194   : > { %1253 = vmatpush1.bf16.msra.mxu0 %v808_v3  ;;  %v760_v32 = vpop.permute.xlu1 %759 }
 0x195   : > { %v771_v4 = vsel %vm765_vm5, %v744_v1, %v760_v32  ;;  %v779_v5 = vsel %vm765_vm5, %v760_v32, %v744_v1  ;;  %v758_v33 = vpop.permute.xlu0 %757 }
 0x196   : > { %v800_v10 = vmul.f32 %v3866_v14, %v771_v4  ;;  %v801_v11 = vmul.f32 %v3869_v15, %v779_v5  ;;  %v770_v35 = vsel %vm765_vm5, %v742_v6, %v758_v33  ;;  %v778_v36 = vsel %vm765_vm5, %v758_v33, %v742_v6 }
 0x197   : > { %v798_v37 = vmul.f32 %v3866_v14, %v770_v35  ;;  %v799_v38 = vmul.f32 %v3869_v15, %v778_v36 }
 0x198   : > { %v748_v39 = vpop.permute.xlu1 %747 }
 0x199   : > { %v810_v44 = vpack.c.bf16 %v800_v10, %v798_v37  ;;  %v746_v8 = vpop.permute.xlu0 %745  ;;  %v811_v9 = vpack.c.bf16 %v801_v11, %v799_v38 }
 0x19b   : > { %1254 = vmatprep.subr.bf16.mxu0 %v811_v9 }
 0x19c   : > { %1255 = vmatpush1.bf16.msra.mxu0 %v810_v44  ;;  %v764_v45 = vpop.permute.xlu1 %763 }
 0x19d   : > { %v773_v46 = vsel %vm765_vm5, %v748_v39, %v764_v45  ;;  %v781_v47 = vsel %vm765_vm5, %v764_v45, %v748_v39  ;;  %v762_v48 = vpop.permute.xlu0 %761 }
 0x19e   : > { %v804_v21 = vmul.f32 %v3866_v14, %v773_v46  ;;  %v805_v50 = vmul.f32 %v3869_v15, %v781_v47  ;;  %v772_v20 = vsel %vm765_vm5, %v746_v8, %v762_v48  ;;  %v780_v51 = vsel %vm765_vm5, %v762_v48, %v746_v8 }
 0x19f   : > { %v802_v52 = vmul.f32 %v3866_v14, %v772_v20  ;;  %v803_v53 = vmul.f32 %v3869_v15, %v780_v51 }
 0x1a0   : > { %v817_v12 = vpop.permute.xlu1 %816 }
 0x1a1   : > { %v812_v13 = vpack.c.bf16 %v804_v21, %v802_v52  ;;  %v815_v54 = vpop.permute.xlu0 %814  ;;  %v813_v55 = vpack.c.bf16 %v805_v50, %v803_v53 }
 0x1a3   : > { %1256 = vmatprep.subr.bf16.mxu0 %v813_v55 }
 0x1a4   : > { %1257 = vmatpush1.bf16.msra.mxu0 %v812_v13  ;;  %v833_v60 = vpop.permute.xlu1 %832 }
 0x1a5   : > { %v848_v63 = vsel %vm846_vm6, %v817_v12, %v833_v60  ;;  %v856_v16 = vsel %vm846_vm6, %v833_v60, %v817_v12  ;;  %v831_v19 = vpop.permute.xlu0 %830 }
 0x1a6   : > { %v873_v22 = vmul.f32 %v3945_v57, %v848_v63  ;;  %v874_v23 = vmul.f32 %v3953_v59, %v856_v16  ;;  %v847_v25 = vsel %vm846_vm6, %v815_v54, %v831_v19  ;;  %v855_v27 = vsel %vm846_vm6, %v831_v19, %v815_v54 }
 0x1a7   : > { %v871_v28 = vmul.f32 %v3945_v57, %v847_v25  ;;  %v872_v29 = vmul.f32 %v3953_v59, %v855_v27  ;;  %v946_v63 = vsub.s32 7, %v3397_v17 }
 0x1a8   : > { %v821_v0 = vpop.permute.xlu1 %820 }
 0x1a9   : > { %v887_v30 = vpack.c.bf16 %v873_v22, %v871_v28  ;;  %v819_v1 = vpop.permute.xlu0 %818  ;;  %v888_v3 = vpack.c.bf16 %v874_v23, %v872_v29  ;;  %v4006_v17 = vrot.slane %v3942_v56, %v946_v63 }
 0x1ab   : > { %1258 = vmatprep.subr.bf16.mxu0 %v888_v3  ;;  %5245 = vst [vmem:[#allocation20_spill] sm:$0xff] %v4006_v17  ;;  %v2780_v3 = vld [vmem:[#allocation5 + $0x8] ss:$20 sps:$4 sm:$0xff]  }
 0x1ac   : > { %1259 = vmatpush1.bf16.msra.mxu0 %v887_v30  ;;  %v837_v6 = vpop.permute.xlu1 %836 }
 0x1ad   : > { %v850_v7 = vsel %vm846_vm6, %v821_v0, %v837_v6  ;;  %v858_v32 = vsel %vm846_vm6, %v837_v6, %v821_v0  ;;  %v835_v4 = vpop.permute.xlu0 %834 }
 0x1ae   : > { %v877_v5 = vmul.f32 %v3945_v57, %v850_v7  ;;  %v878_v33 = vmul.f32 %v3953_v59, %v858_v32  ;;  %v849_v10 = vsel %vm846_vm6, %v819_v1, %v835_v4  ;;  %v857_v11 = vsel %vm846_vm6, %v835_v4, %v819_v1  ;;  %v2783_v7 = vld [vmem:[#allocation5 + $0x34] ss:$20 sps:$4 sm:$0xff]  }
 0x1af   : > { %v875_v35 = vmul.f32 %v3945_v57, %v849_v10  ;;  %v876_v36 = vmul.f32 %v3953_v59, %v857_v11  ;;  %v4009_v1 = vrot.slane %v3950_v58, %v946_v63 }
 0x1b0   : > { %v825_v37 = vpop.permute.xlu1 %824 }
 0x1b1   : > { %v889_v38 = vpack.c.bf16 %v877_v5, %v875_v35  ;;  %v823_v39 = vpop.permute.xlu0 %822  ;;  %v890_v44 = vpack.c.bf16 %v878_v33, %v876_v36  ;;  %5246 = vst [vmem:[#allocation21_spill] sm:$0xff] %v4009_v1 }
 0x1b3   : > { %1260 = vmatprep.subr.bf16.mxu0 %v890_v44  ;;  %v2785_v44 = vld [vmem:[#allocation5 + $0x30] ss:$20 sps:$4 sm:$0xff]  }
 0x1b4   : > { %1261 = vmatpush1.bf16.msra.mxu0 %v889_v38  ;;  %v841_v8 = vpop.permute.xlu1 %840 }
 0x1b5   : > { %v852_v9 = vsel %vm846_vm6, %v825_v37, %v841_v8  ;;  %v860_v45 = vsel %vm846_vm6, %v841_v8, %v825_v37  ;;  %v839_v46 = vpop.permute.xlu0 %838 }
 0x1b6   : > { %v881_v47 = vmul.f32 %v3945_v57, %v852_v9  ;;  %v882_v48 = vmul.f32 %v3953_v59, %v860_v45  ;;  %v851_v49 = vsel %vm846_vm6, %v823_v39, %v839_v46  ;;  %v859_v21 = vsel %vm846_vm6, %v839_v46, %v823_v39  ;;  %v2786_v9 = vld [vmem:[#allocation5 + $0x5c] ss:$20 sps:$4 sm:$0xff]  }
 0x1b7   : > { %v879_v50 = vmul.f32 %v3945_v57, %v851_v49  ;;  %v880_v20 = vmul.f32 %v3953_v59, %v859_v21 }
 0x1b8   : > { %v829_v51 = vpop.permute.xlu1 %828 }
 0x1b9   : > { %v891_v52 = vpack.c.bf16 %v881_v47, %v879_v50  ;;  %v827_v53 = vpop.permute.xlu0 %826  ;;  %v892_v12 = vpack.c.bf16 %v882_v48, %v880_v20 }
 0x1bb   : > { %1262 = vmatprep.subr.bf16.mxu0 %v892_v12 }
 0x1bc   : > { %1263 = vmatpush1.bf16.msra.mxu0 %v891_v52  ;;  %v845_v13 = vpop.permute.xlu1 %844 }
 0x1bd   : > { %v854_v54 = vsel %vm846_vm6, %v829_v51, %v845_v13  ;;  %v862_v55 = vsel %vm846_vm6, %v845_v13, %v829_v51  ;;  %v843_v60 = vpop.permute.xlu0 %842 }
 0x1be   : > { %v885_v16 = vmul.f32 %v3945_v57, %v854_v54  ;;  %v886_v19 = vmul.f32 %v3953_v59, %v862_v55  ;;  %v853_v22 = vsel %vm846_vm6, %v827_v53, %v843_v60  ;;  %v861_v23 = vsel %vm846_vm6, %v843_v60, %v827_v53  ;;  %v2788_v54 = vld [vmem:[#allocation5 + $0x58] ss:$20 sps:$4 sm:$0xff]  }
 0x1bf   : > { %v883_v25 = vmul.f32 %v3945_v57, %v853_v22  ;;  %v884_v27 = vmul.f32 %v3953_v59, %v861_v23  ;;  %v2789_v60 = vld [vmem:[#allocation5 + $0x84] ss:$20 sps:$4 sm:$0xff]  }
 0x1c0   : > { %v898_v28 = vpop.permute.xlu1 %897 }
 0x1c1   : > { %v893_v29 = vpack.c.bf16 %v885_v16, %v883_v25  ;;  %v896_v0 = vpop.permute.xlu0 %895  ;;  %v894_v30 = vpack.c.bf16 %v886_v19, %v884_v27 }
 0x1c3   : > { %1264 = vmatprep.subr.bf16.mxu0 %v894_v30 }
 0x1c4   : > { %1265 = vmatpush1.bf16.msra.mxu0 %v893_v29  ;;  %v914_v6 = vpop.permute.xlu1 %913 }
 0x1c5   : > { %v929_v32 = vsel %vm927_vm7, %v898_v28, %v914_v6  ;;  %v937_v4 = vsel %vm927_vm7, %v914_v6, %v898_v28  ;;  %v912_v5 = vpop.permute.xlu0 %911 }
 0x1c6   : > { %v954_v33 = vmul.f32 %v4006_v17, %v929_v32  ;;  %v955_v56 = vmul.f32 %v4009_v1, %v937_v4  ;;  %v928_v58 = vsel %vm927_vm7, %v896_v0, %v912_v5  ;;  %v936_v10 = vsel %vm927_vm7, %v912_v5, %v896_v0 }
 0x1c7   : > { %v952_v11 = vmul.f32 %v4006_v17, %v928_v58  ;;  %v953_v35 = vmul.f32 %v4009_v1, %v936_v10  ;;  %1267 = vmatmul.mubr.bf16.vlgmr.msra.gmra.mrb[0].mxu0 %v2780_v3 }
 0x1c8   : > { %v902_v36 = vpop.permute.xlu1 %901  ;;  %1276 = vmatprep.mubr.bf16.mxu0 %v2783_v7  ;;  %v2791_v7 = vld [vmem:[#allocation5 + $0x80] ss:$20 sps:$4 sm:$0xff]  }
 0x1c9   : > { %v968_v37 = vpack.c.bf16 %v954_v33, %v952_v11  ;;  %v900_v38 = vpop.permute.xlu0 %899  ;;  %v969_v39 = vpack.c.bf16 %v955_v56, %v953_v35 }
 0x1cb   : > { %1307 = vmatprep.subr.bf16.mxu0 %v969_v39  ;;  %v2792_v39 = vld [vmem:[#allocation5 + $0x10] ss:$20 sps:$4 sm:$0xff]  }
 0x1cc   : > { %1308 = vmatpush1.bf16.msra.mxu0 %v968_v37  ;;  %v918_v8 = vpop.permute.xlu1 %917 }
 0x1cd   : > { %v931_v45 = vsel %vm927_vm7, %v902_v36, %v918_v8  ;;  %v939_v46 = vsel %vm927_vm7, %v918_v8, %v902_v36  ;;  %v916_v47 = vpop.permute.xlu0 %915  ;;  %v2794_v8 = vld [vmem:[#allocation5 + $0x60] ss:$20 sps:$4 sm:$0xff]  }
 0x1ce   : > { %v958_v48 = vmul.f32 %v4006_v17, %v931_v45  ;;  %v959_v49 = vmul.f32 %v4009_v1, %v939_v46  ;;  %v930_v21 = vsel %vm927_vm7, %v900_v38, %v916_v47  ;;  %v938_v50 = vsel %vm927_vm7, %v916_v47, %v900_v38 }
 0x1cf   : > { %v956_v20 = vmul.f32 %v4006_v17, %v930_v21  ;;  %v957_v51 = vmul.f32 %v4009_v1, %v938_v50  ;;  %1277 = vmatmul.mubr.bf16.gmra.mrb[4].mxu0 %v2785_v44  ;;  %v2793_v44 = vld [vmem:[#allocation5 + $0x38] ss:$20 sps:$4 sm:$0xff]  }
 0x1d0   : > { %v906_v52 = vpop.permute.xlu1 %905  ;;  %1286 = vmatprep.mubr.bf16.mxu0 %v2786_v9  ;;  %v2795_v9 = vld [vmem:[#allocation5 + $0x88] ss:$20 sps:$4 sm:$0xff]  }
 0x1d1   : > { %v970_v53 = vpack.c.bf16 %v958_v48, %v956_v20  ;;  %v904_v12 = vpop.permute.xlu0 %903  ;;  %v971_v13 = vpack.c.bf16 %v959_v49, %v957_v51 }
 0x1d3   : > { %1309 = vmatprep.subr.bf16.mxu0 %v971_v13 }
 0x1d4   : > { %1310 = vmatpush1.bf16.msra.mxu0 %v970_v53  ;;  %v922_v55 = vpop.permute.xlu1 %921 }
 0x1d5   : > { %v933_v63 = vsel %vm927_vm7, %v906_v52, %v922_v55  ;;  %v941_v16 = vsel %vm927_vm7, %v922_v55, %v906_v52  ;;  %v920_v19 = vpop.permute.xlu0 %919 }
 0x1d6   : > { %v962_v22 = vmul.f32 %v4006_v17, %v933_v63  ;;  %v963_v23 = vmul.f32 %v4009_v1, %v941_v16  ;;  %v932_v25 = vsel %vm927_vm7, %v904_v12, %v920_v19  ;;  %v940_v27 = vsel %vm927_vm7, %v920_v19, %v904_v12 }
 0x1d7   : > { %v960_v28 = vmul.f32 %v4006_v17, %v932_v25  ;;  %v961_v29 = vmul.f32 %v4009_v1, %v940_v27  ;;  %1287 = vmatmul.mubr.bf16.gmra.mrb[8].mxu0 %v2788_v54 }
 0x1d8   : > { %v910_v0 = vpop.permute.xlu1 %909  ;;  %1296 = vmatprep.mubr.bf16.mxu0 %v2789_v60 }
 0x1d9   : > { %v972_v30 = vpack.c.bf16 %v962_v22, %v960_v28  ;;  %v908_v3 = vpop.permute.xlu0 %907  ;;  %v973_v6 = vpack.c.bf16 %v963_v23, %v961_v29 }
 0x1db   : > { %1311 = vmatprep.subr.bf16.mxu0 %v973_v6 }
 0x1dc   : > { %1312 = vmatpush1.bf16.msra.mxu0 %v972_v30  ;;  %v926_v32 = vpop.permute.xlu1 %925 }
 0x1dd   : > { %v935_v4 = vsel %vm927_vm7, %v910_v0, %v926_v32  ;;  %v943_v5 = vsel %vm927_vm7, %v926_v32, %v910_v0  ;;  %v924_v33 = vpop.permute.xlu0 %923 }
 0x1de   : > { %v966_v56 = vmul.f32 %v4006_v17, %v935_v4  ;;  %v967_v58 = vmul.f32 %v4009_v1, %v943_v5  ;;  %v934_v10 = vsel %vm927_vm7, %v908_v3, %v924_v33  ;;  %v942_v11 = vsel %vm927_vm7, %v924_v33, %v908_v3 }
 0x1df   : > { %v964_v35 = vmul.f32 %v4006_v17, %v934_v10  ;;  %v965_v36 = vmul.f32 %v4009_v1, %v942_v11  ;;  %1297 = vmatmul.mubr.bf16.gmra.mrb[12].mxu0 %v2791_v7 }
 0x1e0   : > { %1339 = vmatprep.mubr.bf16.mxu0 %v5192_v2 }
 0x1e1   : > { %v974_v37 = vpack.c.bf16 %v966_v56, %v964_v35  ;;  %v975_v38 = vpack.c.bf16 %v967_v58, %v965_v36 }
 0x1e3   : > { %1313 = vmatprep.subr.bf16.mxu0 %v975_v38 }
 0x1e4   : > { %1314 = vmatpush1.bf16.msra.mxu0 %v974_v37 }
 0x1e7   : > { %2554 = vmatmul.mubr.msk.bf16.vlgmr.msra.gmra.mrb[0].mxu0 %vm1148_vm8, %v2792_v39 }
 0x1e8   : > { %1349 = vmatprep.mubr.bf16.mxu0 %v5192_v2 }
 0x1ef   : > { %2555 = vmatmul.mubr.msk.bf16.gmra.mrb[4].mxu0 %vm1148_vm8, %v2793_v44  ;;  %v1016_v49 = vpop.permute.xlu1 %1015 }
 0x1f0   : > { %1359 = vmatprep.mubr.bf16.mxu0 %v5192_v2  ;;  %v1011_v45 = vpop.permute.xlu0 %1010 }
 0x1f3   : > { %v1021_v30 = vpop.permute.xlu1 %1020 }
 0x1f7   : > { %2556 = vmatmul.mubr.msk.bf16.gmra.mrb[8].mxu0 %vm1148_vm8, %v2794_v8  ;;  %v1026_v6 = vpop.permute.xlu0 %1025 }
 0x1f8   : > { %1369 = vmatprep.mubr.bf16.mxu0 %v5192_v2  ;;  %v1031_v10 = vpop.permute.xlu1 %1030 }
 0x1fb   : > { %v1036_v35 = vpop.permute.xlu0 %1035 }
 0x1ff   : > { %2557 = vmatmul.mubr.msk.bf16.gmra.mrb[12].mxu0 %vm1148_vm8, %v2795_v9 }
 0x2ba   : > { %v1341_v46 = vpop.f32.mrb[0].mxu0 }
 0x2bb   : > { %v2589_v47 = vadd.f32 %v1341_v46, %v1011_v45  ;;  %v1343_v48 = vpop.f32.mrb[1].mxu0 }
 0x2bc   : > { %v1345_v21 = vpop.f32.mrb[2].mxu0  ;;  %v2590_v55 = vadd.f32 %v1343_v48, %v1011_v45  ;;  %v1041_v45 = vpop.permute.xlu1 %1040 }
 0x2bd   : > { %v4067_v50 = vmax.f32 %v2589_v47, 0.0  ;;  %v2591_v20 = vadd.f32 %v1345_v21, %v1016_v49  ;;  %v1347_v51 = vpop.f32.mrb[3].mxu0  ;;  %v1046_v47 = vpop.permute.xlu0 %1045 }
 0x2be   : > { %v2592_v63 = vadd.f32 %v1347_v51, %v1016_v49  ;;  %v4085_v22 = vmax.f32 %v2590_v55, 0.0 }
 0x2bf   : > { %5247 = vst [vmem:[#allocation22_spill] sm:$0xff] %v4067_v50  ;;  %v4069_v52 = vmax.f32 %v2591_v20, 0.0  ;;  %1396 = vrot.lane.b32.xlu1 %v4067_v50, %s3007_s27 }
 0x2c0   : > { %v4089_v25 = vmax.f32 %v2592_v63, 0.0 }
 0x2c1   : > { %1398 = vrot.lane.b32.xlu0 %v4069_v52, %s3007_s27 }
 0x2c2   : > { %v1351_v53 = vpop.f32.mrb[4].mxu0 }
 0x2c3   : > { %v1353_v12 = vpop.f32.mrb[5].mxu0  ;;  %1468 = vrot.lane.b32.xlu1 %v4067_v50, %s3008_s29  ;;  %v2593_v3 = vadd.f32 %v1351_v53, %v1021_v30 }
 0x2c4   : > { %v1355_v13 = vpop.f32.mrb[6].mxu0  ;;  %v2594_v5 = vadd.f32 %v1353_v12, %v1021_v30 }
 0x2c5   : > { %v1357_v54 = vpop.f32.mrb[7].mxu0  ;;  %1470 = vrot.lane.b32.xlu0 %v4069_v52, %s3008_s29  ;;  %v2595_v7 = vadd.f32 %v1355_v13, %v1026_v6  ;;  %v4109_v32 = vmax.f32 %v2593_v3, 0.0 }
 0x2c6   : > { %v2596_v33 = vadd.f32 %v1357_v54, %v1026_v6  ;;  %v4129_v56 = vmax.f32 %v2594_v5, 0.0 }
 0x2c7   : > { %1540 = vrot.lane.b32.xlu1 %v4067_v50, %s3009_s14  ;;  %v4113_v4 = vmax.f32 %v2595_v7, 0.0 }
 0x2c8   : > { %v4133_v58 = vmax.f32 %v2596_v33, 0.0 }
 0x2c9   : > { %1542 = vrot.lane.b32.xlu0 %v4069_v52, %s3009_s14 }
 0x2ca   : > { %v1361_v60 = vpop.f32.mrb[8].mxu0 }
 0x2cb   : > { %v1363_v16 = vpop.f32.mrb[9].mxu0  ;;  %1612 = vrot.lane.b32.xlu1 %v4067_v50, %s3010_s16  ;;  %v2597_v11 = vadd.f32 %v1361_v60, %v1031_v10 }
 0x2cc   : > { %v1365_v19 = vpop.f32.mrb[10].mxu0  ;;  %v2598_v39 = vadd.f32 %v1363_v16, %v1031_v10 }
 0x2cd   : > { %v1367_v23 = vpop.f32.mrb[11].mxu0  ;;  %1614 = vrot.lane.b32.xlu0 %v4069_v52, %s3010_s16  ;;  %v2599_v36 = vadd.f32 %v1365_v19, %v1036_v35  ;;  %v4149_v37 = vmax.f32 %v2597_v11, 0.0 }
 0x2ce   : > { %v2600_v44 = vadd.f32 %v1367_v23, %v1036_v35  ;;  %v4169_v8 = vmax.f32 %v2598_v39, 0.0 }
 0x2cf   : > { %1412 = vrot.lane.b32.xlu1 %v4085_v22, %s3007_s27  ;;  %v4153_v38 = vmax.f32 %v2599_v36, 0.0 }
 0x2d0   : > { %v4173_v9 = vmax.f32 %v2600_v44, 0.0 }
 0x2d1   : > { %1414 = vrot.lane.b32.xlu0 %v4089_v25, %s3007_s27 }
 0x2d2   : > { %v1371_v27 = vpop.f32.mrb[12].mxu0 }
 0x2d3   : > { %v4095_v28 = vpop.f32.mrb[13].mxu0  ;;  %1484 = vrot.lane.b32.xlu1 %v4085_v22, %s3008_s29  ;;  %v2601_v46 = vadd.f32 %v1371_v27, %v1041_v45 }
 0x2d4   : > { %v1375_v29 = vpop.f32.mrb[14].mxu0  ;;  %v2602_v20 = vadd.f32 %v4095_v28, %v1041_v45 }
 0x2d5   : > { %v4099_v0 = vpop.f32.mrb[15].mxu0  ;;  %1486 = vrot.lane.b32.xlu0 %v4089_v25, %s3008_s29  ;;  %v2603_v48 = vadd.f32 %v1375_v29, %v1046_v47  ;;  %v4189_v49 = vmax.f32 %v2601_v46, 0.0 }
 0x2d6   : > { %v2604_v51 = vadd.f32 %v4099_v0, %v1046_v47  ;;  %v4207_v53 = vmax.f32 %v2602_v20, 0.0 }
 0x2d7   : > { %1556 = vrot.lane.b32.xlu1 %v4085_v22, %s3009_s14  ;;  %v4193_v21 = vmax.f32 %v2603_v48, 0.0 }
 0x2d8   : > { %v4211_v12 = vmax.f32 %v2604_v51, 0.0 }
 0x2d9   : > { %1558 = vrot.lane.b32.xlu0 %v4089_v25, %s3009_s14 }
 0x2db   : > { %1628 = vrot.lane.b32.xlu1 %v4085_v22, %s3010_s16 }
 0x2dd   : > { %1630 = vrot.lane.b32.xlu0 %v4089_v25, %s3010_s16 }
 0x2df   : > { %1400 = vrot.lane.b32.xlu1 %v4109_v32, %s3007_s27 }
 0x2e1   : > { %1402 = vrot.lane.b32.xlu0 %v4113_v4, %s3007_s27 }
 0x2e3   : > { %1472 = vrot.lane.b32.xlu1 %v4109_v32, %s3008_s29 }
 0x2e5   : > { %1474 = vrot.lane.b32.xlu0 %v4113_v4, %s3008_s29 }
 0x2e7   : > { %1544 = vrot.lane.b32.xlu1 %v4109_v32, %s3009_s14 }
 0x2e9   : > { %1546 = vrot.lane.b32.xlu0 %v4113_v4, %s3009_s14 }
 0x2eb   : > { %1616 = vrot.lane.b32.xlu1 %v4109_v32, %s3010_s16 }
 0x2ed   : > { %1618 = vrot.lane.b32.xlu0 %v4113_v4, %s3010_s16 }
 0x2ef   : > { %1416 = vrot.lane.b32.xlu1 %v4129_v56, %s3007_s27 }
 0x2f1   : > { %1418 = vrot.lane.b32.xlu0 %v4133_v58, %s3007_s27 }
 0x2f3   : > { %1488 = vrot.lane.b32.xlu1 %v4129_v56, %s3008_s29 }
 0x2f5   : > { %1490 = vrot.lane.b32.xlu0 %v4133_v58, %s3008_s29 }
 0x2f7   : > { %1560 = vrot.lane.b32.xlu1 %v4129_v56, %s3009_s14 }
 0x2f9   : > { %1562 = vrot.lane.b32.xlu0 %v4133_v58, %s3009_s14 }
 0x2fb   : > { %1632 = vrot.lane.b32.xlu1 %v4129_v56, %s3010_s16 }
 0x2fd   : > { %1634 = vrot.lane.b32.xlu0 %v4133_v58, %s3010_s16 }
 0x2ff   : > { %1404 = vrot.lane.b32.xlu1 %v4149_v37, %s3007_s27 }
 0x301   : > { %1406 = vrot.lane.b32.xlu0 %v4153_v38, %s3007_s27 }
 0x303   : > { %1476 = vrot.lane.b32.xlu1 %v4149_v37, %s3008_s29 }
 0x305   : > { %1478 = vrot.lane.b32.xlu0 %v4153_v38, %s3008_s29 }
 0x307   : > { %1548 = vrot.lane.b32.xlu1 %v4149_v37, %s3009_s14 }
 0x309   : > { %1550 = vrot.lane.b32.xlu0 %v4153_v38, %s3009_s14 }
 0x30b   : > { %1620 = vrot.lane.b32.xlu1 %v4149_v37, %s3010_s16 }
 0x30d   : > { %1622 = vrot.lane.b32.xlu0 %v4153_v38, %s3010_s16 }
 0x30f   : > { %1420 = vrot.lane.b32.xlu1 %v4169_v8, %s3007_s27 }
 0x311   : > { %1422 = vrot.lane.b32.xlu0 %v4173_v9, %s3007_s27 }
 0x313   : > { %1492 = vrot.lane.b32.xlu1 %v4169_v8, %s3008_s29 }
 0x315   : > { %1494 = vrot.lane.b32.xlu0 %v4173_v9, %s3008_s29 }
 0x317   : > { %1564 = vrot.lane.b32.xlu1 %v4169_v8, %s3009_s14 }
 0x319   : > { %1566 = vrot.lane.b32.xlu0 %v4173_v9, %s3009_s14 }
 0x31b   : > { %1636 = vrot.lane.b32.xlu1 %v4169_v8, %s3010_s16 }
 0x31d   : > { %1638 = vrot.lane.b32.xlu0 %v4173_v9, %s3010_s16 }
 0x31f   : > { %1408 = vrot.lane.b32.xlu1 %v4189_v49, %s3007_s27 }
 0x321   : > { %1410 = vrot.lane.b32.xlu0 %v4193_v21, %s3007_s27 }
 0x323   : > { %1480 = vrot.lane.b32.xlu1 %v4189_v49, %s3008_s29 }
 0x325   : > { %1482 = vrot.lane.b32.xlu0 %v4193_v21, %s3008_s29 }
 0x327   : > { %1552 = vrot.lane.b32.xlu1 %v4189_v49, %s3009_s14 }
 0x329   : > { %1554 = vrot.lane.b32.xlu0 %v4193_v21, %s3009_s14 }
 0x32b   : > { %1424 = vrot.lane.b32.xlu1 %v4207_v53, %s3007_s27 }
 0x32d   : > { %1426 = vrot.lane.b32.xlu0 %v4211_v12, %s3007_s27  ;;  %s5260_s27 = smov 111  }
 0x32f   : > { %1624 = vrot.lane.b32.xlu1 %v4189_v49, %s3010_s16 }
 0x331   : > { %1626 = vrot.lane.b32.xlu0 %v4193_v21, %s3010_s16  ;;  %v1397_v13 = vpop.permute.xlu1 %1396 }
 0x333   : > { %v1399_v54 = vpop.permute.xlu0 %1398  ;;  %1496 = vrot.lane.b32.xlu1 %v4207_v53, %s3008_s29 }
 0x335   : > { %1694 = vrot.lane.b32.xlu0 %v4069_v52, %s3011_s8  ;;  %v4225_v55 = vpop.permute.xlu1 %1468 }
 0x337   : > { %v4227_v60 = vpop.permute.xlu0 %1470  ;;  %1568 = vrot.lane.b32.xlu1 %v4207_v53, %s3009_s14 }
 0x339   : > { %1710 = vrot.lane.b32.xlu0 %v4089_v25, %s3011_s8  ;;  %v4233_v63 = vpop.permute.xlu1 %1540 }
 0x33b   : > { %v4235_v16 = vpop.permute.xlu0 %1542  ;;  %1640 = vrot.lane.b32.xlu1 %v4207_v53, %s3010_s16 }
 0x33d   : > { %1498 = vrot.lane.b32.xlu0 %v4211_v12, %s3008_s29  ;;  %v4241_v19 = vpop.permute.xlu1 %1612 }
 0x33e   : > { %5248 = vst [vmem:[#allocation23_spill] sm:$0xff] %v4241_v19 }
 0x33f   : > { %v4243_v23 = vpop.permute.xlu0 %1614  ;;  %1692 = vrot.lane.b32.xlu1 %v4067_v50, %s3011_s8 }
 0x341   : > { %1698 = vrot.lane.b32.xlu0 %v4113_v4, %s3011_s8  ;;  %v1413_v27 = vpop.permute.xlu1 %1412 }
 0x342   : > { %v1436_v28 = vsel %vm352_vm0, %v1413_v27, %v1397_v13  ;;  %v1428_v29 = vsel %vm352_vm0, %v1397_v13, %v1413_v27  ;;  %v2798_v13 = vld [vmem:[#allocation7 + $0x4] ss:$20 sps:$4 sm:$0xff]  }
 0x343   : > { %v1415_v0 = vpop.permute.xlu0 %1414  ;;  %1708 = vrot.lane.b32.xlu1 %v4085_v22, %s3011_s8  ;;  %v1445_v7 = vmul.f32 %v1428_v29, %v3422_v24  ;;  %v1444_v33 = vmul.f32 %v1436_v28, %v3431_v26  ;;  %2196 = vmatprep.mubr.bf16.mxu1 %v2798_v13 }
 0x344   : > { %v1437_v30 = vsel %vm352_vm0, %v1415_v0, %v1399_v54  ;;  %v1429_v3 = vsel %vm352_vm0, %v1399_v54, %v1415_v0 }
 0x345   : > { %1714 = vrot.lane.b32.xlu0 %v4133_v58, %s3011_s8  ;;  %v4261_v6 = vpop.permute.xlu1 %1484  ;;  %v1447_v5 = vmul.f32 %v1429_v3, %v3422_v24  ;;  %v1446_v10 = vmul.f32 %v1437_v30, %v3431_v26 }
 0x347   : > { %v4267_v11 = vpop.permute.xlu0 %1486  ;;  %1696 = vrot.lane.b32.xlu1 %v4109_v32, %s3011_s8  ;;  %v1461_v35 = vpack.c.bf16 %v1447_v5, %v1445_v7  ;;  %v1460_v36 = vpack.c.bf16 %v1446_v10, %v1444_v33 }
 0x349   : > { %1702 = vrot.lane.b32.xlu0 %v4153_v38, %s3011_s8  ;;  %2164 = vmatprep.subr.bf16.mxu1 %v1461_v35  ;;  %v4273_v39 = vpop.permute.xlu1 %1556 }
 0x34a   : > { %2165 = vmatpush1.bf16.msra.mxu1 %v1460_v36 }
 0x34b   : > { %v4275_v44 = vpop.permute.xlu0 %1558  ;;  %1712 = vrot.lane.b32.xlu1 %v4129_v56, %s3011_s8 }
 0x34d   : > { %1570 = vrot.lane.b32.xlu0 %v4211_v12, %s3009_s14  ;;  %v4281_v45 = vpop.permute.xlu1 %1628  ;;  %s3016_s14 = smov [#allocation8]  }
 0x34e   : > { %5249 = vst [vmem:[#allocation24_spill] sm:$0xff] %v4281_v45 }
 0x34f   : > { %v4283_v46 = vpop.permute.xlu0 %1630  ;;  %1700 = vrot.lane.b32.xlu1 %v4149_v37, %s3011_s8 }
 0x351   : > { %1718 = vrot.lane.b32.xlu0 %v4173_v9, %s3011_s8  ;;  %v1401_v47 = vpop.permute.xlu1 %1400 }
 0x353   : > { %v1403_v48 = vpop.permute.xlu0 %1402  ;;  %1716 = vrot.lane.b32.xlu1 %v4169_v8, %s3011_s8 }
 0x355   : > { %1706 = vrot.lane.b32.xlu0 %v4193_v21, %s3011_s8  ;;  %v4293_v20 = vpop.permute.xlu1 %1472 }
 0x357   : > { %v4295_v51 = vpop.permute.xlu0 %1474  ;;  %1704 = vrot.lane.b32.xlu1 %v4189_v49, %s3011_s8 }
 0x359   : > { %1766 = vrot.lane.b32.xlu0 %v4069_v52, %s3012_s18  ;;  %v4301_v54 = vpop.permute.xlu1 %1544 }
 0x35b   : > { %v4303_v27 = vpop.permute.xlu0 %1546  ;;  %1720 = vrot.lane.b32.xlu1 %v4207_v53, %s3011_s8 }
 0x35d   : > { %1642 = vrot.lane.b32.xlu0 %v4211_v12, %s3010_s16  ;;  %v4309_v28 = vpop.permute.xlu1 %1616  ;;  %s2932_s16 = sshll.u32 %s3016_s14, 4  ;;  %s2933_s16 = int_to_ptr.vmem [resolvable:$false] %s2932_s16 }
 0x35e   : > { %5250 = vst [vmem:[#allocation25_spill] sm:$0xff] %v4309_v28 }
 0x35f   : > { %v4311_v29 = vpop.permute.xlu0 %1618  ;;  %1764 = vrot.lane.b32.xlu1 %v4067_v50, %s3012_s18 }
 0x360   : > { %5251 = vst [vmem:[#allocation26_spill] sm:$0xff] %v4311_v29 }
 0x361   : > { %1782 = vrot.lane.b32.xlu0 %v4089_v25, %s3012_s18  ;;  %v1417_v0 = vpop.permute.xlu1 %1416 }
 0x362   : > { %v1430_v30 = vsel %vm352_vm0, %v1401_v47, %v1417_v0  ;;  %v1438_v3 = vsel %vm352_vm0, %v1417_v0, %v1401_v47 }
 0x363   : > { %v1419_v7 = vpop.permute.xlu0 %1418  ;;  %1780 = vrot.lane.b32.xlu1 %v4085_v22, %s3012_s18  ;;  %v1448_v10 = vmul.f32 %v1438_v3, %v3431_v26  ;;  %v1449_v35 = vmul.f32 %v1430_v30, %v3422_v24 }
 0x364   : > { %v1431_v5 = vsel %vm352_vm0, %v1403_v48, %v1419_v7  ;;  %v1439_v33 = vsel %vm352_vm0, %v1419_v7, %v1403_v48 }
 0x365   : > { %v1450_v36 = vmul.f32 %v1439_v33, %v3431_v26  ;;  %v1451_v13 = vmul.f32 %v1431_v5, %v3422_v24  ;;  %1770 = vrot.lane.b32.xlu0 %v4113_v4, %s3012_s18  ;;  %v4333_v47 = vpop.permute.xlu1 %1488 }
 0x367   : > { %v4335_v0 = vpop.permute.xlu0 %1490  ;;  %1768 = vrot.lane.b32.xlu1 %v4109_v32, %s3012_s18  ;;  %v1463_v2 = vpack.c.bf16 %v1451_v13, %v1449_v35  ;;  %v1462_v48 = vpack.c.bf16 %v1450_v36, %v1448_v10 }
 0x369   : > { %1786 = vrot.lane.b32.xlu0 %v4133_v58, %s3012_s18  ;;  %2166 = vmatprep.subr.bf16.mxu1 %v1463_v2  ;;  %v4341_v30 = vpop.permute.xlu1 %1560 }
 0x36a   : > { %2167 = vmatpush1.bf16.msra.mxu1 %v1462_v48 }
 0x36b   : > { %v4343_v3 = vpop.permute.xlu0 %1562  ;;  %1784 = vrot.lane.b32.xlu1 %v4129_v56, %s3012_s18 }
 0x36d   : > { %1774 = vrot.lane.b32.xlu0 %v4153_v38, %s3012_s18  ;;  %v4349_v7 = vpop.permute.xlu1 %1632 }
 0x36e   : > { %5252 = vst [vmem:[#allocation27_spill] sm:$0xff] %v4349_v7 }
 0x36f   : > { %v4351_v5 = vpop.permute.xlu0 %1634  ;;  %1772 = vrot.lane.b32.xlu1 %v4149_v37, %s3012_s18 }
 0x370   : > { %5253 = vst [vmem:[#allocation28_spill] sm:$0xff] %v4351_v5 }
 0x371   : > { %1790 = vrot.lane.b32.xlu0 %v4173_v9, %s3012_s18  ;;  %v1405_v2 = vpop.permute.xlu1 %1404 }
 0x373   : > { %v1407_v33 = vpop.permute.xlu0 %1406  ;;  %1788 = vrot.lane.b32.xlu1 %v4169_v8, %s3012_s18 }
 0x375   : > { %1778 = vrot.lane.b32.xlu0 %v4193_v21, %s3012_s18  ;;  %v4361_v10 = vpop.permute.xlu1 %1476 }
 0x377   : > { %v4363_v35 = vpop.permute.xlu0 %1478  ;;  %1776 = vrot.lane.b32.xlu1 %v4189_v49, %s3012_s18 }
 0x379   : > { %1838 = vrot.lane.b32.xlu0 %v4069_v52, %s3013_s30  ;;  %v4369_v36 = vpop.permute.xlu1 %1548 }
 0x37b   : > { %v4371_v13 = vpop.permute.xlu0 %1550  ;;  %1792 = vrot.lane.b32.xlu1 %v4207_v53, %s3012_s18 }
 0x37d   : > { %1722 = vrot.lane.b32.xlu0 %v4211_v12, %s3011_s8  ;;  %v1621_v48 = vpop.permute.xlu1 %1620  ;;  %s2934_s8 = scalar_lea.vmem %s2933_s16, 4096 }
 0x37f   : > { %v1623_v1 = vpop.permute.xlu0 %1622  ;;  %1836 = vrot.lane.b32.xlu1 %v4067_v50, %s3013_s30 }
 0x381   : > { %1854 = vrot.lane.b32.xlu0 %v4089_v25, %s3013_s30  ;;  %v1421_v17 = vpop.permute.xlu1 %1420 }
 0x382   : > { %v1432_v57 = vsel %vm352_vm0, %v1405_v2, %v1421_v17  ;;  %v1440_v59 = vsel %vm352_vm0, %v1421_v17, %v1405_v2 }
 0x383   : > { %v1423_v14 = vpop.permute.xlu0 %1422  ;;  %1852 = vrot.lane.b32.xlu1 %v4085_v22, %s3013_s30  ;;  %v1452_v31 = vmul.f32 %v1440_v59, %v3431_v26  ;;  %v1453_v28 = vmul.f32 %v1432_v57, %v3422_v24 }
 0x384   : > { %v1433_v15 = vsel %vm352_vm0, %v1407_v33, %v1423_v14  ;;  %v1441_v34 = vsel %vm352_vm0, %v1423_v14, %v1407_v33 }
 0x385   : > { %v1454_v7 = vmul.f32 %v1441_v34, %v3431_v26  ;;  %v1455_v29 = vmul.f32 %v1433_v15, %v3422_v24  ;;  %1842 = vrot.lane.b32.xlu0 %v4113_v4, %s3013_s30  ;;  %v4397_v17 = vpop.permute.xlu1 %1492 }
 0x387   : > { %v4399_v2 = vpop.permute.xlu0 %1494  ;;  %1840 = vrot.lane.b32.xlu1 %v4109_v32, %s3013_s30  ;;  %v1465_v5 = vpack.c.bf16 %v1455_v29, %v1453_v28  ;;  %v1464_v14 = vpack.c.bf16 %v1454_v7, %v1452_v31 }
 0x389   : > { %1858 = vrot.lane.b32.xlu0 %v4133_v58, %s3013_s30  ;;  %2168 = vmatprep.subr.bf16.mxu1 %v1465_v5  ;;  %v4405_v57 = vpop.permute.xlu1 %1564 }
 0x38a   : > { %2169 = vmatpush1.bf16.msra.mxu1 %v1464_v14 }
 0x38b   : > { %v4407_v34 = vpop.permute.xlu0 %1566  ;;  %1856 = vrot.lane.b32.xlu1 %v4129_v56, %s3013_s30 }
 0x38d   : > { %1794 = vrot.lane.b32.xlu0 %v4211_v12, %s3012_s18  ;;  %v1637_v15 = vpop.permute.xlu1 %1636 }
 0x38e   : > { %v1648_v59 = vsel %vm595_vm3, %v1621_v48, %v1637_v15  ;;  %v1656_v31 = vsel %vm595_vm3, %v1637_v15, %v1621_v48 }
 0x38f   : > { %v1639_v28 = vpop.permute.xlu0 %1638  ;;  %1844 = vrot.lane.b32.xlu1 %v4149_v37, %s3013_s30  ;;  %v4424_v5 = vmul.f32 %v1656_v31, %v3688_v40  ;;  %v4427_v33 = vmul.f32 %v1648_v59, %v3691_v41  ;;  %v1501_v59 = vsel %vm433_vm1, %v4227_v60, %v4267_v11 }
 0x390   : > { %v1649_v29 = vsel %vm595_vm3, %v1623_v1, %v1639_v28  ;;  %v1657_v7 = vsel %vm595_vm3, %v1639_v28, %v1623_v1 }
 0x391   : > { %5254 = vst [vmem:[#allocation29_spill] sm:$0xff] %v4424_v5  ;;  %5255 = vst [vmem:[#allocation30_spill] sm:$0xff] %v4427_v33  ;;  %v4430_v14 = vmul.f32 %v1657_v7, %v3688_v40  ;;  %v4433_v48 = vmul.f32 %v1649_v29, %v3691_v41  ;;  %1846 = vrot.lane.b32.xlu0 %v4153_v38, %s3013_s30  ;;  %v1409_v15 = vpop.permute.xlu1 %1408  ;;  %v1500_v33 = vsel %vm433_vm1, %v4225_v55, %v4261_v6 }
 0x392   : > { %v1509_v40 = vsel %vm433_vm1, %v4267_v11, %v4227_v60  ;;  %v1503_v11 = vsel %vm433_vm1, %v4295_v51, %v4335_v0 }
 0x393   : > { %5256 = vst [vmem:[#allocation31_spill] sm:$0xff] %v4430_v14  ;;  %5257 = vst [vmem:[#allocation32_spill] sm:$0xff] %v4433_v48  ;;  %v1411_v19 = vpop.permute.xlu0 %1410  ;;  %1860 = vrot.lane.b32.xlu1 %v4169_v8, %s3013_s30 }
 0x395   : > { %1862 = vrot.lane.b32.xlu0 %v4173_v9, %s3013_s30  ;;  %v4445_v31 = vpop.permute.xlu1 %1480 }
 0x397   : > { %v4447_v28 = vpop.permute.xlu0 %1482  ;;  %1848 = vrot.lane.b32.xlu1 %v4189_v49, %s3013_s30 }
 0x399   : > { %1850 = vrot.lane.b32.xlu0 %v4193_v21, %s3013_s30  ;;  %v4453_v29 = vpop.permute.xlu1 %1552 }
 0x39a   : > { %5258 = vst [vmem:[#allocation33_spill] sm:$0xff] %v4453_v29 }
 0x39b   : > { %v4455_v7 = vpop.permute.xlu0 %1554  ;;  %1864 = vrot.lane.b32.xlu1 %v4207_v53, %s3013_s30 }
 0x39c   : > { %5259 = vst [vmem:[#allocation34_spill] sm:$0xff] %v4455_v7  ;;  %v1519_v7 = vmul.f32 %v1501_v59, %v3515_v43 }
 0x39d   : > { %1866 = vrot.lane.b32.xlu0 %v4211_v12, %s3013_s30  ;;  %v1425_v1 = vpop.permute.xlu1 %1424  ;;  %s5287_s30 = sshll.u32 %s3225_s13, 7 }
 0x39e   : > { %v1434_v5 = vsel %vm352_vm0, %v1409_v15, %v1425_v1  ;;  %v1442_v14 = vsel %vm352_vm0, %v1425_v1, %v1409_v15  ;;  %s5095_s7 = scalar_lea.vmem [#allocation8], %s5287_s30 }
 0x39f   : > { %v1427_v48 = vpop.permute.xlu0 %1426  ;;  %1908 = vrot.lane.b32.xlu1 %v4067_v50, %s5260_s27  ;;  %v1456_v1 = vmul.f32 %v1442_v14, %v3431_v26  ;;  %v1457_v45 = vmul.f32 %v1434_v5, %v3422_v24  ;;  %v1517_v5 = vmul.f32 %v1500_v33, %v3515_v43  ;;  %v1518_v14 = vmul.f32 %v1509_v40, %v3512_v42  ;;  %s2429_s10 = sshll.u32 %s5095_s7, 4  ;;  %s5132_s10 = int_to_ptr.vmem [resolvable:$true] %s2429_s10 }
 0x3a0   : > { %v1435_v41 = vsel %vm352_vm0, %v1411_v19, %v1427_v48  ;;  %v1443_v15 = vsel %vm352_vm0, %v1427_v48, %v1411_v19  ;;  %v1508_v19 = vsel %vm433_vm1, %v4261_v6, %v4225_v55  ;;  %v1502_v48 = vsel %vm433_vm1, %v4293_v20, %v4333_v47  ;;  %p2935_p7 = scmp.lt.s32.totalorder %s5132_s10, %s2933_s16 }
 0x3a1   : > { %v1458_v29 = vmul.f32 %v1443_v15, %v3431_v26  ;;  %v1459_v50 = vmul.f32 %v1435_v41, %v3422_v24  ;;  %1910 = vrot.lane.b32.xlu0 %v4069_v52, %s5260_s27  ;;  %v4490_v60 = vpop.permute.xlu1 %1624  ;;  %v1511_v55 = vsel %vm433_vm1, %v4335_v0, %v4295_v51  ;;  %v1523_v6 = vmul.f32 %v1503_v11, %v3515_v43 }
 0x3a2   : > { %v1516_v40 = vmul.f32 %v1508_v19, %v3512_v42  ;;  %v1505_v33 = vsel %vm433_vm1, %v4363_v35, %v4399_v2  ;;  %v1510_v51 = vsel %vm433_vm1, %v4333_v47, %v4293_v20  ;;  %v1521_v0 = vmul.f32 %v1502_v48, %v3515_v43 }
 0x3a3   : > { %v4501_v26 = vpop.permute.xlu0 %1626  ;;  %1924 = vrot.lane.b32.xlu1 %v4085_v22, %s5260_s27  ;;  %v1467_v24 = vpack.c.bf16 %v1459_v50, %v1457_v45  ;;  %v1466_v41 = vpack.c.bf16 %v1458_v29, %v1456_v1  ;;  %v1533_v45 = vpack.c.bf16 %v1519_v7, %v1517_v5  ;;  %v1522_v29 = vmul.f32 %v1511_v55, %v3512_v42 }
 0x3a4   : > { %v1504_v7 = vsel %vm433_vm1, %v4361_v10, %v4397_v17  ;;  %v1532_v15 = vpack.c.bf16 %v1518_v14, %v1516_v40  ;;  %v1513_v20 = vsel %vm433_vm1, %v4399_v2, %v4363_v35  ;;  %v1527_v47 = vmul.f32 %v1505_v33, %v3515_v43 }
 0x3a5   : > { %1926 = vrot.lane.b32.xlu0 %v4089_v25, %s5260_s27  ;;  %2170 = vmatprep.subr.bf16.mxu1 %v1467_v24  ;;  %v1497_v50 = vpop.permute.xlu1 %1496  ;;  %v1535_v11 = vpack.c.bf16 %v1523_v6, %v1521_v0  ;;  %v1520_v19 = vmul.f32 %v1510_v51, %v3512_v42  ;;  %v1512_v5 = vsel %vm433_vm1, %v4397_v17, %v4361_v10 }
 0x3a6   : > { %2171 = vmatpush1.bf16.msra.mxu1 %v1466_v41  ;;  %v1525_v24 = vmul.f32 %v1504_v7, %v3515_v43  ;;  %v1526_v35 = vmul.f32 %v1513_v20, %v3512_v42  ;;  %v1573_v14 = vsel %vm514_vm2, %v4235_v16, %v4275_v44  ;;  %v1524_v48 = vmul.f32 %v1512_v5, %v3512_v42 }
 0x3a7   : > { %v4527_v59 = vpop.permute.xlu0 %1694  ;;  %1912 = vrot.lane.b32.xlu1 %v4109_v32, %s5260_s27  ;;  %2172 = vmatprep.subr.bf16.mxu1 %v1533_v45  ;;  %v1534_v2 = vpack.c.bf16 %v1522_v29, %v1520_v19  ;;  %v1506_v55 = vsel %vm433_vm1, %v4445_v31, %v1497_v50  ;;  %v1514_v6 = vsel %vm433_vm1, %v1497_v50, %v4445_v31 }
 0x3a8   : > { %v1537_v17 = vpack.c.bf16 %v1527_v47, %v1525_v24  ;;  %v1572_v45 = vsel %vm514_vm2, %v4233_v63, %v4273_v39  ;;  %v1581_v40 = vsel %vm514_vm2, %v4275_v44, %v4235_v16  ;;  %v1591_v51 = vmul.f32 %v1573_v14, %v3603_v62 }
 0x3a9   : > { %1914 = vrot.lane.b32.xlu0 %v4113_v4, %s5260_s27  ;;  %v4543_v1 = vpop.permute.xlu1 %1568  ;;  %v1536_v0 = vpack.c.bf16 %v1526_v35, %v1524_v48  ;;  %v1528_v29 = vmul.f32 %v1514_v6, %v3512_v42  ;;  %v1529_v16 = vmul.f32 %v1506_v55, %v3515_v43  ;;  %v1575_v20 = vsel %vm514_vm2, %v4303_v27, %v4343_v3 }
 0x3aa   : > { %2173 = vmatpush1.bf16.msra.mxu1 %v1532_v15  ;;  %v1590_v19 = vmul.f32 %v1581_v40, %v3600_v61  ;;  %v1574_v5 = vsel %vm514_vm2, %v4301_v54, %v4341_v30  ;;  %v1577_v14 = vsel %vm514_vm2, %v4371_v13, %v4407_v34  ;;  %v1576_v55 = vsel %vm514_vm2, %v4369_v36, %v4405_v57 }
 0x3ab   : > { %v4551_v41 = vpop.permute.xlu0 %1710  ;;  %1928 = vrot.lane.b32.xlu1 %v4129_v56, %s5260_s27  ;;  %2174 = vmatprep.subr.bf16.mxu1 %v1535_v11 }
 0x3ad   : > { %1930 = vrot.lane.b32.xlu0 %v4133_v58, %s5260_s27  ;;  %v4562_v10 = vpop.permute.xlu1 %1640 }
 0x3ae   : > { %2175 = vmatpush1.bf16.msra.mxu1 %v1534_v2 }
 0x3af   : > { %v1499_v33 = vpop.permute.xlu0 %1498  ;;  %1916 = vrot.lane.b32.xlu1 %v4149_v37, %s5260_s27  ;;  %2176 = vmatprep.subr.bf16.mxu1 %v1537_v17 }
 0x3b0   : > { %v1507_v31 = vsel %vm433_vm1, %v4447_v28, %v1499_v33  ;;  %v1515_v50 = vsel %vm433_vm1, %v1499_v33, %v4447_v28  ;;  %v1580_v28 = vsel %vm514_vm2, %v4273_v39, %v4233_v63  ;;  %v1583_v63 = vsel %vm514_vm2, %v4343_v3, %v4303_v27 }
 0x3b1   : > { %v1530_v44 = vmul.f32 %v1515_v50, %v3512_v42  ;;  %v1531_v7 = vmul.f32 %v1507_v31, %v3515_v43  ;;  %1918 = vrot.lane.b32.xlu0 %v4153_v38, %s5260_s27  ;;  %v4594_v15 = vpop.permute.xlu1 %1692  ;;  %v1589_v42 = vmul.f32 %v1572_v45, %v3603_v62  ;;  %v1595_v39 = vmul.f32 %v1575_v20, %v3603_v62 }
 0x3b2   : > { %2177 = vmatpush1.bf16.msra.mxu1 %v1536_v0  ;;  %v1588_v2 = vmul.f32 %v1580_v28, %v3600_v61  ;;  %v1582_v27 = vsel %vm514_vm2, %v4341_v30, %v4301_v54  ;;  %v1593_v3 = vmul.f32 %v1574_v5, %v3603_v62  ;;  %v1594_v48 = vmul.f32 %v1583_v63, %v3600_v61  ;;  %v2004_v0 = vld [vmem:[%s5184_s5] sm:$0xff]  ;;  %v2005_v28 = vld [vmem:[%s5184_s5 + $0x8] sm:$0xff] }
 0x3b3   : > { %v4605_v47 = vpop.permute.xlu0 %1698  ;;  %1932 = vrot.lane.b32.xlu1 %v4169_v8, %s5260_s27  ;;  %v1539_v43 = vpack.c.bf16 %v1531_v7, %v1529_v16  ;;  %v1538_v11 = vpack.c.bf16 %v1530_v44, %v1528_v29  ;;  %v1605_v35 = vpack.c.bf16 %v1591_v51, %v1589_v42  ;;  %v1585_v54 = vsel %vm514_vm2, %v4407_v34, %v4371_v13  ;;  %v5261_v44 = vld [vmem:[#allocation33_spill] sm:$0xff]  ;;  %v5262_v42 = vld [vmem:[#allocation24_spill] sm:$0xff] }
 0x3b4   : > { %v1604_v6 = vpack.c.bf16 %v1590_v19, %v1588_v2  ;;  %v1599_v30 = vmul.f32 %v1577_v14, %v3603_v62  ;;  %v1607_v40 = vpack.c.bf16 %v1595_v39, %v1593_v3  ;;  %v1592_v33 = vmul.f32 %v1582_v27, %v3600_v61  ;;  %v5264_v63 = vld [vmem:[#allocation13_spill] sm:$0xff]  ;;  %v5265_v39 = vld [vmem:[#allocation34_spill] sm:$0xff] }
 0x3b5   : > { %1934 = vrot.lane.b32.xlu0 %v4173_v9, %s5260_s27  ;;  %2178 = vmatprep.subr.bf16.mxu1 %v1539_v43  ;;  %v4621_v24 = vpop.permute.xlu1 %1708  ;;  %v1584_v51 = vsel %vm514_vm2, %v4405_v57, %v4369_v36  ;;  %v1597_v31 = vmul.f32 %v1576_v55, %v3603_v62  ;;  %v1598_v13 = vmul.f32 %v1585_v54, %v3600_v61  ;;  %v5263_v43 = vld [vmem:[#allocation23_spill] sm:$0xff]  ;;  %v2006_v27 = vld [vmem:[%s5184_s5 + $0x10] sm:$0xff] }
 0x3b6   : > { %2179 = vmatpush1.bf16.msra.mxu1 %v1538_v11  ;;  %v1606_v34 = vpack.c.bf16 %v1594_v48, %v1592_v33  ;;  %v1645_v36 = vsel %vm595_vm3, %v4243_v23, %v4283_v46  ;;  %v1596_v16 = vmul.f32 %v1584_v51, %v3600_v61  ;;  %v1578_v7 = vsel %vm514_vm2, %v5261_v44, %v4543_v1  ;;  %v5267_v54 = vld [vmem:[#allocation26_spill] sm:$0xff] }
 0x3b7   : > { %v4633_v17 = vpop.permute.xlu0 %1714  ;;  %1920 = vrot.lane.b32.xlu1 %v4189_v49, %s5260_s27  ;;  %2180 = vmatprep.subr.bf16.mxu1 %v1605_v35  ;;  %v1609_v29 = vpack.c.bf16 %v1599_v30, %v1597_v31  ;;  %v1586_v20 = vsel %vm514_vm2, %v4543_v1, %v5261_v44  ;;  %v1644_v11 = vsel %vm595_vm3, %v5263_v43, %v5262_v42 }
 0x3b8   : > { %v1653_v19 = vsel %vm595_vm3, %v4283_v46, %v4243_v23  ;;  %v1663_v1 = vmul.f32 %v1645_v36, %v5264_v63  ;;  %v1608_v14 = vpack.c.bf16 %v1598_v13, %v1596_v16  ;;  %v1600_v23 = vmul.f32 %v1586_v20, %v3600_v61  ;;  %v5268_v13 = vld [vmem:[#allocation12_spill] sm:$0xff]  ;;  %v5270_v36 = vld [vmem:[#allocation25_spill] sm:$0xff] }
 0x3b9   : > { %1922 = vrot.lane.b32.xlu0 %v4193_v21, %s5260_s27  ;;  %v4649_v45 = vpop.permute.xlu1 %1696  ;;  %v1601_v46 = vmul.f32 %v1578_v7, %v3603_v62  ;;  %v2008_v16 = vld [vmem:[%s5184_s5 + $0x20] sm:$0xff] }
 0x3ba   : > { %2181 = vmatpush1.bf16.msra.mxu1 %v1604_v6  ;;  %v5266_v6 = vld [vmem:[#allocation28_spill] sm:$0xff] }
 0x3bb   : > { %v4657_v50 = vpop.permute.xlu0 %1702  ;;  %1936 = vrot.lane.b32.xlu1 %v4207_v53, %s5260_s27  ;;  %2182 = vmatprep.subr.bf16.mxu1 %v1607_v40  ;;  %v1647_v30 = vsel %vm595_vm3, %v5267_v54, %v5266_v6  ;;  %v2007_v40 = vld [vmem:[%s5184_s5 + $0x18] sm:$0xff]  ;;  %v1655_v44 = vsel %vm595_vm3, %v5266_v6, %v5267_v54  ;;  %v1650_v6 = vsel %vm595_vm3, %v4490_v60, %v4562_v10 }
 0x3bc   : > { %v1667_v7 = vmul.f32 %v1647_v30, %v5264_v63  ;;  %v1658_v54 = vsel %vm595_vm3, %v4562_v10, %v4490_v60 }
 0x3bd   : > { %1938 = vrot.lane.b32.xlu0 %v4211_v12, %s5260_s27  ;;  %v4671_v57 = vpop.permute.xlu1 %1712  ;;  %s2928_s27 = scalar_lea.vmem %s5132_s10, 2048 }
 0x3be   : > { %2183 = vmatpush1.bf16.msra.mxu1 %v1606_v34  ;;  %v1662_v34 = vmul.f32 %v1653_v19, %v5268_v13  ;;  %p2929_p11 = scmp.ne.s32.totalorder %s5132_s10, %s2928_s27  ;;  %p2936_p9 = scmp.lt.s32.totalorder %s2934_s8, %s2928_s27 }
 0x3bf   : > { %v1571_v5 = vpop.permute.xlu0 %1570  ;;  %2014 = vperm.xlu1 %2767, %v2004_v0   ;;  %2184 = vmatprep.subr.bf16.mxu1 %v1609_v29  ;;  %v5269_v0 = vld [vmem:[#allocation27_spill] sm:$0xff] }
 0x3c0   : > { %v1579_v35 = vsel %vm514_vm2, %v5265_v39, %v1571_v5  ;;  %v1587_v2 = vsel %vm514_vm2, %v1571_v5, %v5265_v39  ;;  %v1646_v29 = vsel %vm595_vm3, %v5270_v36, %v5269_v0  ;;  %p2930_p1 = pnand %p2929_p11, %p5288_p0  ;;  %p2937_p12 = por %p2936_p9, %p2935_p7 }
 0x3c1   : > { %v1602_v3 = vmul.f32 %v1587_v2, %v3600_v61  ;;  %v1603_v48 = vmul.f32 %v1579_v35, %v3603_v62  ;;  %2019 = vperm.xlu0 %2766, %v2005_v28   ;;  %v4707_v55 = vpop.permute.xlu1 %1700  ;;  %v1652_v61 = vsel %vm595_vm3, %v5262_v42, %v5263_v43  ;;  %v1661_v62 = vmul.f32 %v1644_v11, %v5264_v63  ;;  %v2009_v43 = vld [vmem:[%s5184_s5 + $0x28] sm:$0xff]  ;;  %v2010_v35 = vld [vmem:[%s5184_s5 + $0x30] sm:$0xff] }
 0x3c2   : > { %2185 = vmatpush1.bf16.msra.mxu1 %v1608_v14  ;;  %v1660_v42 = vmul.f32 %v1652_v61, %v5268_v13  ;;  %v1654_v11 = vsel %vm595_vm3, %v5269_v0, %v5270_v36  ;;  %v1665_v19 = vmul.f32 %v1646_v29, %v5264_v63  ;;  %v5272_v61 = vld [vmem:[#allocation30_spill] sm:$0xff]  ;;  %v1673_v0 = vmul.f32 %v1650_v6, %v5264_v63  ;;  %v5274_v29 = vld [vmem:[#allocation31_spill] sm:$0xff]  ;;  %p2931_p3 = pneg %p2930_p1 }
 0x3c3   : > { %v4721_v33 = vpop.permute.xlu0 %1718  ;;  %2024 = vperm.xlu1 %2767, %v2006_v27   ;;  %v1611_v51 = vpack.c.bf16 %v1603_v48, %v1601_v46  ;;  %v1610_v31 = vpack.c.bf16 %v1602_v3, %v1600_v23  ;;  %v1677_v28 = vpack.c.bf16 %v1663_v1, %v1661_v62  ;;  %v1666_v1 = vmul.f32 %v1655_v44, %v5268_v13  ;;  %v2011_v23 = vld [vmem:[%s5184_s5 + $0x38] sm:$0xff] }
 0x3c4   : > { %v1676_v39 = vpack.c.bf16 %v1662_v34, %v1660_v42  ;;  %v1679_v14 = vpack.c.bf16 %v1667_v7, %v1665_v19  ;;  %v1664_v27 = vmul.f32 %v1654_v11, %v5268_v13  ;;  %v1672_v34 = vmul.f32 %v1658_v54, %v5268_v13  ;;  %v2796_v11 = vld [vmem:[#allocation7] ss:$20 sps:$4 sm:$0xff]   ;;  %p2938_p2 = pnand %p2937_p12, %p2931_p3 }
 0x3c5   : > { %2029 = vperm.xlu0 %2766, %v2007_v40   ;;  %2186 = vmatprep.subr.bf16.mxu1 %v1611_v51  ;;  %v4736_v20 = vpop.permute.xlu1 %1716  ;;  %v5271_v40 = vld [vmem:[#allocation32_spill] sm:$0xff]  ;;  %v5277_v19 = vld [vmem:[#allocation22_spill] sm:$0xff]  ;;  %v1691_v54 = vpack.c.bf16 %v4211_v12, %v4207_v53  ;;  %v1735_v12 = vsel %vm684_vm4, %v4633_v17, %v4605_v47 }
 0x3c6   : > { %2187 = vmatpush1.bf16.msra.mxu1 %v1610_v31  ;;  %v1678_v3 = vpack.c.bf16 %v1666_v1, %v1664_v27  ;;  %v5273_v62 = vpack.c.bf16 %v5271_v40, %v5272_v61  ;;  %v1684_v1 = vpack.c.bf16 %v4069_v52, %v5277_v19  ;;  %v1689_v27 = vpack.c.bf16 %v4173_v9, %v4169_v8  ;;  %v2801_v52 = vld [vmem:[#allocation7 + $0x28] ss:$20 sps:$4 sm:$0xff]   ;;  %v5278_v9 = vld [vmem:[#allocation14_spill] sm:$0xff] }
 0x3c7   : > { %v4747_v5 = vpop.permute.xlu0 %1706  ;;  %2034 = vperm.xlu1 %2767, %v2008_v16   ;;  %2188 = vmatprep.subr.bf16.mxu1 %v1677_v28  ;;  %v5275_v16 = vld [vmem:[#allocation29_spill] sm:$0xff]  ;;  %v1724_v8 = vsel %vm684_vm4, %v4594_v15, %v4621_v24  ;;  %v1690_v40 = vpack.c.bf16 %v4193_v21, %v4189_v49  ;;  %v2805_v49 = vld [vmem:[#allocation7 + $0x7c] ss:$20 sps:$4 sm:$0xff]   ;;  %v1727_v21 = vsel %vm684_vm4, %v4605_v47, %v4633_v17 }
 0x3c8   : > { %v5276_v44 = vpack.c.bf16 %v5274_v29, %v5275_v16  ;;  %v1728_v29 = vsel %vm684_vm4, %v4707_v55, %v4736_v20 }
 0x3c9   : > { %2039 = vperm.xlu0 %2766, %v2009_v43   ;;  %v4753_v2 = vpop.permute.xlu1 %1704  ;;  %v1685_v43 = vpack.c.bf16 %v4089_v25, %v4085_v22  ;;  %v1686_v22 = vpack.c.bf16 %v4113_v4, %v4109_v32  ;;  %v1733_v32 = vsel %vm684_vm4, %v4551_v41, %v4527_v59  ;;  %v1688_v4 = vpack.c.bf16 %v4153_v38, %v4149_v37 }
 0x3ca   : > { %2189 = vmatpush1.bf16.msra.mxu1 %v1676_v39  ;;  %v1725_v37 = vsel %vm684_vm4, %v4527_v59, %v4551_v41  ;;  %v1743_v38 = vmul.f32 %v1733_v32, %v5278_v9  ;;  %v1726_v59 = vsel %vm684_vm4, %v4649_v45, %v4671_v57 }
 0x3cb   : > { %v4759_v46 = vpop.permute.xlu0 %1766  ;;  %2044 = vperm.xlu1 %2767, %v2010_v35   ;;  %2190 = vmatprep.subr.bf16.mxu1 %v1679_v14  ;;  %v1687_v35 = vpack.c.bf16 %v4133_v58, %v4129_v56  ;;  %v2802_v56 = vld [vmem:[#allocation7 + $0x54] ss:$20 sps:$4 sm:$0xff]  }
 0x3cd   : > { %2049 = vperm.xlu0 %2766, %v2011_v23   ;;  %v4761_v48 = vpop.permute.xlu1 %1720  ;;  %v1732_v23 = vsel %vm684_vm4, %v4621_v24, %v4594_v15  ;;  %v5279_v24 = vld [vmem:[#allocation15_spill] sm:$0xff] }
 0x3ce   : > { %2191 = vmatpush1.bf16.msra.mxu1 %v1678_v3  ;;  %v1741_v3 = vmul.f32 %v1732_v23, %v5278_v9  ;;  %v1740_v53 = vmul.f32 %v1724_v8, %v5279_v24  ;;  %v5280_v8 = vld [vmem:[#allocation17_spill] sm:$0xff] }
 0x3cf   : > { %v1643_v30 = vpop.permute.xlu0 %1642  ;;  %2192 = vmatprep.subr.bf16.mxu1 %v5273_v62 }
 0x3d0   : > { %v1651_v51 = vsel %vm595_vm3, %v4501_v26, %v1643_v30  ;;  %v1659_v31 = vsel %vm595_vm3, %v1643_v30, %v4501_v26  ;;  %v1734_v30 = vsel %vm684_vm4, %v4671_v57, %v4649_v45  ;;  %v1757_v62 = vpack.c.bf16 %v1743_v38, %v1741_v3 }
 0x3d1   : > { %v1674_v60 = vmul.f32 %v1659_v31, %v5268_v13  ;;  %v1675_v10 = vmul.f32 %v1651_v51, %v5264_v63  ;;  %v4784_v36 = vpop.permute.xlu1 %1764  ;;  %v2799_v13 = vld [vmem:[#allocation7 + $0x2c] ss:$20 sps:$4 sm:$0xff]   ;;  %v1745_v41 = vmul.f32 %v1734_v30, %v5278_v9  ;;  %v2804_v51 = vld [vmem:[#allocation7 + $0x50] ss:$20 sps:$4 sm:$0xff]   ;;  %v1742_v31 = vmul.f32 %v1725_v37, %v5279_v24 }
 0x3d2   : > { %2193 = vmatpush1.bf16.msra.mxu1 %v5276_v44  ;;  %v1747_v45 = vmul.f32 %v1735_v12, %v5278_v9  ;;  %v1746_v44 = vmul.f32 %v1727_v21, %v5279_v24 }
 0x3d3   : > { %v4789_v7 = vpop.permute.xlu0 %1782  ;;  %v1683_v28 = vpack.c.bf16 %v1675_v10, %v1673_v0  ;;  %v1682_v42 = vpack.c.bf16 %v1674_v60, %v1672_v34  ;;  %v1736_v34 = vsel %vm684_vm4, %v4736_v20, %v4707_v55  ;;  %v1756_v0 = vpack.c.bf16 %v1742_v31, %v1740_v53 }
 0x3d4   : > { %v1744_v60 = vmul.f32 %v1726_v59, %v5279_v24  ;;  %v1737_v10 = vsel %vm684_vm4, %v4721_v33, %v4657_v50  ;;  %v1749_v47 = vmul.f32 %v1736_v34, %v5278_v9  ;;  %v1759_v16 = vpack.c.bf16 %v1747_v45, %v1745_v41 }
 0x3d5   : > { %2194 = vmatprep.subr.bf16.mxu1 %v1683_v28  ;;  %v4791_v26 = vpop.permute.xlu1 %1780  ;;  %v1729_v28 = vsel %vm684_vm4, %v4657_v50, %v4721_v33  ;;  %v1738_v50 = vsel %vm684_vm4, %v4761_v48, %v4753_v2 }
 0x3d6   : > { %2195 = vmatpush1.bf16.msra.mxu1 %v1682_v42  ;;  %v1751_v42 = vmul.f32 %v1737_v10, %v5278_v9  ;;  %v1758_v20 = vpack.c.bf16 %v1746_v44, %v1744_v60 }
 0x3d7   : > { %v4795_v63 = vpop.permute.xlu0 %1770  ;;  %2237 = vmatprep.subr.bf16.mxu1 %v1685_v43  ;;  %v1748_v43 = vmul.f32 %v1728_v29, %v5279_v24 }
 0x3d8   : > { %v1761_v19 = vpack.c.bf16 %v1751_v42, %v1749_v47 }
 0x3d9   : > { %v4799_v39 = vpop.permute.xlu1 %1768  ;;  %2197 = vmatmul.mubr.bf16.vlgmr.msra.gmra.mrb[0].mxu1 %v2796_v11  ;;  %v1730_v11 = vsel %vm684_vm4, %v4753_v2, %v4761_v48  ;;  %v1805_v2 = vsel %vm765_vm5, %v4789_v7, %v4759_v46 }
 0x3da   : > { %2238 = vmatpush1.bf16.msra.mxu1 %v1684_v1  ;;  %2206 = vmatprep.mubr.bf16.mxu1 %v2799_v13  ;;  %v1750_v13 = vmul.f32 %v1729_v28, %v5279_v24  ;;  %v2807_v1 = vld [vmem:[#allocation7 + $0x78] ss:$20 sps:$4 sm:$0xff]  }
 0x3db   : > { %v4803_v14 = vpop.permute.xlu0 %1786  ;;  %2239 = vmatprep.subr.bf16.mxu1 %v1687_v35  ;;  %v1804_v35 = vsel %vm765_vm5, %v4791_v26, %v4784_v36 }
 0x3dc   : > { %v1813_v3 = vmul.f32 %v1804_v35, %v5280_v8  ;;  %v1799_v31 = vsel %vm765_vm5, %v4795_v63, %v4803_v14 }
 0x3dd   : > { %v4807_v25 = vpop.permute.xlu1 %1784 }
 0x3de   : > { %2240 = vmatpush1.bf16.msra.mxu1 %v1686_v22  ;;  %v2810_v22 = vld [vmem:[#allocation7 + $0xc] ss:$20 sps:$4 sm:$0xff]   ;;  %v1806_v38 = vsel %vm765_vm5, %v4807_v25, %v4799_v39  ;;  %v1798_v59 = vsel %vm765_vm5, %v4799_v39, %v4807_v25 }
 0x3df   : > { %v4815_v58 = vpop.permute.xlu0 %1774  ;;  %2241 = vmatprep.subr.bf16.mxu1 %v1689_v27  ;;  %v1760_v27 = vpack.c.bf16 %v1750_v13, %v1748_v43  ;;  %v1817_v41 = vmul.f32 %v1806_v38, %v5280_v8 }
 0x3e1   : > { %v4828_v6 = vpop.permute.xlu1 %1772  ;;  %2207 = vmatmul.mubr.bf16.gmra.mrb[4].mxu1 %v2801_v52  ;;  %v1752_v52 = vmul.f32 %v1730_v11, %v5279_v24 }
 0x3e2   : > { %2242 = vmatpush1.bf16.msra.mxu1 %v1688_v4  ;;  %2216 = vmatprep.mubr.bf16.mxu1 %v2802_v56  ;;  %v1753_v56 = vmul.f32 %v1738_v50, %v5278_v9  ;;  %v1796_v4 = vsel %vm765_vm5, %v4784_v36, %v4791_v26  ;;  %v1815_v36 = vmul.f32 %v1805_v2, %v5280_v8 }
 0x3e3   : > { %v4841_v15 = vpop.permute.xlu0 %1790  ;;  %2243 = vmatprep.subr.bf16.mxu1 %v1691_v54 }
 0x3e4   : > { %v1809_v21 = vsel %vm765_vm5, %v4841_v15, %v4815_v58  ;;  %v1801_v10 = vsel %vm765_vm5, %v4815_v58, %v4841_v15 }
 0x3e5   : > { %v4855_v61 = vpop.permute.xlu1 %1788  ;;  %v1823_v29 = vmul.f32 %v1809_v21, %v5280_v8 }
 0x3e6   : > { %2244 = vmatpush1.bf16.msra.mxu1 %v1690_v40  ;;  %v1807_v40 = vsel %vm765_vm5, %v4803_v14, %v4795_v63  ;;  %v1800_v45 = vsel %vm765_vm5, %v4828_v6, %v4855_v61 }
 0x3e7   : > { %v4867_v57 = vpop.permute.xlu0 %1778  ;;  %2245 = vmatprep.subr.bf16.mxu1 %v1757_v62  ;;  %v1819_v39 = vmul.f32 %v1807_v40, %v5280_v8 }
 0x3e9   : > { %v4879_v17 = vpop.permute.xlu1 %1776  ;;  %2217 = vmatmul.mubr.bf16.gmra.mrb[8].mxu1 %v2804_v51  ;;  %v1808_v51 = vsel %vm765_vm5, %v4855_v61, %v4828_v6  ;;  %v1831_v14 = vpack.c.bf16 %v1819_v39, %v1817_v41 }
 0x3ea   : > { %2246 = vmatpush1.bf16.msra.mxu1 %v1756_v0  ;;  %2226 = vmatprep.mubr.bf16.mxu1 %v2805_v49  ;;  %v1821_v0 = vmul.f32 %v1808_v51, %v5280_v8 }
 0x3eb   : > { %v4888_v55 = vpop.permute.xlu0 %1838  ;;  %2247 = vmatprep.subr.bf16.mxu1 %v1759_v16 }
 0x3ec   : > { %v1833_v58 = vpack.c.bf16 %v1823_v29, %v1821_v0 }
 0x3ed   : > { %v1793_v33 = vpop.permute.xlu1 %1792 }
 0x3ee   : > { %2248 = vmatpush1.bf16.msra.mxu1 %v1758_v20  ;;  %v1802_v6 = vsel %vm765_vm5, %v4879_v17, %v1793_v33  ;;  %v1810_v28 = vsel %vm765_vm5, %v1793_v33, %v4879_v17 }
 0x3ef   : > { %v1723_v23 = vpop.permute.xlu0 %1722  ;;  %2249 = vmatprep.subr.bf16.mxu1 %v1761_v19  ;;  %v1825_v13 = vmul.f32 %v1810_v28, %v5280_v8 }
 0x3f0   : > { %v1731_v48 = vsel %vm684_vm4, %v4747_v5, %v1723_v23  ;;  %v1739_v32 = vsel %vm684_vm4, %v1723_v23, %v4747_v5  ;;  %v1797_v5 = vsel %vm765_vm5, %v4759_v46, %v4789_v7  ;;  %v1829_v7 = vpack.c.bf16 %v1815_v36, %v1813_v3 }
 0x3f1   : > { %v1754_v54 = vmul.f32 %v1731_v48, %v5279_v24  ;;  %v1755_v30 = vmul.f32 %v1739_v32, %v5278_v9  ;;  %v1837_v37 = vpop.permute.xlu1 %1836  ;;  %2227 = vmatmul.mubr.bf16.gmra.mrb[12].mxu1 %v2807_v1  ;;  %v5281_v9 = vld [vmem:[#allocation16_spill] sm:$0xff]  ;;  %v5282_v1 = vld [vmem:[#allocation19_spill] sm:$0xff] }
 0x3f2   : > { %2250 = vmatpush1.bf16.msra.mxu1 %v1760_v27  ;;  %2269 = vmatprep.mubr.bf16.mxu1 %v2810_v22  ;;  %v1812_v12 = vmul.f32 %v1796_v4, %v5281_v9  ;;  %v1814_v62 = vmul.f32 %v1797_v5, %v5281_v9  ;;  %v1816_v49 = vmul.f32 %v1798_v59, %v5281_v9  ;;  %v5283_v4 = vld [vmem:[#allocation18_spill] sm:$0xff] }
 0x3f3   : > { %v1762_v26 = vpack.c.bf16 %v1754_v54, %v1752_v52  ;;  %v1855_v24 = vpop.permute.xlu0 %1854  ;;  %v1763_v53 = vpack.c.bf16 %v1755_v30, %v1753_v56  ;;  %v1818_v60 = vmul.f32 %v1799_v31, %v5281_v9  ;;  %v1820_v47 = vmul.f32 %v1800_v45, %v5281_v9 }
 0x3f4   : > { %v1828_v34 = vpack.c.bf16 %v1814_v62, %v1812_v12  ;;  %v1822_v61 = vmul.f32 %v1801_v10, %v5281_v9  ;;  %v1824_v20 = vmul.f32 %v1802_v6, %v5281_v9  ;;  %v1877_v50 = vsel %vm846_vm6, %v1855_v24, %v4888_v55 }
 0x3f5   : > { %v1853_v46 = vpop.permute.xlu1 %1852  ;;  %2251 = vmatprep.subr.bf16.mxu1 %v1763_v53  ;;  %v1830_v44 = vpack.c.bf16 %v1818_v60, %v1816_v49  ;;  %v1869_v56 = vsel %vm846_vm6, %v4888_v55, %v1855_v24 }
 0x3f6   : > { %2252 = vmatpush1.bf16.msra.mxu1 %v1762_v26  ;;  %v1876_v15 = vsel %vm846_vm6, %v1853_v46, %v1837_v37  ;;  %v1832_v43 = vpack.c.bf16 %v1822_v61, %v1820_v47  ;;  %v1868_v19 = vsel %vm846_vm6, %v1837_v37, %v1853_v46  ;;  %v1886_v55 = vmul.f32 %v1869_v56, %v5283_v4 }
 0x3f7   : > { %v1843_v25 = vpop.permute.xlu0 %1842  ;;  %2253 = vmatprep.subr.bf16.mxu1 %v1829_v7  ;;  %v1885_v35 = vmul.f32 %v1876_v15, %v5282_v1  ;;  %v1884_v3 = vmul.f32 %v1868_v19, %v5283_v4  ;;  %v2808_v15 = vld [vmem:[#allocation7 + $0x8] ss:$20 sps:$4 sm:$0xff]  }
 0x3f9   : > { %v1841_v63 = vpop.permute.xlu1 %1840  ;;  %v1900_v24 = vpack.c.bf16 %v1886_v55, %v1884_v3  ;;  %v2814_v3 = vld [vmem:[#allocation7 + $0x5c] ss:$20 sps:$4 sm:$0xff]  }
 0x3fa   : > { %2254 = vmatpush1.bf16.msra.mxu1 %v1828_v34 }
 0x3fb   : > { %v1859_v16 = vpop.permute.xlu0 %1858  ;;  %2255 = vmatprep.subr.bf16.mxu1 %v1831_v14 }
 0x3fc   : > { %v1879_v54 = vsel %vm846_vm6, %v1859_v16, %v1843_v25  ;;  %v1871_v5 = vsel %vm846_vm6, %v1843_v25, %v1859_v16 }
 0x3fd   : > { %v1857_v42 = vpop.permute.xlu1 %1856  ;;  %v1891_v36 = vmul.f32 %v1879_v54, %v5282_v1  ;;  %v1890_v7 = vmul.f32 %v1871_v5, %v5283_v4 }
 0x3fe   : > { %2256 = vmatpush1.bf16.msra.mxu1 %v1830_v44  ;;  %v1878_v23 = vsel %vm846_vm6, %v1857_v42, %v1841_v63 }
 0x3ff   : > { %v1795_v11 = vpop.permute.xlu0 %1794  ;;  %2257 = vmatprep.subr.bf16.mxu1 %v1833_v58  ;;  %v1889_v30 = vmul.f32 %v1878_v23, %v5282_v1 }
 0x400   : > { %v1803_v17 = vsel %vm765_vm5, %v4867_v57, %v1795_v11  ;;  %v1811_v33 = vsel %vm765_vm5, %v1795_v11, %v4867_v57  ;;  %v1887_v57 = vmul.f32 %v1877_v50, %v5282_v1  ;;  %v2811_v11 = vld [vmem:[#allocation7 + $0x34] ss:$20 sps:$4 sm:$0xff]  }
 0x401   : > { %v1826_v22 = vmul.f32 %v1803_v17, %v5281_v9  ;;  %v1827_v27 = vmul.f32 %v1811_v33, %v5280_v8  ;;  %v1845_v52 = vpop.permute.xlu1 %1844  ;;  %v1870_v8 = vsel %vm846_vm6, %v1841_v63, %v1857_v42  ;;  %v1903_v46 = vpack.c.bf16 %v1891_v36, %v1889_v30  ;;  %v5284_v33 = vld [vmem:[#allocation20_spill] sm:$0xff] }
 0x402   : > { %2258 = vmatpush1.bf16.msra.mxu1 %v1832_v43  ;;  %v1901_v38 = vpack.c.bf16 %v1887_v57, %v1885_v35  ;;  %v1888_v53 = vmul.f32 %v1870_v8, %v5283_v4 }
 0x403   : > { %v1834_v2 = vpack.c.bf16 %v1826_v22, %v1824_v20  ;;  %v1847_v48 = vpop.permute.xlu0 %1846  ;;  %v1835_v32 = vpack.c.bf16 %v1827_v27, %v1825_v13 }
 0x404   : > { %v1902_v39 = vpack.c.bf16 %v1890_v7, %v1888_v53 }
 0x405   : > { %v1861_v37 = vpop.permute.xlu1 %1860  ;;  %2259 = vmatprep.subr.bf16.mxu1 %v1835_v32 }
 0x406   : > { %2260 = vmatpush1.bf16.msra.mxu1 %v1834_v2  ;;  %v1880_v9 = vsel %vm846_vm6, %v1861_v37, %v1845_v52  ;;  %v1872_v62 = vsel %vm846_vm6, %v1845_v52, %v1861_v37 }
 0x407   : > { %v1863_v26 = vpop.permute.xlu0 %1862  ;;  %2261 = vmatprep.subr.bf16.mxu1 %v1901_v38  ;;  %v1893_v51 = vmul.f32 %v1880_v9, %v5282_v1  ;;  %v1892_v21 = vmul.f32 %v1872_v62, %v5283_v4 }
 0x408   : > { %v1881_v12 = vsel %vm846_vm6, %v1863_v26, %v1847_v48  ;;  %v1873_v40 = vsel %vm846_vm6, %v1847_v48, %v1863_v26  ;;  %v2813_v48 = vld [vmem:[#allocation7 + $0x30] ss:$20 sps:$4 sm:$0xff]  }
 0x409   : > { %v1895_v59 = vmul.f32 %v1881_v12, %v5282_v1  ;;  %v1849_v41 = vpop.permute.xlu1 %1848  ;;  %v1894_v25 = vmul.f32 %v1873_v40, %v5283_v4  ;;  %v2816_v12 = vld [vmem:[#allocation7 + $0x58] ss:$20 sps:$4 sm:$0xff]  }
 0x40a   : > { %2262 = vmatpush1.bf16.msra.mxu1 %v1900_v24 }
 0x40b   : > { %v1851_v31 = vpop.permute.xlu0 %1850  ;;  %2263 = vmatprep.subr.bf16.mxu1 %v1903_v46  ;;  %v1905_v49 = vpack.c.bf16 %v1895_v59, %v1893_v51  ;;  %v1904_v14 = vpack.c.bf16 %v1894_v25, %v1892_v21 }
 0x40d   : > { %v1865_v34 = vpop.permute.xlu1 %1864 }
 0x40e   : > { %v1874_v45 = vsel %vm846_vm6, %v1849_v41, %v1865_v34  ;;  %v1882_v0 = vsel %vm846_vm6, %v1865_v34, %v1849_v41  ;;  %2264 = vmatpush1.bf16.msra.mxu1 %v1902_v39  ;;  %v2817_v41 = vld [vmem:[#allocation7 + $0x84] ss:$20 sps:$4 sm:$0xff]  }
 0x40f   : > { %v1867_v63 = vpop.permute.xlu0 %1866  ;;  %2265 = vmatprep.subr.bf16.mxu1 %v1905_v49  ;;  %v1896_v29 = vmul.f32 %v1874_v45, %v5283_v4  ;;  %v1897_v47 = vmul.f32 %v1882_v0, %v5282_v1 }
 0x410   : > { %v1875_v60 = vsel %vm846_vm6, %v1851_v31, %v1867_v63  ;;  %v1883_v10 = vsel %vm846_vm6, %v1867_v63, %v1851_v31  ;;  %v2819_v63 = vld [vmem:[#allocation7 + $0x80] ss:$20 sps:$4 sm:$0xff]  }
 0x411   : > { %v1898_v16 = vmul.f32 %v1875_v60, %v5283_v4  ;;  %v1899_v44 = vmul.f32 %v1883_v10, %v5282_v1  ;;  %v1909_v6 = vpop.permute.xlu1 %1908  ;;  %v5285_v1 = vld [vmem:[#allocation21_spill] sm:$0xff] }
 0x412   : > { %2266 = vmatpush1.bf16.msra.mxu1 %v1904_v14 }
 0x413   : > { %v1906_v61 = vpack.c.bf16 %v1898_v16, %v1896_v29  ;;  %v1911_v28 = vpop.permute.xlu0 %1910  ;;  %v1907_v42 = vpack.c.bf16 %v1899_v44, %v1897_v47 }
 0x415   : > { %v1925_v58 = vpop.permute.xlu1 %1924  ;;  %2267 = vmatprep.subr.bf16.mxu1 %v1907_v42 }
 0x416   : > { %v1940_v43 = vsel %vm927_vm7, %v1909_v6, %v1925_v58  ;;  %v1948_v20 = vsel %vm927_vm7, %v1925_v58, %v1909_v6  ;;  %2268 = vmatpush1.bf16.msra.mxu1 %v1906_v61 }
 0x417   : > { %v1927_v13 = vpop.permute.xlu0 %1926  ;;  %v1956_v19 = vmul.f32 %v1940_v43, %v5284_v33  ;;  %v1957_v35 = vmul.f32 %v1948_v20, %v5285_v1  ;;  %v2822_v43 = vld [vmem:[#allocation7 + $0x60] ss:$20 sps:$4 sm:$0xff]   ;;  %v2823_v20 = vld [vmem:[#allocation7 + $0x88] ss:$20 sps:$4 sm:$0xff]  }
 0x418   : > { %v1941_v50 = vsel %vm927_vm7, %v1911_v28, %v1927_v13  ;;  %v1949_v17 = vsel %vm927_vm7, %v1927_v13, %v1911_v28  ;;  %v5286_v28 = vmov 0  }
 0x419   : > { %v1958_v22 = vmul.f32 %v1941_v50, %v5284_v33  ;;  %v1959_v27 = vmul.f32 %v1949_v17, %v5285_v1  ;;  %v1913_v52 = vpop.permute.xlu1 %1912  ;;  %2270 = vmatmul.mubr.bf16.vlgmr.msra.gmra.mrb[0].mxu1 %v2808_v15  ;;  %v2820_v15 = vld [vmem:[#allocation7 + $0x10] ss:$20 sps:$4 sm:$0xff]  }
 0x41a   : > { %2279 = vmatprep.mubr.bf16.mxu1 %v2811_v11 }
 0x41b   : > { %v1972_v23 = vpack.c.bf16 %v1958_v22, %v1956_v19  ;;  %v1915_v56 = vpop.permute.xlu0 %1914  ;;  %v1973_v57 = vpack.c.bf16 %v1959_v27, %v1957_v35  ;;  %v2826_v35 = vld [vmem:[%s3231_s12] sm:$0xff] }
 0x41d   : > { %v1929_v2 = vpop.permute.xlu1 %1928  ;;  %2310 = vmatprep.subr.bf16.mxu1 %v1973_v57 }
 0x41e   : > { %v1942_v32 = vsel %vm927_vm7, %v1913_v52, %v1929_v2  ;;  %v1950_v4 = vsel %vm927_vm7, %v1929_v2, %v1913_v52  ;;  %2311 = vmatpush1.bf16.msra.mxu1 %v1972_v23  ;;  %v2827_v23 = vld [vmem:[%s3231_s12 + $0x8] sm:$0xff]  ;;  %v2828_v2 = vld [vmem:[%s3231_s12 + $0x10] sm:$0xff] }
 0x41f   : > { %v1931_v54 = vpop.permute.xlu0 %1930  ;;  %v1960_v37 = vmul.f32 %v1942_v32, %v5284_v33  ;;  %v1961_v38 = vmul.f32 %v1950_v4, %v5285_v1  ;;  %v2829_v32 = vld [vmem:[%s3231_s12 + $0x18] sm:$0xff] }
 0x420   : > { %v1943_v8 = vsel %vm927_vm7, %v1915_v56, %v1931_v54  ;;  %v1951_v30 = vsel %vm927_vm7, %v1931_v54, %v1915_v56 }
 0x421   : > { %v1962_v55 = vmul.f32 %v1943_v8, %v5284_v33  ;;  %v1963_v5 = vmul.f32 %v1951_v30, %v5285_v1  ;;  %v1917_v36 = vpop.permute.xlu1 %1916  ;;  %2280 = vmatmul.mubr.bf16.gmra.mrb[4].mxu1 %v2813_v48 }
 0x422   : > { %2289 = vmatprep.mubr.bf16.mxu1 %v2814_v3 }
 0x423   : > { %v1974_v26 = vpack.c.bf16 %v1962_v55, %v1960_v37  ;;  %v1919_v24 = vpop.permute.xlu0 %1918  ;;  %v1975_v53 = vpack.c.bf16 %v1963_v5, %v1961_v38  ;;  %v2830_v5 = vld [vmem:[%s3231_s12 + $0x20] sm:$0xff] }
 0x425   : > { %v1933_v9 = vpop.permute.xlu1 %1932  ;;  %2312 = vmatprep.subr.bf16.mxu1 %v1975_v53  ;;  %v2831_v53 = vld [vmem:[%s3231_s12 + $0x28] sm:$0xff] }
 0x426   : > { %v1944_v40 = vsel %vm927_vm7, %v1917_v36, %v1933_v9  ;;  %v1952_v59 = vsel %vm927_vm7, %v1933_v9, %v1917_v36  ;;  %2313 = vmatpush1.bf16.msra.mxu1 %v1974_v26 }
 0x427   : > { %v1935_v46 = vpop.permute.xlu0 %1934  ;;  %v1964_v51 = vmul.f32 %v1944_v40, %v5284_v33  ;;  %v1965_v31 = vmul.f32 %v1952_v59, %v5285_v1  ;;  %v2832_v40 = vld [vmem:[%s3231_s12 + $0x30] sm:$0xff] }
 0x428   : > { %v1945_v7 = vsel %vm927_vm7, %v1919_v24, %v1935_v46  ;;  %v1953_v62 = vsel %vm927_vm7, %v1935_v46, %v1919_v24 }
 0x429   : > { %v1966_v39 = vmul.f32 %v1945_v7, %v5284_v33  ;;  %v1967_v25 = vmul.f32 %v1953_v62, %v5285_v1  ;;  %v1921_v34 = vpop.permute.xlu1 %1920  ;;  %2290 = vmatmul.mubr.bf16.gmra.mrb[8].mxu1 %v2816_v12 }
 0x42a   : > { %2299 = vmatprep.mubr.bf16.mxu1 %v2817_v41  ;;  %v2833_v41 = vld [vmem:[%s3231_s12 + $0x38] sm:$0xff] }
 0x42b   : > { %v1976_v49 = vpack.c.bf16 %v1966_v39, %v1964_v51  ;;  %v1923_v21 = vpop.permute.xlu0 %1922  ;;  %v1977_v45 = vpack.c.bf16 %v1967_v25, %v1965_v31 }
 0x42d   : > { %v1937_v0 = vpop.permute.xlu1 %1936  ;;  %2314 = vmatprep.subr.bf16.mxu1 %v1977_v45 }
 0x42e   : > { %v1946_v14 = vsel %vm927_vm7, %v1921_v34, %v1937_v0  ;;  %v1954_v60 = vsel %vm927_vm7, %v1937_v0, %v1921_v34  ;;  %2315 = vmatpush1.bf16.msra.mxu1 %v1976_v49  ;;  %v2834_v49 = vld [vmem:[%s3231_s12 + $0x40] sm:$0xff] }
 0x42f   : > { %v1939_v10 = vpop.permute.xlu0 %1938  ;;  %v1968_v16 = vmul.f32 %v1946_v14, %v5284_v33  ;;  %v1969_v44 = vmul.f32 %v1954_v60, %v5285_v1 }
 0x430   : > { %v1947_v29 = vsel %vm927_vm7, %v1923_v21, %v1939_v10  ;;  %v1955_v47 = vsel %vm927_vm7, %v1939_v10, %v1923_v21  ;;  %v2836_v10 = vld [vmem:[%s3231_s12 + $0x50] sm:$0xff] }
 0x431   : > { %v1970_v6 = vmul.f32 %v1947_v29, %v5284_v33  ;;  %v1971_v61 = vmul.f32 %v1955_v47, %v5285_v1  ;;  %2300 = vmatmul.mubr.bf16.gmra.mrb[12].mxu1 %v2819_v63  ;;  %v2835_v63 = vld [vmem:[%s3231_s12 + $0x48] sm:$0xff]  ;;  %v2837_v47 = vld [vmem:[%s3231_s12 + $0x58] sm:$0xff] }
 0x432   : > { %2342 = vmatprep.mubr.bf16.mxu1 %v5286_v28 }
 0x433   : > { %v1978_v42 = vpack.c.bf16 %v1970_v6, %v1968_v16  ;;  %v1979_v58 = vpack.c.bf16 %v1971_v61, %v1969_v44 }
 0x435   : > { %2316 = vmatprep.subr.bf16.mxu1 %v1979_v58 }
 0x436   : > { %2317 = vmatpush1.bf16.msra.mxu1 %v1978_v42 }
 0x439   : > { %2578 = vmatmul.mubr.msk.bf16.vlgmr.msra.gmra.mrb[0].mxu1 %vm1148_vm8, %v2820_v15 }
 0x43a   : > { %2352 = vmatprep.mubr.bf16.mxu1 %v5286_v28 }
 0x43e   : > { %v2015_v11 = vpop.permute.xlu1 %2014 }
 0x440   : > { %v2020_v33 = vpop.permute.xlu0 %2019 }
 0x441   : > { %2579 = vmatmul.mubr.msk.bf16.gmra.mrb[4].mxu1 %vm1148_vm8, %v2821_v18  ;;  %v2838_v18 = vld [vmem:[%s3231_s12 + $0x60] sm:$0xff] }
 0x442   : > { %2362 = vmatprep.mubr.bf16.mxu1 %v5286_v28  ;;  %v2025_v3 = vpop.permute.xlu1 %2024 }
 0x444   : > { %v2030_v37 = vpop.permute.xlu0 %2029 }
 0x446   : > { %v2035_v7 = vpop.permute.xlu1 %2034 }
 0x448   : > { %v2040_v39 = vpop.permute.xlu0 %2039 }
 0x449   : > { %2580 = vmatmul.mubr.msk.bf16.gmra.mrb[8].mxu1 %vm1148_vm8, %v2822_v43 }
 0x44a   : > { %2372 = vmatprep.mubr.bf16.mxu1 %v5286_v28  ;;  %v2045_v44 = vpop.permute.xlu1 %2044 }
 0x44c   : > { %v2050_v42 = vpop.permute.xlu0 %2049 }
 0x451   : > { %2581 = vmatmul.mubr.msk.bf16.gmra.mrb[12].mxu1 %vm1148_vm8, %v2823_v20 }
 0x50c   : > { %v2344_v13 = vpop.f32.mrb[0].mxu1 }
 0x50d   : > { %v2605_v50 = vadd.f32 %v2344_v13, %v2015_v11  ;;  %v2346_v17 = vpop.f32.mrb[1].mxu1  ;;  %v2839_v13 = vld [vmem:[%s3231_s12 + $0x68] sm:$0xff] }
 0x50e   : > { %v2606_v19 = vadd.f32 %v2346_v17, %v2015_v11  ;;  %v2348_v1 = vpop.f32.mrb[2].mxu1 }
 0x50f   : > { %v2383_v22 = vadd.f32 %v2826_v35, %v2605_v50  ;;  %v2607_v27 = vadd.f32 %v2348_v1, %v2020_v33  ;;  %v2350_v52 = vpop.f32.mrb[3].mxu1  ;;  %v2841_v1 = vld [vmem:[%s3231_s12 + $0x78] sm:$0xff] }
 0x510   : > { %v2384_v56 = vadd.f32 %v2827_v23, %v2606_v19  ;;  %v2608_v57 = vadd.f32 %v2350_v52, %v2020_v33  ;;  %v2840_v33 = vld [vmem:[%s3231_s12 + $0x70] sm:$0xff] }
 0x511   : > { %2399 = vst [vmem:[%s5095_s7] sm:$0xff] %v2383_v22  ;;  %v2385_v48 = vadd.f32 %v2828_v2, %v2607_v27 }
 0x512   : > { %2400 = vst [vmem:[%s5095_s7 + $0x8] sm:$0xff] %v2384_v56  ;;  %v2386_v4 = vadd.f32 %v2829_v32, %v2608_v57 }
 0x513   : > { %2401 = vst [vmem:[%s5095_s7 + $0x10] sm:$0xff] %v2385_v48 }
 0x514   : > { %2402 = vst [vmem:[%s5095_s7 + $0x18] sm:$0xff] %v2386_v4  ;;  %v2354_v54 = vpop.f32.mrb[4].mxu1 }
 0x515   : > { %v2609_v8 = vadd.f32 %v2354_v54, %v2025_v3  ;;  %v2356_v30 = vpop.f32.mrb[5].mxu1 }
 0x516   : > { %v2610_v38 = vadd.f32 %v2356_v30, %v2025_v3  ;;  %v2358_v55 = vpop.f32.mrb[6].mxu1 }
 0x517   : > { %v2387_v36 = vadd.f32 %v2830_v5, %v2609_v8  ;;  %v2611_v26 = vadd.f32 %v2358_v55, %v2030_v37  ;;  %v2360_v24 = vpop.f32.mrb[7].mxu1 }
 0x518   : > { %v2388_v9 = vadd.f32 %v2831_v53, %v2610_v38  ;;  %v2612_v12 = vadd.f32 %v2360_v24, %v2030_v37 }
 0x519   : > { %2403 = vst [vmem:[%s5095_s7 + $0x20] sm:$0xff] %v2387_v36  ;;  %v2389_v59 = vadd.f32 %v2832_v40, %v2611_v26 }
 0x51a   : > { %2404 = vst [vmem:[%s5095_s7 + $0x28] sm:$0xff] %v2388_v9  ;;  %v2390_v46 = vadd.f32 %v2833_v41, %v2612_v12 }
 0x51b   : > { %2405 = vst [vmem:[%s5095_s7 + $0x30] sm:$0xff] %v2389_v59 }
 0x51c   : > { %2406 = vst [vmem:[%s5095_s7 + $0x38] sm:$0xff] %v2390_v46  ;;  %v2364_v62 = vpop.f32.mrb[8].mxu1 }
 0x51d   : > { %v2613_v51 = vadd.f32 %v2364_v62, %v2035_v7  ;;  %v2366_v31 = vpop.f32.mrb[9].mxu1 }
 0x51e   : > { %v2614_v25 = vadd.f32 %v2366_v31, %v2035_v7  ;;  %v2368_v34 = vpop.f32.mrb[10].mxu1 }
 0x51f   : > { %v2391_v21 = vadd.f32 %v2834_v49, %v2613_v51  ;;  %v2615_v45 = vadd.f32 %v2368_v34, %v2040_v39  ;;  %v2370_v0 = vpop.f32.mrb[11].mxu1 }
 0x520   : > { %v2392_v14 = vadd.f32 %v2835_v63, %v2614_v25  ;;  %v2616_v60 = vadd.f32 %v2370_v0, %v2040_v39 }
 0x521   : > { %2407 = vst [vmem:[%s5095_s7 + $0x40] sm:$0xff] %v2391_v21  ;;  %v2393_v29 = vadd.f32 %v2836_v10, %v2615_v45 }
 0x522   : > { %2408 = vst [vmem:[%s5095_s7 + $0x48] sm:$0xff] %v2392_v14  ;;  %v2394_v16 = vadd.f32 %v2837_v47, %v2616_v60 }
 0x523   : > { %2409 = vst [vmem:[%s5095_s7 + $0x50] sm:$0xff] %v2393_v29 }
 0x524   : > { %2410 = vst [vmem:[%s5095_s7 + $0x58] sm:$0xff] %v2394_v16  ;;  %v2374_v6 = vpop.f32.mrb[12].mxu1 }
 0x525   : > { %v2617_v61 = vadd.f32 %v2374_v6, %v2045_v44  ;;  %v2376_v28 = vpop.f32.mrb[13].mxu1 }
 0x526   : > { %v2618_v58 = vadd.f32 %v2376_v28, %v2045_v44  ;;  %v2378_v15 = vpop.f32.mrb[14].mxu1 }
 0x527   : > { %v2395_v43 = vadd.f32 %v2838_v18, %v2617_v61  ;;  %v2619_v20 = vadd.f32 %v2378_v15, %v2050_v42  ;;  %v2380_v11 = vpop.f32.mrb[15].mxu1 }
 0x528   : > { %v2396_v50 = vadd.f32 %v2839_v13, %v2618_v58  ;;  %v2620_v17 = vadd.f32 %v2380_v11, %v2050_v42 }
 0x529   : > { %2411 = vst [vmem:[%s5095_s7 + $0x60] sm:$0xff] %v2395_v43  ;;  %v2397_v19 = vadd.f32 %v2840_v33, %v2619_v20 }
 0x52a   : > { %2412 = vst [vmem:[%s5095_s7 + $0x68] sm:$0xff] %v2396_v50  ;;  %v2398_v35 = vadd.f32 %v2841_v1, %v2620_v17 }
 0x52b   : > { %2413 = vst [vmem:[%s5095_s7 + $0x70] sm:$0xff] %v2397_v19 }
 0x52c   : > { %2414 = vst [vmem:[%s5095_s7 + $0x78] sm:$0xff] %v2398_v35 }
 0x52d   : > { %2941 = shalt.err (!%p2938_p2)
}
 0x52e   : > { %s2942_s12 = scalar_lea.hbm %s5128_s15, 2048  ;;  %s2946_s7 = scalar_lea.hbm %s5185_s6, 4096 }
 0x52f   : > { %p2943_p13 = scmp.ne.s32.totalorder %s5128_s15, %s2942_s12  ;;  %p2947_p4 = scmp.lt.u32.totalorder %s5128_s15, %s5185_s6 }
 0x530   : > { %p2948_p5 = scmp.lt.u32.totalorder %s2946_s7, %s2942_s12  ;;  %p2950_p11 = scmp.lt.u32.totalorder %s2942_s12, %s5128_s15 }
 0x531   : > { %p2944_p6 = pnand %p2943_p13, %p5288_p0 }
 0x532   : > { %p2949_p8 = por %p2948_p5, %p2947_p4 }
 0x533   : > { %p2945_p10 = pneg %p2944_p6 }
 0x534   : > { %p2951_p1 = por %p2950_p11, %p2949_p8 }
 0x536   : > { %p2952_p3 = pnand %p2951_p1, %p2945_p10 }
 0x538   : > { %2955 = shalt.err (!%p2952_p3)
}
 0x539   : > { %s3017_s20 = smov 256  }
 0x53a   : > { %2695 = dma.vmem_to_hbm [thread:$0]  (%p5288_p0), %s5132_s10, 2048, %s5128_s15, %s2416_s25, %s3017_s20, %s3017_s20, %s3008_s29  }
 0x53b PF: > { %s2444_s27 = sand.u32 1, %s2986_s21   ;;  %p5289_p7 = scmp.ne.s32.totalorder %s5228_s28, 0 }
 0x53c   : > { %p5290_p9 = scmp.ge.s32.totalorder %s2998_s24, 2  ;;  %s2445_s14 = scalar_lea.sflag [#allocation4], %s2444_s27 }
 0x53e   : > { %p2709_p12 = pnand %p5290_p9, %p5289_p7 }
 0x540   : > { %2981 = dma.done.wait (!%p2709_p12), %s2445_s14, 2048  }
 0x541   : > { %2983 = vsyncadd (!%p2709_p12), %s2445_s14, 4294965248  ;;  %p20_p2 = scmp.ge.s32.totalorder %s3163_s26, 4   ;;  %s5291_s21 = smov %s2990_s22 }
 0x542   : > { %s5292_s22 = smov %s2994_s23  ;;  %s5293_s23 = smov %s3179_s11 }
 0x543   : > { %s5294_s24 = smov %s3163_s26  ;;  %22 = sbr.rel (!%p20_p2) target bundleno = 6 (0x6), region = 97 }
 0x54a   :  { %2450 = vsyncpa [#allocation3], 1 }
 0x54b   :  { %2452 = vsyncpa [#allocation3 + $0x1], 1 }
 0x54c   :  { %2453 = vsyncpa [#allocation6], 1 }
 0x54d   :  { %2454 = vsyncpa [#allocation4], 1 }
 0x54e   :  { %2456 = vsyncpa [#allocation4 + $0x1], 1 }

</bundles_post_ra>
